<compile_context>
chip_gen: v7x
topology: tpu7x:2x2x1
jax: 0.10.0
libtpu: 0.0.40
codegen_flags: <defaults>
</compile_context>

<pallas_src>
import numpy as np
import jax
import jax.numpy as jnp
from jax.experimental import pallas as pl
from jax.experimental.pallas import tpu as pltpu

DOMAINS = ['OC', 'OY', 'OW', 'PB', 'PM', 'PN']
FEAT_SIZES = [25, 26, 12, 6, 94, 32]        # feature_embed_size values
FEAT_EMB_DIM = 5

_VMEM = pl.BlockSpec(memory_space=pltpu.MemorySpace.VMEM)

MAX_UNROLL_SEQ = 32                         # full time-loop unroll only below this


# ---------------------------------------------------------------------------
# Fused Pallas kernel
# ---------------------------------------------------------------------------
def make_fused_kernel(n_layers, h_dim):
    """Whole Mixture.forward (minus embedding gathers) in one kernel.

    Ref order: x,
               [fused layer i: wih_fused, whh_fused, bias_fused] * n_layers,
               head_w, head_b, cps_scale, out.

    Fused layer i combines common layer i and specific layer i (both bidirectional):
      state rows (4B, H):   [C-fwd | C-bwd | S-fwd | S-bwd]
      gate cols  (.., 16H): [C-fwd gates | C-bwd gates | S-fwd gates | S-bwd gates],
                            PyTorch gate order (i,f,g,o) inside each 4H block.
    Layer output lanes are [C-fwd | C-bwd | S-fwd | S-bwd] == [out1 | out2], exactly
    what torch.cat((out1, out2), dim=2) feeds to l1.
    """
    H = h_dim
    G = 4 * H          # gates of one direction
    W = 4 * G          # two stacks x two directions

    def kernel(*refs):
        x_ref = refs[0]
        lyr = refs[1:1 + 3 * n_layers]
        w_ref, b_ref, scale_ref, out_ref = refs[1 + 3 * n_layers:]

        B, S, _ = x_ref.shape
        R = 4 * B                                   # fused state rows

        # Constant row-selection masks, hoisted out of all loops.
        r2 = jax.lax.broadcasted_iota(jnp.int32, (R, 2 * G), 0)
        m_common = r2 < 2 * B                                        # (4B, 2G)
        r1 = jax.lax.broadcasted_iota(jnp.int32, (R, G), 0)
        m_fwd = (r1 < B) | ((r1 >= 2 * B) & (r1 < 3 * B))            # (4B, G)

        def fused_layer(X, wih, whh, bias):
            """One depth: common bi-LSTM + specific bi-LSTM, interleaved/fused.

            X:    (B, S, Dt)   layer 0: Dt = Din; deeper: Dt = 4H = [out1|out2]
            wih:  (Dt, 16H)    layer 0: [C_f|C_b|S_f|S_b]; deeper: block-diagonal
            whh:  (H, 16H)     [WhhC_f^T | WhhC_b^T | WhhS_f^T | WhhS_b^T]
            bias: (1, 16H)     (b_ih + b_hh) per direction/stack
            returns (B, S, 4H) with lanes [C-fwd | C-bwd | S-fwd | S-bwd].
            """
            Bx, Sx, Dt = X.shape

            # Single input-projection matmul for both stacks & directions.
            gx = (jnp.dot(X.reshape(Bx * Sx, Dt), wih,
                          preferred_element_type=jnp.float32) + bias)
            gx = gx.reshape(Bx, Sx, W)

            h = jnp.zeros((R, H), jnp.float32)      # zero h0/c0 == init_hidden
            c = jnp.zeros((R, H), jnp.float32)
            hist = [None] * Sx

            # Fully unrolled (guarded to small S). Both stacks and both directions
            # advance each iteration -> 1 matmul + 3 EUP pushes per step.
            for t in range(Sx):
                tt = Sx - 1 - t
                # Input-gate slab for this step (independent of h/c -> off the
                # recurrence critical path).
                gslab = jnp.concatenate(
                    [gx[:, t, 0 * G:1 * G],          # common fwd   @ t
                     gx[:, tt, 1 * G:2 * G],         # common bwd   @ S-1-t
                     gx[:, t, 2 * G:3 * G],          # specific fwd @ t
                     gx[:, tt, 3 * G:4 * G]],        # specific bwd @ S-1-t
                    axis=0)                          # (4B, 4H)

                # One fused recurrence matmul; keep only the per-row diagonal block.
                rec = jnp.dot(h, whh, preferred_element_type=jnp.float32)  # (4B, 16H)
                rec = jnp.where(m_common, rec[:, :2 * G], rec[:, 2 * G:])  # (4B, 8H)
                rec = jnp.where(m_fwd, rec[:, :G], rec[:, G:])             # (4B, 4H)

                g = gslab + rec
                sig = jax.nn.sigmoid(g)              # 1 EUP push, whole slab
                i_g = sig[:, 0:H]
                f_g = sig[:, H:2 * H]
                o_g = sig[:, 3 * H:4 * H]
                g_g = jnp.tanh(g[:, 2 * H:3 * H])    # 2nd EUP push
                c = f_g * c + i_g * g_g
                h = o_g * jnp.tanh(c)                # 3rd EUP push
                hist[t] = h

            # Assemble (B, S, 4H): fwd blocks from step t, bwd blocks from step S-1-t
            # (nn.LSTM bidirectional output alignment). Once per layer, off the chain.
            rows = []
            for t in range(Sx):
                tt = Sx - 1 - t
                rows.append(jnp.concatenate(
                    [hist[t][0:Bx],                  # common fwd   -> lanes 0:H
                     hist[tt][Bx:2 * Bx],            # common bwd   -> lanes H:2H
                     hist[t][2 * Bx:3 * Bx],         # specific fwd -> lanes 2H:3H
                     hist[tt][3 * Bx:4 * Bx]],       # specific bwd -> lanes 3H:4H
                    axis=-1))                        # (B, 4H)
            return jnp.stack(rows, axis=1)           # (B, S, 4H)

        X = x_ref[...].astype(jnp.float32)
        for i in range(n_layers):
            X = fused_layer(X, lyr[3 * i][...], lyr[3 * i + 1][...],
                            lyr[3 * i + 2][...])

        # X already IS concat(out1, out2): l1 head + CPS diagonal scaling, fused.
        B_, S_, D4 = X.shape
        logits = (jnp.dot(X.reshape(B_ * S_, D4), w_ref[...],
                          preferred_element_type=jnp.float32) + b_ref[...])
        out_ref[...] = logits.reshape(B_, S_, -1) * scale_ref[...]

    return kernel


# ---------------------------------------------------------------------------
# Host-side weight fusion (common + specific[domain] per layer)
# ---------------------------------------------------------------------------
def _fuse_layer_params(common, specific, layer_idx):
    """Build the fused per-layer weights consumed by the kernel.

    common/specific are per-path tuples (wih (Din,8H), whh (H,8H), bias (1,8H))
    already laid out as [fwd | bwd] along the gate axis.
    """
    wihC, whhC, bC = common
    wihS, whhS, bS = specific
    if layer_idx == 0:
        # Both stacks read the same x -> plain lane concat, one (Din, 16H) weight.
        wih = jnp.concatenate([wihC, wihS], axis=1)
    else:
        # Input is [out1 | out2] (4H lanes) -> block-diagonal (4H, 16H) weight.
        wih = jnp.concatenate(
            [jnp.concatenate([wihC, jnp.zeros_like(wihS)], axis=1),
             jnp.concatenate([jnp.zeros_like(wihC), wihS], axis=1)], axis=0)
    whh = jnp.concatenate([whhC, whhS], axis=1)      # (H, 16H)
    bias = jnp.concatenate([bC, bS], axis=1)         # (1, 16H)
    return wih, whh, bias


def mixture_forward_pallas(x, common_lstm, specific_lstm, head_w, head_b, scale,
                           n_layers):
    B, S, _ = x.shape
    # TODO(synk): S > MAX_UNROLL_SEQ needs the fori_loop + scratch time loop.
    assert S <= MAX_UNROLL_SEQ, "time loop is fully unrolled; guarded to small S"
    h_dim = common_lstm[0][1].shape[0]
    n_labels = head_w.shape[1]

    flat = []
    for i in range(n_layers):
        flat.extend(_fuse_layer_params(common_lstm[i], specific_lstm[i], i))

    return pl.pallas_call(
        make_fused_kernel(n_layers, h_dim),
        out_shape=jax.ShapeDtypeStruct((B, S, n_labels), jnp.float32),
        in_specs=[_VMEM] * (1 + len(flat) + 3),
        out_specs=_VMEM,
    )(x, *flat, head_w, head_b, scale)


# ---------------------------------------------------------------------------
# Module glue (parameters, statistics, forward)
# ---------------------------------------------------------------------------
def init_statistics(statistics_of_each_case_type, max_length=500):
    """Same math as Mixture.init_statistics, reduced to the (diagonal) vectors
    that CPS_layer actually reads (all matrices involved are diagonal)."""
    def diag_vec(d):
        intra = d['intra(dep)'] + d['intra(zero)']
        v = np.full((max_length,), float(intra), dtype=np.float32)
        for i, ct in enumerate(['none', 'exoX', 'exo2', 'exo1']):
            v[i] = float(d[ct])
        return v

    all_vec = diag_vec(statistics_of_each_case_type['All'])
    pos, neg = {}, {}
    for domain, d in statistics_of_each_case_type.items():
        p = diag_vec(d) / all_vec                       # diag(D * All^-1)
        pos[domain] = p.astype(np.float32)
        neg[domain] = (1.0 - p).astype(np.float32)      # diag(I - positive)
    return pos, neg


def init_params(key, v_size, emb_dim, n_layers, n_labels):
    h_dim = (emb_dim + 34) // 2
    keys = iter(jax.random.split(key, 1024))

    def nrm(shape, scale=0.1):
        return scale * jax.random.normal(next(keys), shape, dtype=jnp.float32)

    params = {}
    params['word_embed'] = nrm((v_size, emb_dim))       # v_vec copy in the module
    fes = []
    for s in FEAT_SIZES:
        w = nrm((s, FEAT_EMB_DIM))
        fes.append(w.at[0].set(0.0))                    # feature_embed.weight[0] = 0
    params['feature_embed'] = fes

    def lstm_params(d_in):
        # Per-path combined [fwd | bwd] weights along the gate axis:
        # W_ih^T (d_in, 8H), W_hh^T (H, 8H), (b_ih + b_hh) (1, 8H); gate order i,f,g,o.
        G = 4 * h_dim
        return (nrm((d_in, 2 * G)), nrm((h_dim, 2 * G)), nrm((1, 2 * G)))

    d_ins = [emb_dim + 34] + [2 * h_dim] * (n_layers - 1)
    params['common_lstm'] = [lstm_params(d) for d in d_ins]
    params['specific_lstm'] = {dom: [lstm_params(d) for d in d_ins]
                               for dom in DOMAINS}
    params['l1'] = {dom: (nrm((4 * h_dim, n_labels)), nrm((1, n_labels)))
                    for dom in DOMAINS}
    return params, h_dim


def forward(params, n_layers, x0, x1_list, x2, domains):
    # Embedding lookups + concat (glue: gather is not the hot path)
    word_emb = jnp.take(params['word_embed'], x0, axis=0)
    feats = [jnp.take(params['feature_embed'][i], x1_list[i], axis=0)
             for i in range(len(x1_list))]
    x = jnp.concatenate([word_emb] + feats + [x2.astype(jnp.float32)], axis=2)
    # self.drop_target: identity at inference time.

    # Faithful to the PyTorch module: the WHOLE batch goes through
    # specific_lstm/l1 of domains[0], while the CPS scaling is per-element.
    domain = domains[0]
    S = x0.shape[1]
    scale = jnp.stack(
        [jnp.stack([params['stat_pos'][d][:S], params['stat_neg'][d][:S]], axis=1)
         for d in domains], axis=0).astype(jnp.float32)            # (B, S, 2)

    w, b = params['l1'][domain]
    return mixture_forward_pallas(x, params['common_lstm'],
                                  params['specific_lstm'][domain],
                                  w, b, scale, n_layers)


# ---------------------------------------------------------------------------
if __name__ == "__main__":
    B, S = 2, 8
    emb_dim = 30                 # -> h_dim = 32, per-path LSTM io width 64
    v_size = 50
    n_layers = 2
    n_labels = 2

    key = jax.random.PRNGKey(0)
    kp, k0, *kf = jax.random.split(key, 10)

    params, h_dim = init_params(kp, v_size, emb_dim, n_layers, n_labels)

    # Synthetic statistics_of_each_case_type (deterministic)
    stats = {}
    for j, d in enumerate(['All'] + DOMAINS):
        stats[d] = {'intra(dep)': 100 + 10 * j, 'intra(zero)': 50 + 5 * j,
                    'none': 40 + j, 'exoX': 30 + j, 'exo2': 20 + j, 'exo1': 10 + j}
    pos, neg = init_statistics(stats)
    params['stat_pos'] = {d: jnp.asarray(pos[d]) for d in DOMAINS}
    params['stat_neg'] = {d: jnp.asarray(neg[d]) for d in DOMAINS}

    # Inputs: x = (word_ids, [6 feature_ids], raw_float_features)
    x0 = jax.random.randint(k0, (B, S), 0, v_size)
    x1 = [jax.random.randint(kf[i], (B, S), 0, FEAT_SIZES[i]) for i in range(6)]
    x2 = jax.random.normal(kf[6], (B, S, 4), dtype=jnp.float32)
    domains = ('OC', 'OY')

    out = forward(params, n_layers, x0, x1, x2, domains)
    out = jax.block_until_ready(out)
    assert out.shape == (B, S, n_labels) and out.dtype == jnp.float32
    assert bool(jnp.all(jnp.isfinite(out)))
    print("KERNEL_OK")
</pallas_src>

<mosaic_0001>
module attributes {stable_mosaic.version = 11 : i64} {
  func.func @kernel(%arg0: memref<2x8x64xf32, #tpu.memory_space<vmem>>, %arg1: memref<64x512xf32, #tpu.memory_space<vmem>>, %arg2: memref<32x512xf32, #tpu.memory_space<vmem>>, %arg3: memref<1x512xf32, #tpu.memory_space<vmem>>, %arg4: memref<128x512xf32, #tpu.memory_space<vmem>>, %arg5: memref<32x512xf32, #tpu.memory_space<vmem>>, %arg6: memref<1x512xf32, #tpu.memory_space<vmem>>, %arg7: memref<128x2xf32, #tpu.memory_space<vmem>>, %arg8: memref<1x2xf32, #tpu.memory_space<vmem>>, %arg9: memref<2x8x2xf32, #tpu.memory_space<vmem>>, %arg10: memref<2x8x2xf32, #tpu.memory_space<vmem>>) attributes {dimension_semantics = [], scalar_prefetch = 0 : i64, scratch_operands = 0 : i64, tpu.core_type = #tpu.core_type<tc>} {
    %0 = tpu.iota {dimensions = array<i32: 0>} : vector<8x256xi32>
    %c4_i32 = arith.constant 4 : i32
    %1 = vector.broadcast %c4_i32 : i32 to vector<8x256xi32>
    %2 = arith.cmpi slt, %0, %1 : vector<8x256xi32>
    %3 = tpu.iota {dimensions = array<i32: 0>} : vector<8x128xi32>
    %c2_i32 = arith.constant 2 : i32
    %4 = vector.broadcast %c2_i32 : i32 to vector<8x128xi32>
    %5 = arith.cmpi slt, %3, %4 : vector<8x128xi32>
    %c4_i32_0 = arith.constant 4 : i32
    %6 = vector.broadcast %c4_i32_0 : i32 to vector<8x128xi32>
    %7 = arith.cmpi sge, %3, %6 : vector<8x128xi32>
    %c6_i32 = arith.constant 6 : i32
    %8 = vector.broadcast %c6_i32 : i32 to vector<8x128xi32>
    %9 = arith.cmpi slt, %3, %8 : vector<8x128xi32>
    %10 = arith.andi %7, %9 : vector<8x128xi1>
    %11 = arith.ori %5, %10 : vector<8x128xi1>
    %c0 = arith.constant 0 : index
    %c0_1 = arith.constant 0 : index
    %c0_2 = arith.constant 0 : index
    %12 = vector.load %arg0[%c0, %c0_1, %c0_2] : memref<2x8x64xf32, #tpu.memory_space<vmem>>, vector<2x8x64xf32>
    %c0_3 = arith.constant 0 : index
    %c0_4 = arith.constant 0 : index
    %13 = vector.load %arg1[%c0_3, %c0_4] : memref<64x512xf32, #tpu.memory_space<vmem>>, vector<64x512xf32>
    %c0_5 = arith.constant 0 : index
    %c0_6 = arith.constant 0 : index
    %14 = vector.load %arg2[%c0_5, %c0_6] : memref<32x512xf32, #tpu.memory_space<vmem>>, vector<32x512xf32>
    %c0_7 = arith.constant 0 : index
    %c0_8 = arith.constant 0 : index
    %15 = vector.load %arg3[%c0_7, %c0_8] : memref<1x512xf32, #tpu.memory_space<vmem>>, vector<1x512xf32>
    %16 = vector.shape_cast %12 : vector<2x8x64xf32> to vector<16x64xf32>
    %cst = arith.constant dense<0.000000e+00> : vector<16x512xf32>
    %17 = tpu.matmul %16, %13, %cst {dimension_numbers = #tpu.dot_dimension_numbers<[1], [0], [0], [1], [0, 0, 1, 1], [], []>} : vector<16x64xf32>, vector<64x512xf32>, vector<16x512xf32> -> vector<16x512xf32>
    %18 = vector.broadcast %15 : vector<1x512xf32> to vector<16x512xf32>
    %19 = arith.addf %17, %18 : vector<16x512xf32>
    %20 = vector.shape_cast %19 : vector<16x512xf32> to vector<2x8x512xf32>
    %cst_9 = arith.constant 0.000000e+00 : f32
    %21 = vector.broadcast %cst_9 : f32 to vector<8x32xf32>
    %cst_10 = arith.constant 0.000000e+00 : f32
    %22 = vector.broadcast %cst_10 : f32 to vector<8x32xf32>
    %23 = vector.extract_strided_slice %20 {offsets = [0, 0, 0], sizes = [2, 1, 128], strides = [1, 1, 1]} : vector<2x8x512xf32> to vector<2x1x128xf32>
    %24 = vector.shape_cast %23 : vector<2x1x128xf32> to vector<2x128xf32>
    %25 = vector.extract_strided_slice %20 {offsets = [0, 7, 128], sizes = [2, 1, 128], strides = [1, 1, 1]} : vector<2x8x512xf32> to vector<2x1x128xf32>
    %26 = vector.shape_cast %25 : vector<2x1x128xf32> to vector<2x128xf32>
    %27 = vector.extract_strided_slice %20 {offsets = [0, 0, 256], sizes = [2, 1, 128], strides = [1, 1, 1]} : vector<2x8x512xf32> to vector<2x1x128xf32>
    %28 = vector.shape_cast %27 : vector<2x1x128xf32> to vector<2x128xf32>
    %29 = vector.extract_strided_slice %20 {offsets = [0, 7, 384], sizes = [2, 1, 128], strides = [1, 1, 1]} : vector<2x8x512xf32> to vector<2x1x128xf32>
    %30 = vector.shape_cast %29 : vector<2x1x128xf32> to vector<2x128xf32>
    %31 = tpu.concatenate %24, %26, %28, %30 in 0 : vector<2x128xf32>, vector<2x128xf32>, vector<2x128xf32>, vector<2x128xf32> -> vector<8x128xf32>
    %cst_11 = arith.constant dense<0.000000e+00> : vector<8x512xf32>
    %32 = tpu.matmul %21, %14, %cst_11 {dimension_numbers = #tpu.dot_dimension_numbers<[1], [0], [0], [1], [0, 0, 1, 1], [], []>} : vector<8x32xf32>, vector<32x512xf32>, vector<8x512xf32> -> vector<8x512xf32>
    %33 = vector.extract_strided_slice %32 {offsets = [0, 0], sizes = [8, 256], strides = [1, 1]} : vector<8x512xf32> to vector<8x256xf32>
    %34 = vector.extract_strided_slice %32 {offsets = [0, 256], sizes = [8, 256], strides = [1, 1]} : vector<8x512xf32> to vector<8x256xf32>
    %35 = arith.select %2, %33, %34 : vector<8x256xi1>, vector<8x256xf32>
    %36 = vector.extract_strided_slice %35 {offsets = [0, 0], sizes = [8, 128], strides = [1, 1]} : vector<8x256xf32> to vector<8x128xf32>
    %37 = vector.extract_strided_slice %35 {offsets = [0, 128], sizes = [8, 128], strides = [1, 1]} : vector<8x256xf32> to vector<8x128xf32>
    %38 = arith.select %11, %36, %37 : vector<8x128xi1>, vector<8x128xf32>
    %39 = arith.addf %31, %38 : vector<8x128xf32>
    %40 = arith.negf %39 : vector<8x128xf32>
    %41 = math.exp %40 : vector<8x128xf32>
    %cst_12 = arith.constant 1.000000e+00 : f32
    %42 = vector.broadcast %cst_12 : f32 to vector<8x128xf32>
    %43 = arith.addf %42, %41 : vector<8x128xf32>
    %44 = arith.divf %42, %43 : vector<8x128xf32>
    %45 = vector.extract_strided_slice %44 {offsets = [0, 0], sizes = [8, 32], strides = [1, 1]} : vector<8x128xf32> to vector<8x32xf32>
    %46 = vector.extract_strided_slice %44 {offsets = [0, 32], sizes = [8, 32], strides = [1, 1]} : vector<8x128xf32> to vector<8x32xf32>
    %47 = vector.extract_strided_slice %44 {offsets = [0, 96], sizes = [8, 32], strides = [1, 1]} : vector<8x128xf32> to vector<8x32xf32>
    %48 = vector.extract_strided_slice %39 {offsets = [0, 64], sizes = [8, 32], strides = [1, 1]} : vector<8x128xf32> to vector<8x32xf32>
    %49 = math.tanh %48 : vector<8x32xf32>
    %50 = arith.mulf %46, %22 : vector<8x32xf32>
    %51 = arith.mulf %45, %49 : vector<8x32xf32>
    %52 = arith.addf %50, %51 : vector<8x32xf32>
    %53 = math.tanh %52 : vector<8x32xf32>
    %54 = arith.mulf %47, %53 : vector<8x32xf32>
    %55 = vector.extract_strided_slice %20 {offsets = [0, 1, 0], sizes = [2, 1, 128], strides = [1, 1, 1]} : vector<2x8x512xf32> to vector<2x1x128xf32>
    %56 = vector.shape_cast %55 : vector<2x1x128xf32> to vector<2x128xf32>
    %57 = vector.extract_strided_slice %20 {offsets = [0, 6, 128], sizes = [2, 1, 128], strides = [1, 1, 1]} : vector<2x8x512xf32> to vector<2x1x128xf32>
    %58 = vector.shape_cast %57 : vector<2x1x128xf32> to vector<2x128xf32>
    %59 = vector.extract_strided_slice %20 {offsets = [0, 1, 256], sizes = [2, 1, 128], strides = [1, 1, 1]} : vector<2x8x512xf32> to vector<2x1x128xf32>
    %60 = vector.shape_cast %59 : vector<2x1x128xf32> to vector<2x128xf32>
    %61 = vector.extract_strided_slice %20 {offsets = [0, 6, 384], sizes = [2, 1, 128], strides = [1, 1, 1]} : vector<2x8x512xf32> to vector<2x1x128xf32>
    %62 = vector.shape_cast %61 : vector<2x1x128xf32> to vector<2x128xf32>
    %63 = tpu.concatenate %56, %58, %60, %62 in 0 : vector<2x128xf32>, vector<2x128xf32>, vector<2x128xf32>, vector<2x128xf32> -> vector<8x128xf32>
    %cst_13 = arith.constant dense<0.000000e+00> : vector<8x512xf32>
    %64 = tpu.matmul %54, %14, %cst_13 {dimension_numbers = #tpu.dot_dimension_numbers<[1], [0], [0], [1], [0, 0, 1, 1], [], []>} : vector<8x32xf32>, vector<32x512xf32>, vector<8x512xf32> -> vector<8x512xf32>
    %65 = vector.extract_strided_slice %64 {offsets = [0, 0], sizes = [8, 256], strides = [1, 1]} : vector<8x512xf32> to vector<8x256xf32>
    %66 = vector.extract_strided_slice %64 {offsets = [0, 256], sizes = [8, 256], strides = [1, 1]} : vector<8x512xf32> to vector<8x256xf32>
    %67 = arith.select %2, %65, %66 : vector<8x256xi1>, vector<8x256xf32>
    %68 = vector.extract_strided_slice %67 {offsets = [0, 0], sizes = [8, 128], strides = [1, 1]} : vector<8x256xf32> to vector<8x128xf32>
    %69 = vector.extract_strided_slice %67 {offsets = [0, 128], sizes = [8, 128], strides = [1, 1]} : vector<8x256xf32> to vector<8x128xf32>
    %70 = arith.select %11, %68, %69 : vector<8x128xi1>, vector<8x128xf32>
    %71 = arith.addf %63, %70 : vector<8x128xf32>
    %72 = arith.negf %71 : vector<8x128xf32>
    %73 = math.exp %72 : vector<8x128xf32>
    %cst_14 = arith.constant 1.000000e+00 : f32
    %74 = vector.broadcast %cst_14 : f32 to vector<8x128xf32>
    %75 = arith.addf %74, %73 : vector<8x128xf32>
    %76 = arith.divf %74, %75 : vector<8x128xf32>
    %77 = vector.extract_strided_slice %76 {offsets = [0, 0], sizes = [8, 32], strides = [1, 1]} : vector<8x128xf32> to vector<8x32xf32>
    %78 = vector.extract_strided_slice %76 {offsets = [0, 32], sizes = [8, 32], strides = [1, 1]} : vector<8x128xf32> to vector<8x32xf32>
    %79 = vector.extract_strided_slice %76 {offsets = [0, 96], sizes = [8, 32], strides = [1, 1]} : vector<8x128xf32> to vector<8x32xf32>
    %80 = vector.extract_strided_slice %71 {offsets = [0, 64], sizes = [8, 32], strides = [1, 1]} : vector<8x128xf32> to vector<8x32xf32>
    %81 = math.tanh %80 : vector<8x32xf32>
    %82 = arith.mulf %78, %52 : vector<8x32xf32>
    %83 = arith.mulf %77, %81 : vector<8x32xf32>
    %84 = arith.addf %82, %83 : vector<8x32xf32>
    %85 = math.tanh %84 : vector<8x32xf32>
    %86 = arith.mulf %79, %85 : vector<8x32xf32>
    %87 = vector.extract_strided_slice %20 {offsets = [0, 2, 0], sizes = [2, 1, 128], strides = [1, 1, 1]} : vector<2x8x512xf32> to vector<2x1x128xf32>
    %88 = vector.shape_cast %87 : vector<2x1x128xf32> to vector<2x128xf32>
    %89 = vector.extract_strided_slice %20 {offsets = [0, 5, 128], sizes = [2, 1, 128], strides = [1, 1, 1]} : vector<2x8x512xf32> to vector<2x1x128xf32>
    %90 = vector.shape_cast %89 : vector<2x1x128xf32> to vector<2x128xf32>
    %91 = vector.extract_strided_slice %20 {offsets = [0, 2, 256], sizes = [2, 1, 128], strides = [1, 1, 1]} : vector<2x8x512xf32> to vector<2x1x128xf32>
    %92 = vector.shape_cast %91 : vector<2x1x128xf32> to vector<2x128xf32>
    %93 = vector.extract_strided_slice %20 {offsets = [0, 5, 384], sizes = [2, 1, 128], strides = [1, 1, 1]} : vector<2x8x512xf32> to vector<2x1x128xf32>
    %94 = vector.shape_cast %93 : vector<2x1x128xf32> to vector<2x128xf32>
    %95 = tpu.concatenate %88, %90, %92, %94 in 0 : vector<2x128xf32>, vector<2x128xf32>, vector<2x128xf32>, vector<2x128xf32> -> vector<8x128xf32>
    %cst_15 = arith.constant dense<0.000000e+00> : vector<8x512xf32>
    %96 = tpu.matmul %86, %14, %cst_15 {dimension_numbers = #tpu.dot_dimension_numbers<[1], [0], [0], [1], [0, 0, 1, 1], [], []>} : vector<8x32xf32>, vector<32x512xf32>, vector<8x512xf32> -> vector<8x512xf32>
    %97 = vector.extract_strided_slice %96 {offsets = [0, 0], sizes = [8, 256], strides = [1, 1]} : vector<8x512xf32> to vector<8x256xf32>
    %98 = vector.extract_strided_slice %96 {offsets = [0, 256], sizes = [8, 256], strides = [1, 1]} : vector<8x512xf32> to vector<8x256xf32>
    %99 = arith.select %2, %97, %98 : vector<8x256xi1>, vector<8x256xf32>
    %100 = vector.extract_strided_slice %99 {offsets = [0, 0], sizes = [8, 128], strides = [1, 1]} : vector<8x256xf32> to vector<8x128xf32>
    %101 = vector.extract_strided_slice %99 {offsets = [0, 128], sizes = [8, 128], strides = [1, 1]} : vector<8x256xf32> to vector<8x128xf32>
    %102 = arith.select %11, %100, %101 : vector<8x128xi1>, vector<8x128xf32>
    %103 = arith.addf %95, %102 : vector<8x128xf32>
    %104 = arith.negf %103 : vector<8x128xf32>
    %105 = math.exp %104 : vector<8x128xf32>
    %cst_16 = arith.constant 1.000000e+00 : f32
    %106 = vector.broadcast %cst_16 : f32 to vector<8x128xf32>
    %107 = arith.addf %106, %105 : vector<8x128xf32>
    %108 = arith.divf %106, %107 : vector<8x128xf32>
    %109 = vector.extract_strided_slice %108 {offsets = [0, 0], sizes = [8, 32], strides = [1, 1]} : vector<8x128xf32> to vector<8x32xf32>
    %110 = vector.extract_strided_slice %108 {offsets = [0, 32], sizes = [8, 32], strides = [1, 1]} : vector<8x128xf32> to vector<8x32xf32>
    %111 = vector.extract_strided_slice %108 {offsets = [0, 96], sizes = [8, 32], strides = [1, 1]} : vector<8x128xf32> to vector<8x32xf32>
    %112 = vector.extract_strided_slice %103 {offsets = [0, 64], sizes = [8, 32], strides = [1, 1]} : vector<8x128xf32> to vector<8x32xf32>
    %113 = math.tanh %112 : vector<8x32xf32>
    %114 = arith.mulf %110, %84 : vector<8x32xf32>
    %115 = arith.mulf %109, %113 : vector<8x32xf32>
    %116 = arith.addf %114, %115 : vector<8x32xf32>
    %117 = math.tanh %116 : vector<8x32xf32>
    %118 = arith.mulf %111, %117 : vector<8x32xf32>
    %119 = vector.extract_strided_slice %20 {offsets = [0, 3, 0], sizes = [2, 1, 128], strides = [1, 1, 1]} : vector<2x8x512xf32> to vector<2x1x128xf32>
    %120 = vector.shape_cast %119 : vector<2x1x128xf32> to vector<2x128xf32>
    %121 = vector.extract_strided_slice %20 {offsets = [0, 4, 128], sizes = [2, 1, 128], strides = [1, 1, 1]} : vector<2x8x512xf32> to vector<2x1x128xf32>
    %122 = vector.shape_cast %121 : vector<2x1x128xf32> to vector<2x128xf32>
    %123 = vector.extract_strided_slice %20 {offsets = [0, 3, 256], sizes = [2, 1, 128], strides = [1, 1, 1]} : vector<2x8x512xf32> to vector<2x1x128xf32>
    %124 = vector.shape_cast %123 : vector<2x1x128xf32> to vector<2x128xf32>
    %125 = vector.extract_strided_slice %20 {offsets = [0, 4, 384], sizes = [2, 1, 128], strides = [1, 1, 1]} : vector<2x8x512xf32> to vector<2x1x128xf32>
    %126 = vector.shape_cast %125 : vector<2x1x128xf32> to vector<2x128xf32>
    %127 = tpu.concatenate %120, %122, %124, %126 in 0 : vector<2x128xf32>, vector<2x128xf32>, vector<2x128xf32>, vector<2x128xf32> -> vector<8x128xf32>
    %cst_17 = arith.constant dense<0.000000e+00> : vector<8x512xf32>
    %128 = tpu.matmul %118, %14, %cst_17 {dimension_numbers = #tpu.dot_dimension_numbers<[1], [0], [0], [1], [0, 0, 1, 1], [], []>} : vector<8x32xf32>, vector<32x512xf32>, vector<8x512xf32> -> vector<8x512xf32>
    %129 = vector.extract_strided_slice %128 {offsets = [0, 0], sizes = [8, 256], strides = [1, 1]} : vector<8x512xf32> to vector<8x256xf32>
    %130 = vector.extract_strided_slice %128 {offsets = [0, 256], sizes = [8, 256], strides = [1, 1]} : vector<8x512xf32> to vector<8x256xf32>
    %131 = arith.select %2, %129, %130 : vector<8x256xi1>, vector<8x256xf32>
    %132 = vector.extract_strided_slice %131 {offsets = [0, 0], sizes = [8, 128], strides = [1, 1]} : vector<8x256xf32> to vector<8x128xf32>
    %133 = vector.extract_strided_slice %131 {offsets = [0, 128], sizes = [8, 128], strides = [1, 1]} : vector<8x256xf32> to vector<8x128xf32>
    %134 = arith.select %11, %132, %133 : vector<8x128xi1>, vector<8x128xf32>
    %135 = arith.addf %127, %134 : vector<8x128xf32>
    %136 = arith.negf %135 : vector<8x128xf32>
    %137 = math.exp %136 : vector<8x128xf32>
    %cst_18 = arith.constant 1.000000e+00 : f32
    %138 = vector.broadcast %cst_18 : f32 to vector<8x128xf32>
    %139 = arith.addf %138, %137 : vector<8x128xf32>
    %140 = arith.divf %138, %139 : vector<8x128xf32>
    %141 = vector.extract_strided_slice %140 {offsets = [0, 0], sizes = [8, 32], strides = [1, 1]} : vector<8x128xf32> to vector<8x32xf32>
    %142 = vector.extract_strided_slice %140 {offsets = [0, 32], sizes = [8, 32], strides = [1, 1]} : vector<8x128xf32> to vector<8x32xf32>
    %143 = vector.extract_strided_slice %140 {offsets = [0, 96], sizes = [8, 32], strides = [1, 1]} : vector<8x128xf32> to vector<8x32xf32>
    %144 = vector.extract_strided_slice %135 {offsets = [0, 64], sizes = [8, 32], strides = [1, 1]} : vector<8x128xf32> to vector<8x32xf32>
    %145 = math.tanh %144 : vector<8x32xf32>
    %146 = arith.mulf %142, %116 : vector<8x32xf32>
    %147 = arith.mulf %141, %145 : vector<8x32xf32>
    %148 = arith.addf %146, %147 : vector<8x32xf32>
    %149 = math.tanh %148 : vector<8x32xf32>
    %150 = arith.mulf %143, %149 : vector<8x32xf32>
    %151 = vector.extract_strided_slice %20 {offsets = [0, 4, 0], sizes = [2, 1, 128], strides = [1, 1, 1]} : vector<2x8x512xf32> to vector<2x1x128xf32>
    %152 = vector.shape_cast %151 : vector<2x1x128xf32> to vector<2x128xf32>
    %153 = vector.extract_strided_slice %20 {offsets = [0, 3, 128], sizes = [2, 1, 128], strides = [1, 1, 1]} : vector<2x8x512xf32> to vector<2x1x128xf32>
    %154 = vector.shape_cast %153 : vector<2x1x128xf32> to vector<2x128xf32>
    %155 = vector.extract_strided_slice %20 {offsets = [0, 4, 256], sizes = [2, 1, 128], strides = [1, 1, 1]} : vector<2x8x512xf32> to vector<2x1x128xf32>
    %156 = vector.shape_cast %155 : vector<2x1x128xf32> to vector<2x128xf32>
    %157 = vector.extract_strided_slice %20 {offsets = [0, 3, 384], sizes = [2, 1, 128], strides = [1, 1, 1]} : vector<2x8x512xf32> to vector<2x1x128xf32>
    %158 = vector.shape_cast %157 : vector<2x1x128xf32> to vector<2x128xf32>
    %159 = tpu.concatenate %152, %154, %156, %158 in 0 : vector<2x128xf32>, vector<2x128xf32>, vector<2x128xf32>, vector<2x128xf32> -> vector<8x128xf32>
    %cst_19 = arith.constant dense<0.000000e+00> : vector<8x512xf32>
    %160 = tpu.matmul %150, %14, %cst_19 {dimension_numbers = #tpu.dot_dimension_numbers<[1], [0], [0], [1], [0, 0, 1, 1], [], []>} : vector<8x32xf32>, vector<32x512xf32>, vector<8x512xf32> -> vector<8x512xf32>
    %161 = vector.extract_strided_slice %160 {offsets = [0, 0], sizes = [8, 256], strides = [1, 1]} : vector<8x512xf32> to vector<8x256xf32>
    %162 = vector.extract_strided_slice %160 {offsets = [0, 256], sizes = [8, 256], strides = [1, 1]} : vector<8x512xf32> to vector<8x256xf32>
    %163 = arith.select %2, %161, %162 : vector<8x256xi1>, vector<8x256xf32>
    %164 = vector.extract_strided_slice %163 {offsets = [0, 0], sizes = [8, 128], strides = [1, 1]} : vector<8x256xf32> to vector<8x128xf32>
    %165 = vector.extract_strided_slice %163 {offsets = [0, 128], sizes = [8, 128], strides = [1, 1]} : vector<8x256xf32> to vector<8x128xf32>
    %166 = arith.select %11, %164, %165 : vector<8x128xi1>, vector<8x128xf32>
    %167 = arith.addf %159, %166 : vector<8x128xf32>
    %168 = arith.negf %167 : vector<8x128xf32>
    %169 = math.exp %168 : vector<8x128xf32>
    %cst_20 = arith.constant 1.000000e+00 : f32
    %170 = vector.broadcast %cst_20 : f32 to vector<8x128xf32>
    %171 = arith.addf %170, %169 : vector<8x128xf32>
    %172 = arith.divf %170, %171 : vector<8x128xf32>
    %173 = vector.extract_strided_slice %172 {offsets = [0, 0], sizes = [8, 32], strides = [1, 1]} : vector<8x128xf32> to vector<8x32xf32>
    %174 = vector.extract_strided_slice %172 {offsets = [0, 32], sizes = [8, 32], strides = [1, 1]} : vector<8x128xf32> to vector<8x32xf32>
    %175 = vector.extract_strided_slice %172 {offsets = [0, 96], sizes = [8, 32], strides = [1, 1]} : vector<8x128xf32> to vector<8x32xf32>
    %176 = vector.extract_strided_slice %167 {offsets = [0, 64], sizes = [8, 32], strides = [1, 1]} : vector<8x128xf32> to vector<8x32xf32>
    %177 = math.tanh %176 : vector<8x32xf32>
    %178 = arith.mulf %174, %148 : vector<8x32xf32>
    %179 = arith.mulf %173, %177 : vector<8x32xf32>
    %180 = arith.addf %178, %179 : vector<8x32xf32>
    %181 = math.tanh %180 : vector<8x32xf32>
    %182 = arith.mulf %175, %181 : vector<8x32xf32>
    %183 = vector.extract_strided_slice %20 {offsets = [0, 5, 0], sizes = [2, 1, 128], strides = [1, 1, 1]} : vector<2x8x512xf32> to vector<2x1x128xf32>
    %184 = vector.shape_cast %183 : vector<2x1x128xf32> to vector<2x128xf32>
    %185 = vector.extract_strided_slice %20 {offsets = [0, 2, 128], sizes = [2, 1, 128], strides = [1, 1, 1]} : vector<2x8x512xf32> to vector<2x1x128xf32>
    %186 = vector.shape_cast %185 : vector<2x1x128xf32> to vector<2x128xf32>
    %187 = vector.extract_strided_slice %20 {offsets = [0, 5, 256], sizes = [2, 1, 128], strides = [1, 1, 1]} : vector<2x8x512xf32> to vector<2x1x128xf32>
    %188 = vector.shape_cast %187 : vector<2x1x128xf32> to vector<2x128xf32>
    %189 = vector.extract_strided_slice %20 {offsets = [0, 2, 384], sizes = [2, 1, 128], strides = [1, 1, 1]} : vector<2x8x512xf32> to vector<2x1x128xf32>
    %190 = vector.shape_cast %189 : vector<2x1x128xf32> to vector<2x128xf32>
    %191 = tpu.concatenate %184, %186, %188, %190 in 0 : vector<2x128xf32>, vector<2x128xf32>, vector<2x128xf32>, vector<2x128xf32> -> vector<8x128xf32>
    %cst_21 = arith.constant dense<0.000000e+00> : vector<8x512xf32>
    %192 = tpu.matmul %182, %14, %cst_21 {dimension_numbers = #tpu.dot_dimension_numbers<[1], [0], [0], [1], [0, 0, 1, 1], [], []>} : vector<8x32xf32>, vector<32x512xf32>, vector<8x512xf32> -> vector<8x512xf32>
    %193 = vector.extract_strided_slice %192 {offsets = [0, 0], sizes = [8, 256], strides = [1, 1]} : vector<8x512xf32> to vector<8x256xf32>
    %194 = vector.extract_strided_slice %192 {offsets = [0, 256], sizes = [8, 256], strides = [1, 1]} : vector<8x512xf32> to vector<8x256xf32>
    %195 = arith.select %2, %193, %194 : vector<8x256xi1>, vector<8x256xf32>
    %196 = vector.extract_strided_slice %195 {offsets = [0, 0], sizes = [8, 128], strides = [1, 1]} : vector<8x256xf32> to vector<8x128xf32>
    %197 = vector.extract_strided_slice %195 {offsets = [0, 128], sizes = [8, 128], strides = [1, 1]} : vector<8x256xf32> to vector<8x128xf32>
    %198 = arith.select %11, %196, %197 : vector<8x128xi1>, vector<8x128xf32>
    %199 = arith.addf %191, %198 : vector<8x128xf32>
    %200 = arith.negf %199 : vector<8x128xf32>
    %201 = math.exp %200 : vector<8x128xf32>
    %cst_22 = arith.constant 1.000000e+00 : f32
    %202 = vector.broadcast %cst_22 : f32 to vector<8x128xf32>
    %203 = arith.addf %202, %201 : vector<8x128xf32>
    %204 = arith.divf %202, %203 : vector<8x128xf32>
    %205 = vector.extract_strided_slice %204 {offsets = [0, 0], sizes = [8, 32], strides = [1, 1]} : vector<8x128xf32> to vector<8x32xf32>
    %206 = vector.extract_strided_slice %204 {offsets = [0, 32], sizes = [8, 32], strides = [1, 1]} : vector<8x128xf32> to vector<8x32xf32>
    %207 = vector.extract_strided_slice %204 {offsets = [0, 96], sizes = [8, 32], strides = [1, 1]} : vector<8x128xf32> to vector<8x32xf32>
    %208 = vector.extract_strided_slice %199 {offsets = [0, 64], sizes = [8, 32], strides = [1, 1]} : vector<8x128xf32> to vector<8x32xf32>
    %209 = math.tanh %208 : vector<8x32xf32>
    %210 = arith.mulf %206, %180 : vector<8x32xf32>
    %211 = arith.mulf %205, %209 : vector<8x32xf32>
    %212 = arith.addf %210, %211 : vector<8x32xf32>
    %213 = math.tanh %212 : vector<8x32xf32>
    %214 = arith.mulf %207, %213 : vector<8x32xf32>
    %215 = vector.extract_strided_slice %20 {offsets = [0, 6, 0], sizes = [2, 1, 128], strides = [1, 1, 1]} : vector<2x8x512xf32> to vector<2x1x128xf32>
    %216 = vector.shape_cast %215 : vector<2x1x128xf32> to vector<2x128xf32>
    %217 = vector.extract_strided_slice %20 {offsets = [0, 1, 128], sizes = [2, 1, 128], strides = [1, 1, 1]} : vector<2x8x512xf32> to vector<2x1x128xf32>
    %218 = vector.shape_cast %217 : vector<2x1x128xf32> to vector<2x128xf32>
    %219 = vector.extract_strided_slice %20 {offsets = [0, 6, 256], sizes = [2, 1, 128], strides = [1, 1, 1]} : vector<2x8x512xf32> to vector<2x1x128xf32>
    %220 = vector.shape_cast %219 : vector<2x1x128xf32> to vector<2x128xf32>
    %221 = vector.extract_strided_slice %20 {offsets = [0, 1, 384], sizes = [2, 1, 128], strides = [1, 1, 1]} : vector<2x8x512xf32> to vector<2x1x128xf32>
    %222 = vector.shape_cast %221 : vector<2x1x128xf32> to vector<2x128xf32>
    %223 = tpu.concatenate %216, %218, %220, %222 in 0 : vector<2x128xf32>, vector<2x128xf32>, vector<2x128xf32>, vector<2x128xf32> -> vector<8x128xf32>
    %cst_23 = arith.constant dense<0.000000e+00> : vector<8x512xf32>
    %224 = tpu.matmul %214, %14, %cst_23 {dimension_numbers = #tpu.dot_dimension_numbers<[1], [0], [0], [1], [0, 0, 1, 1], [], []>} : vector<8x32xf32>, vector<32x512xf32>, vector<8x512xf32> -> vector<8x512xf32>
    %225 = vector.extract_strided_slice %224 {offsets = [0, 0], sizes = [8, 256], strides = [1, 1]} : vector<8x512xf32> to vector<8x256xf32>
    %226 = vector.extract_strided_slice %224 {offsets = [0, 256], sizes = [8, 256], strides = [1, 1]} : vector<8x512xf32> to vector<8x256xf32>
    %227 = arith.select %2, %225, %226 : vector<8x256xi1>, vector<8x256xf32>
    %228 = vector.extract_strided_slice %227 {offsets = [0, 0], sizes = [8, 128], strides = [1, 1]} : vector<8x256xf32> to vector<8x128xf32>
    %229 = vector.extract_strided_slice %227 {offsets = [0, 128], sizes = [8, 128], strides = [1, 1]} : vector<8x256xf32> to vector<8x128xf32>
    %230 = arith.select %11, %228, %229 : vector<8x128xi1>, vector<8x128xf32>
    %231 = arith.addf %223, %230 : vector<8x128xf32>
    %232 = arith.negf %231 : vector<8x128xf32>
    %233 = math.exp %232 : vector<8x128xf32>
    %cst_24 = arith.constant 1.000000e+00 : f32
    %234 = vector.broadcast %cst_24 : f32 to vector<8x128xf32>
    %235 = arith.addf %234, %233 : vector<8x128xf32>
    %236 = arith.divf %234, %235 : vector<8x128xf32>
    %237 = vector.extract_strided_slice %236 {offsets = [0, 0], sizes = [8, 32], strides = [1, 1]} : vector<8x128xf32> to vector<8x32xf32>
    %238 = vector.extract_strided_slice %236 {offsets = [0, 32], sizes = [8, 32], strides = [1, 1]} : vector<8x128xf32> to vector<8x32xf32>
    %239 = vector.extract_strided_slice %236 {offsets = [0, 96], sizes = [8, 32], strides = [1, 1]} : vector<8x128xf32> to vector<8x32xf32>
    %240 = vector.extract_strided_slice %231 {offsets = [0, 64], sizes = [8, 32], strides = [1, 1]} : vector<8x128xf32> to vector<8x32xf32>
    %241 = math.tanh %240 : vector<8x32xf32>
    %242 = arith.mulf %238, %212 : vector<8x32xf32>
    %243 = arith.mulf %237, %241 : vector<8x32xf32>
    %244 = arith.addf %242, %243 : vector<8x32xf32>
    %245 = math.tanh %244 : vector<8x32xf32>
    %246 = arith.mulf %239, %245 : vector<8x32xf32>
    %247 = vector.extract_strided_slice %20 {offsets = [0, 7, 0], sizes = [2, 1, 128], strides = [1, 1, 1]} : vector<2x8x512xf32> to vector<2x1x128xf32>
    %248 = vector.shape_cast %247 : vector<2x1x128xf32> to vector<2x128xf32>
    %249 = vector.extract_strided_slice %20 {offsets = [0, 0, 128], sizes = [2, 1, 128], strides = [1, 1, 1]} : vector<2x8x512xf32> to vector<2x1x128xf32>
    %250 = vector.shape_cast %249 : vector<2x1x128xf32> to vector<2x128xf32>
    %251 = vector.extract_strided_slice %20 {offsets = [0, 7, 256], sizes = [2, 1, 128], strides = [1, 1, 1]} : vector<2x8x512xf32> to vector<2x1x128xf32>
    %252 = vector.shape_cast %251 : vector<2x1x128xf32> to vector<2x128xf32>
    %253 = vector.extract_strided_slice %20 {offsets = [0, 0, 384], sizes = [2, 1, 128], strides = [1, 1, 1]} : vector<2x8x512xf32> to vector<2x1x128xf32>
    %254 = vector.shape_cast %253 : vector<2x1x128xf32> to vector<2x128xf32>
    %255 = tpu.concatenate %248, %250, %252, %254 in 0 : vector<2x128xf32>, vector<2x128xf32>, vector<2x128xf32>, vector<2x128xf32> -> vector<8x128xf32>
    %cst_25 = arith.constant dense<0.000000e+00> : vector<8x512xf32>
    %256 = tpu.matmul %246, %14, %cst_25 {dimension_numbers = #tpu.dot_dimension_numbers<[1], [0], [0], [1], [0, 0, 1, 1], [], []>} : vector<8x32xf32>, vector<32x512xf32>, vector<8x512xf32> -> vector<8x512xf32>
    %257 = vector.extract_strided_slice %256 {offsets = [0, 0], sizes = [8, 256], strides = [1, 1]} : vector<8x512xf32> to vector<8x256xf32>
    %258 = vector.extract_strided_slice %256 {offsets = [0, 256], sizes = [8, 256], strides = [1, 1]} : vector<8x512xf32> to vector<8x256xf32>
    %259 = arith.select %2, %257, %258 : vector<8x256xi1>, vector<8x256xf32>
    %260 = vector.extract_strided_slice %259 {offsets = [0, 0], sizes = [8, 128], strides = [1, 1]} : vector<8x256xf32> to vector<8x128xf32>
    %261 = vector.extract_strided_slice %259 {offsets = [0, 128], sizes = [8, 128], strides = [1, 1]} : vector<8x256xf32> to vector<8x128xf32>
    %262 = arith.select %11, %260, %261 : vector<8x128xi1>, vector<8x128xf32>
    %263 = arith.addf %255, %262 : vector<8x128xf32>
    %264 = arith.negf %263 : vector<8x128xf32>
    %265 = math.exp %264 : vector<8x128xf32>
    %cst_26 = arith.constant 1.000000e+00 : f32
    %266 = vector.broadcast %cst_26 : f32 to vector<8x128xf32>
    %267 = arith.addf %266, %265 : vector<8x128xf32>
    %268 = arith.divf %266, %267 : vector<8x128xf32>
    %269 = vector.extract_strided_slice %268 {offsets = [0, 0], sizes = [8, 32], strides = [1, 1]} : vector<8x128xf32> to vector<8x32xf32>
    %270 = vector.extract_strided_slice %268 {offsets = [0, 32], sizes = [8, 32], strides = [1, 1]} : vector<8x128xf32> to vector<8x32xf32>
    %271 = vector.extract_strided_slice %268 {offsets = [0, 96], sizes = [8, 32], strides = [1, 1]} : vector<8x128xf32> to vector<8x32xf32>
    %272 = vector.extract_strided_slice %263 {offsets = [0, 64], sizes = [8, 32], strides = [1, 1]} : vector<8x128xf32> to vector<8x32xf32>
    %273 = math.tanh %272 : vector<8x32xf32>
    %274 = arith.mulf %270, %244 : vector<8x32xf32>
    %275 = arith.mulf %269, %273 : vector<8x32xf32>
    %276 = arith.addf %274, %275 : vector<8x32xf32>
    %277 = math.tanh %276 : vector<8x32xf32>
    %278 = arith.mulf %271, %277 : vector<8x32xf32>
    %279 = vector.extract_strided_slice %54 {offsets = [0, 0], sizes = [2, 32], strides = [1, 1]} : vector<8x32xf32> to vector<2x32xf32>
    %280 = vector.extract_strided_slice %278 {offsets = [2, 0], sizes = [2, 32], strides = [1, 1]} : vector<8x32xf32> to vector<2x32xf32>
    %281 = vector.extract_strided_slice %54 {offsets = [4, 0], sizes = [2, 32], strides = [1, 1]} : vector<8x32xf32> to vector<2x32xf32>
    %282 = vector.extract_strided_slice %278 {offsets = [6, 0], sizes = [2, 32], strides = [1, 1]} : vector<8x32xf32> to vector<2x32xf32>
    %283 = tpu.concatenate %279, %280, %281, %282 in 1 : vector<2x32xf32>, vector<2x32xf32>, vector<2x32xf32>, vector<2x32xf32> -> vector<2x128xf32>
    %284 = vector.extract_strided_slice %86 {offsets = [0, 0], sizes = [2, 32], strides = [1, 1]} : vector<8x32xf32> to vector<2x32xf32>
    %285 = vector.extract_strided_slice %246 {offsets = [2, 0], sizes = [2, 32], strides = [1, 1]} : vector<8x32xf32> to vector<2x32xf32>
    %286 = vector.extract_strided_slice %86 {offsets = [4, 0], sizes = [2, 32], strides = [1, 1]} : vector<8x32xf32> to vector<2x32xf32>
    %287 = vector.extract_strided_slice %246 {offsets = [6, 0], sizes = [2, 32], strides = [1, 1]} : vector<8x32xf32> to vector<2x32xf32>
    %288 = tpu.concatenate %284, %285, %286, %287 in 1 : vector<2x32xf32>, vector<2x32xf32>, vector<2x32xf32>, vector<2x32xf32> -> vector<2x128xf32>
    %289 = vector.extract_strided_slice %118 {offsets = [0, 0], sizes = [2, 32], strides = [1, 1]} : vector<8x32xf32> to vector<2x32xf32>
    %290 = vector.extract_strided_slice %214 {offsets = [2, 0], sizes = [2, 32], strides = [1, 1]} : vector<8x32xf32> to vector<2x32xf32>
    %291 = vector.extract_strided_slice %118 {offsets = [4, 0], sizes = [2, 32], strides = [1, 1]} : vector<8x32xf32> to vector<2x32xf32>
    %292 = vector.extract_strided_slice %214 {offsets = [6, 0], sizes = [2, 32], strides = [1, 1]} : vector<8x32xf32> to vector<2x32xf32>
    %293 = tpu.concatenate %289, %290, %291, %292 in 1 : vector<2x32xf32>, vector<2x32xf32>, vector<2x32xf32>, vector<2x32xf32> -> vector<2x128xf32>
    %294 = vector.extract_strided_slice %150 {offsets = [0, 0], sizes = [2, 32], strides = [1, 1]} : vector<8x32xf32> to vector<2x32xf32>
    %295 = vector.extract_strided_slice %182 {offsets = [2, 0], sizes = [2, 32], strides = [1, 1]} : vector<8x32xf32> to vector<2x32xf32>
    %296 = vector.extract_strided_slice %150 {offsets = [4, 0], sizes = [2, 32], strides = [1, 1]} : vector<8x32xf32> to vector<2x32xf32>
    %297 = vector.extract_strided_slice %182 {offsets = [6, 0], sizes = [2, 32], strides = [1, 1]} : vector<8x32xf32> to vector<2x32xf32>
    %298 = tpu.concatenate %294, %295, %296, %297 in 1 : vector<2x32xf32>, vector<2x32xf32>, vector<2x32xf32>, vector<2x32xf32> -> vector<2x128xf32>
    %299 = vector.extract_strided_slice %182 {offsets = [0, 0], sizes = [2, 32], strides = [1, 1]} : vector<8x32xf32> to vector<2x32xf32>
    %300 = vector.extract_strided_slice %150 {offsets = [2, 0], sizes = [2, 32], strides = [1, 1]} : vector<8x32xf32> to vector<2x32xf32>
    %301 = vector.extract_strided_slice %182 {offsets = [4, 0], sizes = [2, 32], strides = [1, 1]} : vector<8x32xf32> to vector<2x32xf32>
    %302 = vector.extract_strided_slice %150 {offsets = [6, 0], sizes = [2, 32], strides = [1, 1]} : vector<8x32xf32> to vector<2x32xf32>
    %303 = tpu.concatenate %299, %300, %301, %302 in 1 : vector<2x32xf32>, vector<2x32xf32>, vector<2x32xf32>, vector<2x32xf32> -> vector<2x128xf32>
    %304 = vector.extract_strided_slice %214 {offsets = [0, 0], sizes = [2, 32], strides = [1, 1]} : vector<8x32xf32> to vector<2x32xf32>
    %305 = vector.extract_strided_slice %118 {offsets = [2, 0], sizes = [2, 32], strides = [1, 1]} : vector<8x32xf32> to vector<2x32xf32>
    %306 = vector.extract_strided_slice %214 {offsets = [4, 0], sizes = [2, 32], strides = [1, 1]} : vector<8x32xf32> to vector<2x32xf32>
    %307 = vector.extract_strided_slice %118 {offsets = [6, 0], sizes = [2, 32], strides = [1, 1]} : vector<8x32xf32> to vector<2x32xf32>
    %308 = tpu.concatenate %304, %305, %306, %307 in 1 : vector<2x32xf32>, vector<2x32xf32>, vector<2x32xf32>, vector<2x32xf32> -> vector<2x128xf32>
    %309 = vector.extract_strided_slice %246 {offsets = [0, 0], sizes = [2, 32], strides = [1, 1]} : vector<8x32xf32> to vector<2x32xf32>
    %310 = vector.extract_strided_slice %86 {offsets = [2, 0], sizes = [2, 32], strides = [1, 1]} : vector<8x32xf32> to vector<2x32xf32>
    %311 = vector.extract_strided_slice %246 {offsets = [4, 0], sizes = [2, 32], strides = [1, 1]} : vector<8x32xf32> to vector<2x32xf32>
    %312 = vector.extract_strided_slice %86 {offsets = [6, 0], sizes = [2, 32], strides = [1, 1]} : vector<8x32xf32> to vector<2x32xf32>
    %313 = tpu.concatenate %309, %310, %311, %312 in 1 : vector<2x32xf32>, vector<2x32xf32>, vector<2x32xf32>, vector<2x32xf32> -> vector<2x128xf32>
    %314 = vector.extract_strided_slice %278 {offsets = [0, 0], sizes = [2, 32], strides = [1, 1]} : vector<8x32xf32> to vector<2x32xf32>
    %315 = vector.extract_strided_slice %54 {offsets = [2, 0], sizes = [2, 32], strides = [1, 1]} : vector<8x32xf32> to vector<2x32xf32>
    %316 = vector.extract_strided_slice %278 {offsets = [4, 0], sizes = [2, 32], strides = [1, 1]} : vector<8x32xf32> to vector<2x32xf32>
    %317 = vector.extract_strided_slice %54 {offsets = [6, 0], sizes = [2, 32], strides = [1, 1]} : vector<8x32xf32> to vector<2x32xf32>
    %318 = tpu.concatenate %314, %315, %316, %317 in 1 : vector<2x32xf32>, vector<2x32xf32>, vector<2x32xf32>, vector<2x32xf32> -> vector<2x128xf32>
    %319 = vector.shape_cast %283 : vector<2x128xf32> to vector<2x1x128xf32>
    %320 = vector.shape_cast %288 : vector<2x128xf32> to vector<2x1x128xf32>
    %321 = vector.shape_cast %293 : vector<2x128xf32> to vector<2x1x128xf32>
    %322 = vector.shape_cast %298 : vector<2x128xf32> to vector<2x1x128xf32>
    %323 = vector.shape_cast %303 : vector<2x128xf32> to vector<2x1x128xf32>
    %324 = vector.shape_cast %308 : vector<2x128xf32> to vector<2x1x128xf32>
    %325 = vector.shape_cast %313 : vector<2x128xf32> to vector<2x1x128xf32>
    %326 = vector.shape_cast %318 : vector<2x128xf32> to vector<2x1x128xf32>
    %327 = tpu.concatenate %319, %320, %321, %322, %323, %324, %325, %326 in 1 : vector<2x1x128xf32>, vector<2x1x128xf32>, vector<2x1x128xf32>, vector<2x1x128xf32>, vector<2x1x128xf32>, vector<2x1x128xf32>, vector<2x1x128xf32>, vector<2x1x128xf32> -> vector<2x8x128xf32>
    %c0_27 = arith.constant 0 : index
    %c0_28 = arith.constant 0 : index
    %328 = vector.load %arg4[%c0_27, %c0_28] : memref<128x512xf32, #tpu.memory_space<vmem>>, vector<128x512xf32>
    %c0_29 = arith.constant 0 : index
    %c0_30 = arith.constant 0 : index
    %329 = vector.load %arg5[%c0_29, %c0_30] : memref<32x512xf32, #tpu.memory_space<vmem>>, vector<32x512xf32>
    %c0_31 = arith.constant 0 : index
    %c0_32 = arith.constant 0 : index
    %330 = vector.load %arg6[%c0_31, %c0_32] : memref<1x512xf32, #tpu.memory_space<vmem>>, vector<1x512xf32>
    %331 = vector.shape_cast %327 : vector<2x8x128xf32> to vector<16x128xf32>
    %cst_33 = arith.constant dense<0.000000e+00> : vector<16x512xf32>
    %332 = tpu.matmul %331, %328, %cst_33 {dimension_numbers = #tpu.dot_dimension_numbers<[1], [0], [0], [1], [0, 0, 1, 1], [], []>} : vector<16x128xf32>, vector<128x512xf32>, vector<16x512xf32> -> vector<16x512xf32>
    %333 = vector.broadcast %330 : vector<1x512xf32> to vector<16x512xf32>
    %334 = arith.addf %332, %333 : vector<16x512xf32>
    %335 = vector.shape_cast %334 : vector<16x512xf32> to vector<2x8x512xf32>
    %cst_34 = arith.constant 0.000000e+00 : f32
    %336 = vector.broadcast %cst_34 : f32 to vector<8x32xf32>
    %cst_35 = arith.constant 0.000000e+00 : f32
    %337 = vector.broadcast %cst_35 : f32 to vector<8x32xf32>
    %338 = vector.extract_strided_slice %335 {offsets = [0, 0, 0], sizes = [2, 1, 128], strides = [1, 1, 1]} : vector<2x8x512xf32> to vector<2x1x128xf32>
    %339 = vector.shape_cast %338 : vector<2x1x128xf32> to vector<2x128xf32>
    %340 = vector.extract_strided_slice %335 {offsets = [0, 7, 128], sizes = [2, 1, 128], strides = [1, 1, 1]} : vector<2x8x512xf32> to vector<2x1x128xf32>
    %341 = vector.shape_cast %340 : vector<2x1x128xf32> to vector<2x128xf32>
    %342 = vector.extract_strided_slice %335 {offsets = [0, 0, 256], sizes = [2, 1, 128], strides = [1, 1, 1]} : vector<2x8x512xf32> to vector<2x1x128xf32>
    %343 = vector.shape_cast %342 : vector<2x1x128xf32> to vector<2x128xf32>
    %344 = vector.extract_strided_slice %335 {offsets = [0, 7, 384], sizes = [2, 1, 128], strides = [1, 1, 1]} : vector<2x8x512xf32> to vector<2x1x128xf32>
    %345 = vector.shape_cast %344 : vector<2x1x128xf32> to vector<2x128xf32>
    %346 = tpu.concatenate %339, %341, %343, %345 in 0 : vector<2x128xf32>, vector<2x128xf32>, vector<2x128xf32>, vector<2x128xf32> -> vector<8x128xf32>
    %cst_36 = arith.constant dense<0.000000e+00> : vector<8x512xf32>
    %347 = tpu.matmul %336, %329, %cst_36 {dimension_numbers = #tpu.dot_dimension_numbers<[1], [0], [0], [1], [0, 0, 1, 1], [], []>} : vector<8x32xf32>, vector<32x512xf32>, vector<8x512xf32> -> vector<8x512xf32>
    %348 = vector.extract_strided_slice %347 {offsets = [0, 0], sizes = [8, 256], strides = [1, 1]} : vector<8x512xf32> to vector<8x256xf32>
    %349 = vector.extract_strided_slice %347 {offsets = [0, 256], sizes = [8, 256], strides = [1, 1]} : vector<8x512xf32> to vector<8x256xf32>
    %350 = arith.select %2, %348, %349 : vector<8x256xi1>, vector<8x256xf32>
    %351 = vector.extract_strided_slice %350 {offsets = [0, 0], sizes = [8, 128], strides = [1, 1]} : vector<8x256xf32> to vector<8x128xf32>
    %352 = vector.extract_strided_slice %350 {offsets = [0, 128], sizes = [8, 128], strides = [1, 1]} : vector<8x256xf32> to vector<8x128xf32>
    %353 = arith.select %11, %351, %352 : vector<8x128xi1>, vector<8x128xf32>
    %354 = arith.addf %346, %353 : vector<8x128xf32>
    %355 = arith.negf %354 : vector<8x128xf32>
    %356 = math.exp %355 : vector<8x128xf32>
    %cst_37 = arith.constant 1.000000e+00 : f32
    %357 = vector.broadcast %cst_37 : f32 to vector<8x128xf32>
    %358 = arith.addf %357, %356 : vector<8x128xf32>
    %359 = arith.divf %357, %358 : vector<8x128xf32>
    %360 = vector.extract_strided_slice %359 {offsets = [0, 0], sizes = [8, 32], strides = [1, 1]} : vector<8x128xf32> to vector<8x32xf32>
    %361 = vector.extract_strided_slice %359 {offsets = [0, 32], sizes = [8, 32], strides = [1, 1]} : vector<8x128xf32> to vector<8x32xf32>
    %362 = vector.extract_strided_slice %359 {offsets = [0, 96], sizes = [8, 32], strides = [1, 1]} : vector<8x128xf32> to vector<8x32xf32>
    %363 = vector.extract_strided_slice %354 {offsets = [0, 64], sizes = [8, 32], strides = [1, 1]} : vector<8x128xf32> to vector<8x32xf32>
    %364 = math.tanh %363 : vector<8x32xf32>
    %365 = arith.mulf %361, %337 : vector<8x32xf32>
    %366 = arith.mulf %360, %364 : vector<8x32xf32>
    %367 = arith.addf %365, %366 : vector<8x32xf32>
    %368 = math.tanh %367 : vector<8x32xf32>
    %369 = arith.mulf %362, %368 : vector<8x32xf32>
    %370 = vector.extract_strided_slice %335 {offsets = [0, 1, 0], sizes = [2, 1, 128], strides = [1, 1, 1]} : vector<2x8x512xf32> to vector<2x1x128xf32>
    %371 = vector.shape_cast %370 : vector<2x1x128xf32> to vector<2x128xf32>
    %372 = vector.extract_strided_slice %335 {offsets = [0, 6, 128], sizes = [2, 1, 128], strides = [1, 1, 1]} : vector<2x8x512xf32> to vector<2x1x128xf32>
    %373 = vector.shape_cast %372 : vector<2x1x128xf32> to vector<2x128xf32>
    %374 = vector.extract_strided_slice %335 {offsets = [0, 1, 256], sizes = [2, 1, 128], strides = [1, 1, 1]} : vector<2x8x512xf32> to vector<2x1x128xf32>
    %375 = vector.shape_cast %374 : vector<2x1x128xf32> to vector<2x128xf32>
    %376 = vector.extract_strided_slice %335 {offsets = [0, 6, 384], sizes = [2, 1, 128], strides = [1, 1, 1]} : vector<2x8x512xf32> to vector<2x1x128xf32>
    %377 = vector.shape_cast %376 : vector<2x1x128xf32> to vector<2x128xf32>
    %378 = tpu.concatenate %371, %373, %375, %377 in 0 : vector<2x128xf32>, vector<2x128xf32>, vector<2x128xf32>, vector<2x128xf32> -> vector<8x128xf32>
    %cst_38 = arith.constant dense<0.000000e+00> : vector<8x512xf32>
    %379 = tpu.matmul %369, %329, %cst_38 {dimension_numbers = #tpu.dot_dimension_numbers<[1], [0], [0], [1], [0, 0, 1, 1], [], []>} : vector<8x32xf32>, vector<32x512xf32>, vector<8x512xf32> -> vector<8x512xf32>
    %380 = vector.extract_strided_slice %379 {offsets = [0, 0], sizes = [8, 256], strides = [1, 1]} : vector<8x512xf32> to vector<8x256xf32>
    %381 = vector.extract_strided_slice %379 {offsets = [0, 256], sizes = [8, 256], strides = [1, 1]} : vector<8x512xf32> to vector<8x256xf32>
    %382 = arith.select %2, %380, %381 : vector<8x256xi1>, vector<8x256xf32>
    %383 = vector.extract_strided_slice %382 {offsets = [0, 0], sizes = [8, 128], strides = [1, 1]} : vector<8x256xf32> to vector<8x128xf32>
    %384 = vector.extract_strided_slice %382 {offsets = [0, 128], sizes = [8, 128], strides = [1, 1]} : vector<8x256xf32> to vector<8x128xf32>
    %385 = arith.select %11, %383, %384 : vector<8x128xi1>, vector<8x128xf32>
    %386 = arith.addf %378, %385 : vector<8x128xf32>
    %387 = arith.negf %386 : vector<8x128xf32>
    %388 = math.exp %387 : vector<8x128xf32>
    %cst_39 = arith.constant 1.000000e+00 : f32
    %389 = vector.broadcast %cst_39 : f32 to vector<8x128xf32>
    %390 = arith.addf %389, %388 : vector<8x128xf32>
    %391 = arith.divf %389, %390 : vector<8x128xf32>
    %392 = vector.extract_strided_slice %391 {offsets = [0, 0], sizes = [8, 32], strides = [1, 1]} : vector<8x128xf32> to vector<8x32xf32>
    %393 = vector.extract_strided_slice %391 {offsets = [0, 32], sizes = [8, 32], strides = [1, 1]} : vector<8x128xf32> to vector<8x32xf32>
    %394 = vector.extract_strided_slice %391 {offsets = [0, 96], sizes = [8, 32], strides = [1, 1]} : vector<8x128xf32> to vector<8x32xf32>
    %395 = vector.extract_strided_slice %386 {offsets = [0, 64], sizes = [8, 32], strides = [1, 1]} : vector<8x128xf32> to vector<8x32xf32>
    %396 = math.tanh %395 : vector<8x32xf32>
    %397 = arith.mulf %393, %367 : vector<8x32xf32>
    %398 = arith.mulf %392, %396 : vector<8x32xf32>
    %399 = arith.addf %397, %398 : vector<8x32xf32>
    %400 = math.tanh %399 : vector<8x32xf32>
    %401 = arith.mulf %394, %400 : vector<8x32xf32>
    %402 = vector.extract_strided_slice %335 {offsets = [0, 2, 0], sizes = [2, 1, 128], strides = [1, 1, 1]} : vector<2x8x512xf32> to vector<2x1x128xf32>
    %403 = vector.shape_cast %402 : vector<2x1x128xf32> to vector<2x128xf32>
    %404 = vector.extract_strided_slice %335 {offsets = [0, 5, 128], sizes = [2, 1, 128], strides = [1, 1, 1]} : vector<2x8x512xf32> to vector<2x1x128xf32>
    %405 = vector.shape_cast %404 : vector<2x1x128xf32> to vector<2x128xf32>
    %406 = vector.extract_strided_slice %335 {offsets = [0, 2, 256], sizes = [2, 1, 128], strides = [1, 1, 1]} : vector<2x8x512xf32> to vector<2x1x128xf32>
    %407 = vector.shape_cast %406 : vector<2x1x128xf32> to vector<2x128xf32>
    %408 = vector.extract_strided_slice %335 {offsets = [0, 5, 384], sizes = [2, 1, 128], strides = [1, 1, 1]} : vector<2x8x512xf32> to vector<2x1x128xf32>
    %409 = vector.shape_cast %408 : vector<2x1x128xf32> to vector<2x128xf32>
    %410 = tpu.concatenate %403, %405, %407, %409 in 0 : vector<2x128xf32>, vector<2x128xf32>, vector<2x128xf32>, vector<2x128xf32> -> vector<8x128xf32>
    %cst_40 = arith.constant dense<0.000000e+00> : vector<8x512xf32>
    %411 = tpu.matmul %401, %329, %cst_40 {dimension_numbers = #tpu.dot_dimension_numbers<[1], [0], [0], [1], [0, 0, 1, 1], [], []>} : vector<8x32xf32>, vector<32x512xf32>, vector<8x512xf32> -> vector<8x512xf32>
    %412 = vector.extract_strided_slice %411 {offsets = [0, 0], sizes = [8, 256], strides = [1, 1]} : vector<8x512xf32> to vector<8x256xf32>
    %413 = vector.extract_strided_slice %411 {offsets = [0, 256], sizes = [8, 256], strides = [1, 1]} : vector<8x512xf32> to vector<8x256xf32>
    %414 = arith.select %2, %412, %413 : vector<8x256xi1>, vector<8x256xf32>
    %415 = vector.extract_strided_slice %414 {offsets = [0, 0], sizes = [8, 128], strides = [1, 1]} : vector<8x256xf32> to vector<8x128xf32>
    %416 = vector.extract_strided_slice %414 {offsets = [0, 128], sizes = [8, 128], strides = [1, 1]} : vector<8x256xf32> to vector<8x128xf32>
    %417 = arith.select %11, %415, %416 : vector<8x128xi1>, vector<8x128xf32>
    %418 = arith.addf %410, %417 : vector<8x128xf32>
    %419 = arith.negf %418 : vector<8x128xf32>
    %420 = math.exp %419 : vector<8x128xf32>
    %cst_41 = arith.constant 1.000000e+00 : f32
    %421 = vector.broadcast %cst_41 : f32 to vector<8x128xf32>
    %422 = arith.addf %421, %420 : vector<8x128xf32>
    %423 = arith.divf %421, %422 : vector<8x128xf32>
    %424 = vector.extract_strided_slice %423 {offsets = [0, 0], sizes = [8, 32], strides = [1, 1]} : vector<8x128xf32> to vector<8x32xf32>
    %425 = vector.extract_strided_slice %423 {offsets = [0, 32], sizes = [8, 32], strides = [1, 1]} : vector<8x128xf32> to vector<8x32xf32>
    %426 = vector.extract_strided_slice %423 {offsets = [0, 96], sizes = [8, 32], strides = [1, 1]} : vector<8x128xf32> to vector<8x32xf32>
    %427 = vector.extract_strided_slice %418 {offsets = [0, 64], sizes = [8, 32], strides = [1, 1]} : vector<8x128xf32> to vector<8x32xf32>
    %428 = math.tanh %427 : vector<8x32xf32>
    %429 = arith.mulf %425, %399 : vector<8x32xf32>
    %430 = arith.mulf %424, %428 : vector<8x32xf32>
    %431 = arith.addf %429, %430 : vector<8x32xf32>
    %432 = math.tanh %431 : vector<8x32xf32>
    %433 = arith.mulf %426, %432 : vector<8x32xf32>
    %434 = vector.extract_strided_slice %335 {offsets = [0, 3, 0], sizes = [2, 1, 128], strides = [1, 1, 1]} : vector<2x8x512xf32> to vector<2x1x128xf32>
    %435 = vector.shape_cast %434 : vector<2x1x128xf32> to vector<2x128xf32>
    %436 = vector.extract_strided_slice %335 {offsets = [0, 4, 128], sizes = [2, 1, 128], strides = [1, 1, 1]} : vector<2x8x512xf32> to vector<2x1x128xf32>
    %437 = vector.shape_cast %436 : vector<2x1x128xf32> to vector<2x128xf32>
    %438 = vector.extract_strided_slice %335 {offsets = [0, 3, 256], sizes = [2, 1, 128], strides = [1, 1, 1]} : vector<2x8x512xf32> to vector<2x1x128xf32>
    %439 = vector.shape_cast %438 : vector<2x1x128xf32> to vector<2x128xf32>
    %440 = vector.extract_strided_slice %335 {offsets = [0, 4, 384], sizes = [2, 1, 128], strides = [1, 1, 1]} : vector<2x8x512xf32> to vector<2x1x128xf32>
    %441 = vector.shape_cast %440 : vector<2x1x128xf32> to vector<2x128xf32>
    %442 = tpu.concatenate %435, %437, %439, %441 in 0 : vector<2x128xf32>, vector<2x128xf32>, vector<2x128xf32>, vector<2x128xf32> -> vector<8x128xf32>
    %cst_42 = arith.constant dense<0.000000e+00> : vector<8x512xf32>
    %443 = tpu.matmul %433, %329, %cst_42 {dimension_numbers = #tpu.dot_dimension_numbers<[1], [0], [0], [1], [0, 0, 1, 1], [], []>} : vector<8x32xf32>, vector<32x512xf32>, vector<8x512xf32> -> vector<8x512xf32>
    %444 = vector.extract_strided_slice %443 {offsets = [0, 0], sizes = [8, 256], strides = [1, 1]} : vector<8x512xf32> to vector<8x256xf32>
    %445 = vector.extract_strided_slice %443 {offsets = [0, 256], sizes = [8, 256], strides = [1, 1]} : vector<8x512xf32> to vector<8x256xf32>
    %446 = arith.select %2, %444, %445 : vector<8x256xi1>, vector<8x256xf32>
    %447 = vector.extract_strided_slice %446 {offsets = [0, 0], sizes = [8, 128], strides = [1, 1]} : vector<8x256xf32> to vector<8x128xf32>
    %448 = vector.extract_strided_slice %446 {offsets = [0, 128], sizes = [8, 128], strides = [1, 1]} : vector<8x256xf32> to vector<8x128xf32>
    %449 = arith.select %11, %447, %448 : vector<8x128xi1>, vector<8x128xf32>
    %450 = arith.addf %442, %449 : vector<8x128xf32>
    %451 = arith.negf %450 : vector<8x128xf32>
    %452 = math.exp %451 : vector<8x128xf32>
    %cst_43 = arith.constant 1.000000e+00 : f32
    %453 = vector.broadcast %cst_43 : f32 to vector<8x128xf32>
    %454 = arith.addf %453, %452 : vector<8x128xf32>
    %455 = arith.divf %453, %454 : vector<8x128xf32>
    %456 = vector.extract_strided_slice %455 {offsets = [0, 0], sizes = [8, 32], strides = [1, 1]} : vector<8x128xf32> to vector<8x32xf32>
    %457 = vector.extract_strided_slice %455 {offsets = [0, 32], sizes = [8, 32], strides = [1, 1]} : vector<8x128xf32> to vector<8x32xf32>
    %458 = vector.extract_strided_slice %455 {offsets = [0, 96], sizes = [8, 32], strides = [1, 1]} : vector<8x128xf32> to vector<8x32xf32>
    %459 = vector.extract_strided_slice %450 {offsets = [0, 64], sizes = [8, 32], strides = [1, 1]} : vector<8x128xf32> to vector<8x32xf32>
    %460 = math.tanh %459 : vector<8x32xf32>
    %461 = arith.mulf %457, %431 : vector<8x32xf32>
    %462 = arith.mulf %456, %460 : vector<8x32xf32>
    %463 = arith.addf %461, %462 : vector<8x32xf32>
    %464 = math.tanh %463 : vector<8x32xf32>
    %465 = arith.mulf %458, %464 : vector<8x32xf32>
    %466 = vector.extract_strided_slice %335 {offsets = [0, 4, 0], sizes = [2, 1, 128], strides = [1, 1, 1]} : vector<2x8x512xf32> to vector<2x1x128xf32>
    %467 = vector.shape_cast %466 : vector<2x1x128xf32> to vector<2x128xf32>
    %468 = vector.extract_strided_slice %335 {offsets = [0, 3, 128], sizes = [2, 1, 128], strides = [1, 1, 1]} : vector<2x8x512xf32> to vector<2x1x128xf32>
    %469 = vector.shape_cast %468 : vector<2x1x128xf32> to vector<2x128xf32>
    %470 = vector.extract_strided_slice %335 {offsets = [0, 4, 256], sizes = [2, 1, 128], strides = [1, 1, 1]} : vector<2x8x512xf32> to vector<2x1x128xf32>
    %471 = vector.shape_cast %470 : vector<2x1x128xf32> to vector<2x128xf32>
    %472 = vector.extract_strided_slice %335 {offsets = [0, 3, 384], sizes = [2, 1, 128], strides = [1, 1, 1]} : vector<2x8x512xf32> to vector<2x1x128xf32>
    %473 = vector.shape_cast %472 : vector<2x1x128xf32> to vector<2x128xf32>
    %474 = tpu.concatenate %467, %469, %471, %473 in 0 : vector<2x128xf32>, vector<2x128xf32>, vector<2x128xf32>, vector<2x128xf32> -> vector<8x128xf32>
    %cst_44 = arith.constant dense<0.000000e+00> : vector<8x512xf32>
    %475 = tpu.matmul %465, %329, %cst_44 {dimension_numbers = #tpu.dot_dimension_numbers<[1], [0], [0], [1], [0, 0, 1, 1], [], []>} : vector<8x32xf32>, vector<32x512xf32>, vector<8x512xf32> -> vector<8x512xf32>
    %476 = vector.extract_strided_slice %475 {offsets = [0, 0], sizes = [8, 256], strides = [1, 1]} : vector<8x512xf32> to vector<8x256xf32>
    %477 = vector.extract_strided_slice %475 {offsets = [0, 256], sizes = [8, 256], strides = [1, 1]} : vector<8x512xf32> to vector<8x256xf32>
    %478 = arith.select %2, %476, %477 : vector<8x256xi1>, vector<8x256xf32>
    %479 = vector.extract_strided_slice %478 {offsets = [0, 0], sizes = [8, 128], strides = [1, 1]} : vector<8x256xf32> to vector<8x128xf32>
    %480 = vector.extract_strided_slice %478 {offsets = [0, 128], sizes = [8, 128], strides = [1, 1]} : vector<8x256xf32> to vector<8x128xf32>
    %481 = arith.select %11, %479, %480 : vector<8x128xi1>, vector<8x128xf32>
    %482 = arith.addf %474, %481 : vector<8x128xf32>
    %483 = arith.negf %482 : vector<8x128xf32>
    %484 = math.exp %483 : vector<8x128xf32>
    %cst_45 = arith.constant 1.000000e+00 : f32
    %485 = vector.broadcast %cst_45 : f32 to vector<8x128xf32>
    %486 = arith.addf %485, %484 : vector<8x128xf32>
    %487 = arith.divf %485, %486 : vector<8x128xf32>
    %488 = vector.extract_strided_slice %487 {offsets = [0, 0], sizes = [8, 32], strides = [1, 1]} : vector<8x128xf32> to vector<8x32xf32>
    %489 = vector.extract_strided_slice %487 {offsets = [0, 32], sizes = [8, 32], strides = [1, 1]} : vector<8x128xf32> to vector<8x32xf32>
    %490 = vector.extract_strided_slice %487 {offsets = [0, 96], sizes = [8, 32], strides = [1, 1]} : vector<8x128xf32> to vector<8x32xf32>
    %491 = vector.extract_strided_slice %482 {offsets = [0, 64], sizes = [8, 32], strides = [1, 1]} : vector<8x128xf32> to vector<8x32xf32>
    %492 = math.tanh %491 : vector<8x32xf32>
    %493 = arith.mulf %489, %463 : vector<8x32xf32>
    %494 = arith.mulf %488, %492 : vector<8x32xf32>
    %495 = arith.addf %493, %494 : vector<8x32xf32>
    %496 = math.tanh %495 : vector<8x32xf32>
    %497 = arith.mulf %490, %496 : vector<8x32xf32>
    %498 = vector.extract_strided_slice %335 {offsets = [0, 5, 0], sizes = [2, 1, 128], strides = [1, 1, 1]} : vector<2x8x512xf32> to vector<2x1x128xf32>
    %499 = vector.shape_cast %498 : vector<2x1x128xf32> to vector<2x128xf32>
    %500 = vector.extract_strided_slice %335 {offsets = [0, 2, 128], sizes = [2, 1, 128], strides = [1, 1, 1]} : vector<2x8x512xf32> to vector<2x1x128xf32>
    %501 = vector.shape_cast %500 : vector<2x1x128xf32> to vector<2x128xf32>
    %502 = vector.extract_strided_slice %335 {offsets = [0, 5, 256], sizes = [2, 1, 128], strides = [1, 1, 1]} : vector<2x8x512xf32> to vector<2x1x128xf32>
    %503 = vector.shape_cast %502 : vector<2x1x128xf32> to vector<2x128xf32>
    %504 = vector.extract_strided_slice %335 {offsets = [0, 2, 384], sizes = [2, 1, 128], strides = [1, 1, 1]} : vector<2x8x512xf32> to vector<2x1x128xf32>
    %505 = vector.shape_cast %504 : vector<2x1x128xf32> to vector<2x128xf32>
    %506 = tpu.concatenate %499, %501, %503, %505 in 0 : vector<2x128xf32>, vector<2x128xf32>, vector<2x128xf32>, vector<2x128xf32> -> vector<8x128xf32>
    %cst_46 = arith.constant dense<0.000000e+00> : vector<8x512xf32>
    %507 = tpu.matmul %497, %329, %cst_46 {dimension_numbers = #tpu.dot_dimension_numbers<[1], [0], [0], [1], [0, 0, 1, 1], [], []>} : vector<8x32xf32>, vector<32x512xf32>, vector<8x512xf32> -> vector<8x512xf32>
    %508 = vector.extract_strided_slice %507 {offsets = [0, 0], sizes = [8, 256], strides = [1, 1]} : vector<8x512xf32> to vector<8x256xf32>
    %509 = vector.extract_strided_slice %507 {offsets = [0, 256], sizes = [8, 256], strides = [1, 1]} : vector<8x512xf32> to vector<8x256xf32>
    %510 = arith.select %2, %508, %509 : vector<8x256xi1>, vector<8x256xf32>
    %511 = vector.extract_strided_slice %510 {offsets = [0, 0], sizes = [8, 128], strides = [1, 1]} : vector<8x256xf32> to vector<8x128xf32>
    %512 = vector.extract_strided_slice %510 {offsets = [0, 128], sizes = [8, 128], strides = [1, 1]} : vector<8x256xf32> to vector<8x128xf32>
    %513 = arith.select %11, %511, %512 : vector<8x128xi1>, vector<8x128xf32>
    %514 = arith.addf %506, %513 : vector<8x128xf32>
    %515 = arith.negf %514 : vector<8x128xf32>
    %516 = math.exp %515 : vector<8x128xf32>
    %cst_47 = arith.constant 1.000000e+00 : f32
    %517 = vector.broadcast %cst_47 : f32 to vector<8x128xf32>
    %518 = arith.addf %517, %516 : vector<8x128xf32>
    %519 = arith.divf %517, %518 : vector<8x128xf32>
    %520 = vector.extract_strided_slice %519 {offsets = [0, 0], sizes = [8, 32], strides = [1, 1]} : vector<8x128xf32> to vector<8x32xf32>
    %521 = vector.extract_strided_slice %519 {offsets = [0, 32], sizes = [8, 32], strides = [1, 1]} : vector<8x128xf32> to vector<8x32xf32>
    %522 = vector.extract_strided_slice %519 {offsets = [0, 96], sizes = [8, 32], strides = [1, 1]} : vector<8x128xf32> to vector<8x32xf32>
    %523 = vector.extract_strided_slice %514 {offsets = [0, 64], sizes = [8, 32], strides = [1, 1]} : vector<8x128xf32> to vector<8x32xf32>
    %524 = math.tanh %523 : vector<8x32xf32>
    %525 = arith.mulf %521, %495 : vector<8x32xf32>
    %526 = arith.mulf %520, %524 : vector<8x32xf32>
    %527 = arith.addf %525, %526 : vector<8x32xf32>
    %528 = math.tanh %527 : vector<8x32xf32>
    %529 = arith.mulf %522, %528 : vector<8x32xf32>
    %530 = vector.extract_strided_slice %335 {offsets = [0, 6, 0], sizes = [2, 1, 128], strides = [1, 1, 1]} : vector<2x8x512xf32> to vector<2x1x128xf32>
    %531 = vector.shape_cast %530 : vector<2x1x128xf32> to vector<2x128xf32>
    %532 = vector.extract_strided_slice %335 {offsets = [0, 1, 128], sizes = [2, 1, 128], strides = [1, 1, 1]} : vector<2x8x512xf32> to vector<2x1x128xf32>
    %533 = vector.shape_cast %532 : vector<2x1x128xf32> to vector<2x128xf32>
    %534 = vector.extract_strided_slice %335 {offsets = [0, 6, 256], sizes = [2, 1, 128], strides = [1, 1, 1]} : vector<2x8x512xf32> to vector<2x1x128xf32>
    %535 = vector.shape_cast %534 : vector<2x1x128xf32> to vector<2x128xf32>
    %536 = vector.extract_strided_slice %335 {offsets = [0, 1, 384], sizes = [2, 1, 128], strides = [1, 1, 1]} : vector<2x8x512xf32> to vector<2x1x128xf32>
    %537 = vector.shape_cast %536 : vector<2x1x128xf32> to vector<2x128xf32>
    %538 = tpu.concatenate %531, %533, %535, %537 in 0 : vector<2x128xf32>, vector<2x128xf32>, vector<2x128xf32>, vector<2x128xf32> -> vector<8x128xf32>
    %cst_48 = arith.constant dense<0.000000e+00> : vector<8x512xf32>
    %539 = tpu.matmul %529, %329, %cst_48 {dimension_numbers = #tpu.dot_dimension_numbers<[1], [0], [0], [1], [0, 0, 1, 1], [], []>} : vector<8x32xf32>, vector<32x512xf32>, vector<8x512xf32> -> vector<8x512xf32>
    %540 = vector.extract_strided_slice %539 {offsets = [0, 0], sizes = [8, 256], strides = [1, 1]} : vector<8x512xf32> to vector<8x256xf32>
    %541 = vector.extract_strided_slice %539 {offsets = [0, 256], sizes = [8, 256], strides = [1, 1]} : vector<8x512xf32> to vector<8x256xf32>
    %542 = arith.select %2, %540, %541 : vector<8x256xi1>, vector<8x256xf32>
    %543 = vector.extract_strided_slice %542 {offsets = [0, 0], sizes = [8, 128], strides = [1, 1]} : vector<8x256xf32> to vector<8x128xf32>
    %544 = vector.extract_strided_slice %542 {offsets = [0, 128], sizes = [8, 128], strides = [1, 1]} : vector<8x256xf32> to vector<8x128xf32>
    %545 = arith.select %11, %543, %544 : vector<8x128xi1>, vector<8x128xf32>
    %546 = arith.addf %538, %545 : vector<8x128xf32>
    %547 = arith.negf %546 : vector<8x128xf32>
    %548 = math.exp %547 : vector<8x128xf32>
    %cst_49 = arith.constant 1.000000e+00 : f32
    %549 = vector.broadcast %cst_49 : f32 to vector<8x128xf32>
    %550 = arith.addf %549, %548 : vector<8x128xf32>
    %551 = arith.divf %549, %550 : vector<8x128xf32>
    %552 = vector.extract_strided_slice %551 {offsets = [0, 0], sizes = [8, 32], strides = [1, 1]} : vector<8x128xf32> to vector<8x32xf32>
    %553 = vector.extract_strided_slice %551 {offsets = [0, 32], sizes = [8, 32], strides = [1, 1]} : vector<8x128xf32> to vector<8x32xf32>
    %554 = vector.extract_strided_slice %551 {offsets = [0, 96], sizes = [8, 32], strides = [1, 1]} : vector<8x128xf32> to vector<8x32xf32>
    %555 = vector.extract_strided_slice %546 {offsets = [0, 64], sizes = [8, 32], strides = [1, 1]} : vector<8x128xf32> to vector<8x32xf32>
    %556 = math.tanh %555 : vector<8x32xf32>
    %557 = arith.mulf %553, %527 : vector<8x32xf32>
    %558 = arith.mulf %552, %556 : vector<8x32xf32>
    %559 = arith.addf %557, %558 : vector<8x32xf32>
    %560 = math.tanh %559 : vector<8x32xf32>
    %561 = arith.mulf %554, %560 : vector<8x32xf32>
    %562 = vector.extract_strided_slice %335 {offsets = [0, 7, 0], sizes = [2, 1, 128], strides = [1, 1, 1]} : vector<2x8x512xf32> to vector<2x1x128xf32>
    %563 = vector.shape_cast %562 : vector<2x1x128xf32> to vector<2x128xf32>
    %564 = vector.extract_strided_slice %335 {offsets = [0, 0, 128], sizes = [2, 1, 128], strides = [1, 1, 1]} : vector<2x8x512xf32> to vector<2x1x128xf32>
    %565 = vector.shape_cast %564 : vector<2x1x128xf32> to vector<2x128xf32>
    %566 = vector.extract_strided_slice %335 {offsets = [0, 7, 256], sizes = [2, 1, 128], strides = [1, 1, 1]} : vector<2x8x512xf32> to vector<2x1x128xf32>
    %567 = vector.shape_cast %566 : vector<2x1x128xf32> to vector<2x128xf32>
    %568 = vector.extract_strided_slice %335 {offsets = [0, 0, 384], sizes = [2, 1, 128], strides = [1, 1, 1]} : vector<2x8x512xf32> to vector<2x1x128xf32>
    %569 = vector.shape_cast %568 : vector<2x1x128xf32> to vector<2x128xf32>
    %570 = tpu.concatenate %563, %565, %567, %569 in 0 : vector<2x128xf32>, vector<2x128xf32>, vector<2x128xf32>, vector<2x128xf32> -> vector<8x128xf32>
    %cst_50 = arith.constant dense<0.000000e+00> : vector<8x512xf32>
    %571 = tpu.matmul %561, %329, %cst_50 {dimension_numbers = #tpu.dot_dimension_numbers<[1], [0], [0], [1], [0, 0, 1, 1], [], []>} : vector<8x32xf32>, vector<32x512xf32>, vector<8x512xf32> -> vector<8x512xf32>
    %572 = vector.extract_strided_slice %571 {offsets = [0, 0], sizes = [8, 256], strides = [1, 1]} : vector<8x512xf32> to vector<8x256xf32>
    %573 = vector.extract_strided_slice %571 {offsets = [0, 256], sizes = [8, 256], strides = [1, 1]} : vector<8x512xf32> to vector<8x256xf32>
    %574 = arith.select %2, %572, %573 : vector<8x256xi1>, vector<8x256xf32>
    %575 = vector.extract_strided_slice %574 {offsets = [0, 0], sizes = [8, 128], strides = [1, 1]} : vector<8x256xf32> to vector<8x128xf32>
    %576 = vector.extract_strided_slice %574 {offsets = [0, 128], sizes = [8, 128], strides = [1, 1]} : vector<8x256xf32> to vector<8x128xf32>
    %577 = arith.select %11, %575, %576 : vector<8x128xi1>, vector<8x128xf32>
    %578 = arith.addf %570, %577 : vector<8x128xf32>
    %579 = arith.negf %578 : vector<8x128xf32>
    %580 = math.exp %579 : vector<8x128xf32>
    %cst_51 = arith.constant 1.000000e+00 : f32
    %581 = vector.broadcast %cst_51 : f32 to vector<8x128xf32>
    %582 = arith.addf %581, %580 : vector<8x128xf32>
    %583 = arith.divf %581, %582 : vector<8x128xf32>
    %584 = vector.extract_strided_slice %583 {offsets = [0, 0], sizes = [8, 32], strides = [1, 1]} : vector<8x128xf32> to vector<8x32xf32>
    %585 = vector.extract_strided_slice %583 {offsets = [0, 32], sizes = [8, 32], strides = [1, 1]} : vector<8x128xf32> to vector<8x32xf32>
    %586 = vector.extract_strided_slice %583 {offsets = [0, 96], sizes = [8, 32], strides = [1, 1]} : vector<8x128xf32> to vector<8x32xf32>
    %587 = vector.extract_strided_slice %578 {offsets = [0, 64], sizes = [8, 32], strides = [1, 1]} : vector<8x128xf32> to vector<8x32xf32>
    %588 = math.tanh %587 : vector<8x32xf32>
    %589 = arith.mulf %585, %559 : vector<8x32xf32>
    %590 = arith.mulf %584, %588 : vector<8x32xf32>
    %591 = arith.addf %589, %590 : vector<8x32xf32>
    %592 = math.tanh %591 : vector<8x32xf32>
    %593 = arith.mulf %586, %592 : vector<8x32xf32>
    %594 = vector.extract_strided_slice %369 {offsets = [0, 0], sizes = [2, 32], strides = [1, 1]} : vector<8x32xf32> to vector<2x32xf32>
    %595 = vector.extract_strided_slice %593 {offsets = [2, 0], sizes = [2, 32], strides = [1, 1]} : vector<8x32xf32> to vector<2x32xf32>
    %596 = vector.extract_strided_slice %369 {offsets = [4, 0], sizes = [2, 32], strides = [1, 1]} : vector<8x32xf32> to vector<2x32xf32>
    %597 = vector.extract_strided_slice %593 {offsets = [6, 0], sizes = [2, 32], strides = [1, 1]} : vector<8x32xf32> to vector<2x32xf32>
    %598 = tpu.concatenate %594, %595, %596, %597 in 1 : vector<2x32xf32>, vector<2x32xf32>, vector<2x32xf32>, vector<2x32xf32> -> vector<2x128xf32>
    %599 = vector.extract_strided_slice %401 {offsets = [0, 0], sizes = [2, 32], strides = [1, 1]} : vector<8x32xf32> to vector<2x32xf32>
    %600 = vector.extract_strided_slice %561 {offsets = [2, 0], sizes = [2, 32], strides = [1, 1]} : vector<8x32xf32> to vector<2x32xf32>
    %601 = vector.extract_strided_slice %401 {offsets = [4, 0], sizes = [2, 32], strides = [1, 1]} : vector<8x32xf32> to vector<2x32xf32>
    %602 = vector.extract_strided_slice %561 {offsets = [6, 0], sizes = [2, 32], strides = [1, 1]} : vector<8x32xf32> to vector<2x32xf32>
    %603 = tpu.concatenate %599, %600, %601, %602 in 1 : vector<2x32xf32>, vector<2x32xf32>, vector<2x32xf32>, vector<2x32xf32> -> vector<2x128xf32>
    %604 = vector.extract_strided_slice %433 {offsets = [0, 0], sizes = [2, 32], strides = [1, 1]} : vector<8x32xf32> to vector<2x32xf32>
    %605 = vector.extract_strided_slice %529 {offsets = [2, 0], sizes = [2, 32], strides = [1, 1]} : vector<8x32xf32> to vector<2x32xf32>
    %606 = vector.extract_strided_slice %433 {offsets = [4, 0], sizes = [2, 32], strides = [1, 1]} : vector<8x32xf32> to vector<2x32xf32>
    %607 = vector.extract_strided_slice %529 {offsets = [6, 0], sizes = [2, 32], strides = [1, 1]} : vector<8x32xf32> to vector<2x32xf32>
    %608 = tpu.concatenate %604, %605, %606, %607 in 1 : vector<2x32xf32>, vector<2x32xf32>, vector<2x32xf32>, vector<2x32xf32> -> vector<2x128xf32>
    %609 = vector.extract_strided_slice %465 {offsets = [0, 0], sizes = [2, 32], strides = [1, 1]} : vector<8x32xf32> to vector<2x32xf32>
    %610 = vector.extract_strided_slice %497 {offsets = [2, 0], sizes = [2, 32], strides = [1, 1]} : vector<8x32xf32> to vector<2x32xf32>
    %611 = vector.extract_strided_slice %465 {offsets = [4, 0], sizes = [2, 32], strides = [1, 1]} : vector<8x32xf32> to vector<2x32xf32>
    %612 = vector.extract_strided_slice %497 {offsets = [6, 0], sizes = [2, 32], strides = [1, 1]} : vector<8x32xf32> to vector<2x32xf32>
    %613 = tpu.concatenate %609, %610, %611, %612 in 1 : vector<2x32xf32>, vector<2x32xf32>, vector<2x32xf32>, vector<2x32xf32> -> vector<2x128xf32>
    %614 = vector.extract_strided_slice %497 {offsets = [0, 0], sizes = [2, 32], strides = [1, 1]} : vector<8x32xf32> to vector<2x32xf32>
    %615 = vector.extract_strided_slice %465 {offsets = [2, 0], sizes = [2, 32], strides = [1, 1]} : vector<8x32xf32> to vector<2x32xf32>
    %616 = vector.extract_strided_slice %497 {offsets = [4, 0], sizes = [2, 32], strides = [1, 1]} : vector<8x32xf32> to vector<2x32xf32>
    %617 = vector.extract_strided_slice %465 {offsets = [6, 0], sizes = [2, 32], strides = [1, 1]} : vector<8x32xf32> to vector<2x32xf32>
    %618 = tpu.concatenate %614, %615, %616, %617 in 1 : vector<2x32xf32>, vector<2x32xf32>, vector<2x32xf32>, vector<2x32xf32> -> vector<2x128xf32>
    %619 = vector.extract_strided_slice %529 {offsets = [0, 0], sizes = [2, 32], strides = [1, 1]} : vector<8x32xf32> to vector<2x32xf32>
    %620 = vector.extract_strided_slice %433 {offsets = [2, 0], sizes = [2, 32], strides = [1, 1]} : vector<8x32xf32> to vector<2x32xf32>
    %621 = vector.extract_strided_slice %529 {offsets = [4, 0], sizes = [2, 32], strides = [1, 1]} : vector<8x32xf32> to vector<2x32xf32>
    %622 = vector.extract_strided_slice %433 {offsets = [6, 0], sizes = [2, 32], strides = [1, 1]} : vector<8x32xf32> to vector<2x32xf32>
    %623 = tpu.concatenate %619, %620, %621, %622 in 1 : vector<2x32xf32>, vector<2x32xf32>, vector<2x32xf32>, vector<2x32xf32> -> vector<2x128xf32>
    %624 = vector.extract_strided_slice %561 {offsets = [0, 0], sizes = [2, 32], strides = [1, 1]} : vector<8x32xf32> to vector<2x32xf32>
    %625 = vector.extract_strided_slice %401 {offsets = [2, 0], sizes = [2, 32], strides = [1, 1]} : vector<8x32xf32> to vector<2x32xf32>
    %626 = vector.extract_strided_slice %561 {offsets = [4, 0], sizes = [2, 32], strides = [1, 1]} : vector<8x32xf32> to vector<2x32xf32>
    %627 = vector.extract_strided_slice %401 {offsets = [6, 0], sizes = [2, 32], strides = [1, 1]} : vector<8x32xf32> to vector<2x32xf32>
    %628 = tpu.concatenate %624, %625, %626, %627 in 1 : vector<2x32xf32>, vector<2x32xf32>, vector<2x32xf32>, vector<2x32xf32> -> vector<2x128xf32>
    %629 = vector.extract_strided_slice %593 {offsets = [0, 0], sizes = [2, 32], strides = [1, 1]} : vector<8x32xf32> to vector<2x32xf32>
    %630 = vector.extract_strided_slice %369 {offsets = [2, 0], sizes = [2, 32], strides = [1, 1]} : vector<8x32xf32> to vector<2x32xf32>
    %631 = vector.extract_strided_slice %593 {offsets = [4, 0], sizes = [2, 32], strides = [1, 1]} : vector<8x32xf32> to vector<2x32xf32>
    %632 = vector.extract_strided_slice %369 {offsets = [6, 0], sizes = [2, 32], strides = [1, 1]} : vector<8x32xf32> to vector<2x32xf32>
    %633 = tpu.concatenate %629, %630, %631, %632 in 1 : vector<2x32xf32>, vector<2x32xf32>, vector<2x32xf32>, vector<2x32xf32> -> vector<2x128xf32>
    %634 = vector.shape_cast %598 : vector<2x128xf32> to vector<2x1x128xf32>
    %635 = vector.shape_cast %603 : vector<2x128xf32> to vector<2x1x128xf32>
    %636 = vector.shape_cast %608 : vector<2x128xf32> to vector<2x1x128xf32>
    %637 = vector.shape_cast %613 : vector<2x128xf32> to vector<2x1x128xf32>
    %638 = vector.shape_cast %618 : vector<2x128xf32> to vector<2x1x128xf32>
    %639 = vector.shape_cast %623 : vector<2x128xf32> to vector<2x1x128xf32>
    %640 = vector.shape_cast %628 : vector<2x128xf32> to vector<2x1x128xf32>
    %641 = vector.shape_cast %633 : vector<2x128xf32> to vector<2x1x128xf32>
    %642 = tpu.concatenate %634, %635, %636, %637, %638, %639, %640, %641 in 1 : vector<2x1x128xf32>, vector<2x1x128xf32>, vector<2x1x128xf32>, vector<2x1x128xf32>, vector<2x1x128xf32>, vector<2x1x128xf32>, vector<2x1x128xf32>, vector<2x1x128xf32> -> vector<2x8x128xf32>
    %643 = vector.shape_cast %642 : vector<2x8x128xf32> to vector<16x128xf32>
    %c0_52 = arith.constant 0 : index
    %c0_53 = arith.constant 0 : index
    %644 = vector.load %arg7[%c0_52, %c0_53] : memref<128x2xf32, #tpu.memory_space<vmem>>, vector<128x2xf32>
    %cst_54 = arith.constant dense<0.000000e+00> : vector<16x2xf32>
    %645 = tpu.matmul %643, %644, %cst_54 {dimension_numbers = #tpu.dot_dimension_numbers<[1], [0], [0], [1], [0, 0, 1, 1], [], []>} : vector<16x128xf32>, vector<128x2xf32>, vector<16x2xf32> -> vector<16x2xf32>
    %c0_55 = arith.constant 0 : index
    %c0_56 = arith.constant 0 : index
    %646 = vector.load %arg8[%c0_55, %c0_56] : memref<1x2xf32, #tpu.memory_space<vmem>>, vector<1x2xf32>
    %647 = vector.broadcast %646 : vector<1x2xf32> to vector<16x2xf32>
    %648 = arith.addf %645, %647 : vector<16x2xf32>
    %649 = vector.shape_cast %648 : vector<16x2xf32> to vector<2x8x2xf32>
    %c0_57 = arith.constant 0 : index
    %c0_58 = arith.constant 0 : index
    %c0_59 = arith.constant 0 : index
    %650 = vector.load %arg9[%c0_57, %c0_58, %c0_59] : memref<2x8x2xf32, #tpu.memory_space<vmem>>, vector<2x8x2xf32>
    %651 = arith.mulf %649, %650 : vector<2x8x2xf32>
    %c0_60 = arith.constant 0 : index
    %c0_61 = arith.constant 0 : index
    %c0_62 = arith.constant 0 : index
    %652 = vector.load %arg10[%c0_60, %c0_61, %c0_62] : memref<2x8x2xf32, #tpu.memory_space<vmem>>, vector<2x8x2xf32>
    tpu.vector_store %arg10[%c0_60, %c0_61, %c0_62], %651 {strides = array<i32>} : memref<2x8x2xf32, #tpu.memory_space<vmem>>, vector<2x8x2xf32>,
    return
  }
}

</mosaic_0001>

<bundles_post_ra>
// kernel: tpu_custom_call.1
= control target key start
LH: loop header
LB: loop body
LE: loop exit
PB: predicated region body
PF: predicated region fallthrough
CT: control target
= control target key end

     0   :  { %15 = vsyncpa [#allocation3], 0  ;;  %s6614_s0 = inlined_call_operand.vmem [shape: f32[2,8,64], index: 0, kind: input, shape index: {}]   ;;  %s6615_s1 = inlined_call_operand.hbm [shape: f32[64,512], index: 1, kind: input, shape index: {}]   ;;  %s6616_s2 = inlined_call_operand.vmem [shape: f32[32,512], index: 2, kind: input, shape index: {}]   ;;  %s6617_s3 = inlined_call_operand.vmem [shape: f32[1,512], index: 3, kind: input, shape index: {}]   ;;  %s6618_s4 = inlined_call_operand.hbm [shape: f32[128,512], index: 4, kind: input, shape index: {}]   ;;  %s6619_s5 = inlined_call_operand.hbm [shape: f32[32,512], index: 5, kind: input, shape index: {}]   ;;  %s6620_s6 = inlined_call_operand.vmem [shape: f32[1,512], index: 6, kind: input, shape index: {}]   ;;  %s6621_s7 = inlined_call_operand.vmem [shape: f32[128,2], index: 7, kind: input, shape index: {}]   ;;  %s6622_s8 = inlined_call_operand.vmem [shape: f32[1,2], index: 8, kind: input, shape index: {}]   ;;  %s6623_s9 = inlined_call_operand.vmem [shape: f32[2,8,2], index: 9, kind: input, shape index: {}]   ;;  %s6624_s10 = inlined_call_operand.vmem [shape: f32[2,8,2], index: 10, kind: output, shape index: {}]  }
   0x1   :  { %16 = vsyncpa [#allocation5], 0  ;;  %s5257_s13 = smov [#allocation4]   ;;  %s5258_s15 = smov [#allocation2]  }
   0x2   :  { %s40_s14 = sshll.u32 %s5257_s13, 4  ;;  %s24_s16 = sshll.u32 %s5258_s15, 4  ;;  %s41_s14 = int_to_ptr.vmem [resolvable:$true] %s40_s14  ;;  %s5321_s16 = int_to_ptr.vmem [resolvable:$true] %s24_s16 }
   0x3   :  { %s5187_s19 = scalar_lea.hbm %s6618_s4, 8192 }
   0x4   :  { %p5188_p0 = scmp.ne.s32.totalorder %s6618_s4, %s5187_s19  ;;  %p5191_p1 = scmp.lt.u32.totalorder %s5187_s19, %s6618_s4 }
   0x6   :  { %p5193_p2 = pnand %p5191_p1, %p5188_p0 }
   0x8   :  { %5196 = shalt.err (!%p5193_p2)
}
   0x9   :  { %s5197_s24 = scalar_lea.vmem %s41_s14, 8192  ;;  %p5202_p4 = scmp.lt.s32.totalorder %s41_s14, %s41_s14 }
   0xa   :  { %p5198_p3 = scmp.ne.s32.totalorder %s41_s14, %s5197_s24  ;;  %p5203_p5 = scmp.lt.s32.totalorder %s5197_s24, %s5197_s24 }
   0xc   :  { %p5204_p6 = por %p5203_p5, %p5202_p4 }
   0xe   :  { %p5205_p7 = pnand %p5204_p6, %p5198_p3 }
  0x10   :  { %5208 = shalt.err (!%p5205_p7)
}
  0x11   :  { %s5259_s25 = smov 512   ;;  %s5260_s26 = smov 32  }
  0x12   :  { %46 = dma.hbm_to_vmem [thread:$0]  %s6618_s4, 8192, %s41_s14, [#allocation5], %s5259_s25, %s5259_s25, %s5260_s26  }
  0x13   :  { %s5209_s11 = scalar_lea.hbm %s6615_s1, 4096 }
  0x14   :  { %p5210_p8 = scmp.ne.s32.totalorder %s6615_s1, %s5209_s11  ;;  %p5213_p9 = scmp.lt.u32.totalorder %s5209_s11, %s6615_s1 }
  0x16   :  { %p5215_p10 = pnand %p5213_p9, %p5210_p8 }
  0x18   :  { %5218 = shalt.err (!%p5215_p10)
}
  0x19   :  { %s5219_s18 = scalar_lea.vmem %s5321_s16, 4096  ;;  %p5224_p12 = scmp.lt.s32.totalorder %s5321_s16, %s5321_s16 }
  0x1a   :  { %p5220_p11 = scmp.ne.s32.totalorder %s5321_s16, %s5219_s18  ;;  %p5225_p13 = scmp.lt.s32.totalorder %s5219_s18, %s5219_s18 }
  0x1c   :  { %p5226_p0 = por %p5225_p13, %p5224_p12 }
  0x1e   :  { %p5227_p1 = pnand %p5226_p0, %p5220_p11 }
  0x20   :  { %5230 = shalt.err (!%p5227_p1)
}
  0x21   :  { %30 = dma.hbm_to_vmem [thread:$0]  %s6615_s1, 4096, %s5321_s16, [#allocation3], %s5259_s25, %s5259_s25, %s5260_s26  }
  0x22   :  { %s5261_s19 = smov [#allocation6]   ;;  %s5231_s23 = scalar_lea.hbm %s6619_s5, 2048 }
  0x23   :  { %s52_s20 = sshll.u32 %s5261_s19, 4  ;;  %p5232_p2 = scmp.ne.s32.totalorder %s6619_s5, %s5231_s23  ;;  %s53_s20 = int_to_ptr.vmem [resolvable:$true] %s52_s20 }
  0x24   :  { %p5235_p3 = scmp.lt.u32.totalorder %s5231_s23, %s6619_s5 }
  0x26   :  { %p5237_p4 = pnand %p5235_p3, %p5232_p2 }
  0x28   :  { %5240 = shalt.err (!%p5237_p4)
}
  0x29   :  { %s5241_s30 = scalar_lea.vmem %s53_s20, 2048  ;;  %p5246_p6 = scmp.lt.s32.totalorder %s53_s20, %s53_s20 }
  0x2a   :  { %p5242_p5 = scmp.ne.s32.totalorder %s53_s20, %s5241_s30  ;;  %p5247_p7 = scmp.lt.s32.totalorder %s5241_s30, %s5241_s30 }
  0x2c   :  { %p5248_p8 = por %p5247_p7, %p5246_p6 }
  0x2e   :  { %p5249_p9 = pnand %p5248_p8, %p5242_p5 }
  0x30   :  { %5252 = shalt.err (!%p5249_p9)
}
  0x31   :  { %58 = dma.hbm_to_vmem [thread:$0]  %s6619_s5, 2048, %s53_s20, [#allocation5], %s5259_s25, %s5259_s25, %s5260_s26  }
  0x32   :  { %5253 = dma.done.wait [#allocation3], 4096  }
  0x33   :  { %5254 = vsyncadd [#allocation3], 4294963200 }
  0x34   :  { %5255 = dma.done.wait [#allocation5], 10240  }
  0x35   :  { %5256 = vsyncadd [#allocation5], 4294957056  ;;  %v5262_v0 = vmov 0.0   ;;  %v87_v1 = vld [vmem:[#allocation2 + $0x8] sm:$0xff]  ;;  %v86_v3 = vld [vmem:[#allocation2] sm:$0xff]  ;;  %vm156_vm0 = vcmask 523264  }
  0x36   :  { %227 = vmatprep.mubr.f32.mxu1 %v5262_v0  ;;  %417 = vmatprep.mubr.f32.mxu0 %v5262_v0  ;;  %v91_v2 = vld [vmem:[#allocation2 + $0x28] sm:$0xff]  ;;  %v90_v5 = vld [vmem:[#allocation2 + $0x20] sm:$0xff]  ;;  %v89_v24 = vld [vmem:[#allocation2 + $0x18] sm:$0xff]  ;;  %vm320_vm1 = vcmask 1041409   ;;  %vm327_vm2 = vcmask 1043459   ;;  %vm343_vm3 = vcmask 1041408  }
  0x37   :  { %v4666_v4 = vpack.c.bf16 %v91_v2, %v87_v1  ;;  %v95_v6 = vld [vmem:[#allocation2 + $0x48] sm:$0xff]  ;;  %v4668_v8 = vpack.c.bf16 %v90_v5, %v86_v3  ;;  %v94_v10 = vld [vmem:[#allocation2 + $0x40] sm:$0xff]  ;;  %v93_v25 = vld [vmem:[#allocation2 + $0x38] sm:$0xff]  ;;  %vm334_vm5 = vcmask 1045509   ;;  %vm340_vm6 = vcmask 1047559   ;;  %s5264_s23 = smov 96  }
  0x38   :  { %v99_v7 = vld [vmem:[#allocation2 + $0x68] sm:$0xff]  ;;  %v98_v11 = vld [vmem:[#allocation2 + $0x60] sm:$0xff]  ;;  %v88_v29 = vld [vmem:[#allocation2 + $0x10] sm:$0xff]  ;;  %v4682_v32 = vpack.c.bf16 %v93_v25, %v89_v24  ;;  %vm345_vm9 = vcmask 1043456   ;;  %vm347_vm11 = vcmask 1045504   ;;  %vm349_vm14 = vcmask 261120  }
  0x39   :  { %v4670_v9 = vpack.c.bf16 %v99_v7, %v95_v6  ;;  %v103_v12 = vld [vmem:[#allocation2 + $0x88] sm:$0xff]  ;;  %4667 = vmatprep.subr.bf16.mxu1 %v4666_v4  ;;  %v4672_v14 = vpack.c.bf16 %v98_v11, %v94_v10  ;;  %v102_v16 = vld [vmem:[#allocation2 + $0x80] sm:$0xff]  ;;  %v92_v33 = vld [vmem:[#allocation2 + $0x30] sm:$0xff]  ;;  %vm1889_vm15 = vcmask 785408  }
  0x3a   :  { %v107_v13 = vld [vmem:[#allocation2 + $0xa8] sm:$0xff]  ;;  %4669 = vmatpush1.bf16.msra.mxu1 %v4668_v8  ;;  %v106_v17 = vld [vmem:[#allocation2 + $0xa0] sm:$0xff]  ;;  %v97_v34 = vld [vmem:[#allocation2 + $0x58] sm:$0xff]  ;;  %v4684_v44 = vpack.c.bf16 %v92_v33, %v88_v29 }
  0x3b   :  { %4671 = vmatprep.subr.bf16.mxu1 %v4670_v9  ;;  %v4674_v15 = vpack.c.bf16 %v107_v13, %v103_v12  ;;  %v111_v18 = vld [vmem:[#allocation2 + $0xc8] sm:$0xff]  ;;  %v4676_v20 = vpack.c.bf16 %v106_v17, %v102_v16  ;;  %v110_v22 = vld [vmem:[#allocation2 + $0xc0] sm:$0xff]  ;;  %v101_v36 = vld [vmem:[#allocation2 + $0x78] sm:$0xff]  ;;  %v76_v12 = vlaneseq }
  0x3c   :  { %v115_v19 = vld [vmem:[#allocation2 + $0xe8] sm:$0xff]  ;;  %v114_v23 = vld [vmem:[#allocation2 + $0xe0] sm:$0xff]  ;;  %v4686_v45 = vpack.c.bf16 %v101_v36, %v97_v34  ;;  %v96_v46 = vld [vmem:[#allocation2 + $0x50] sm:$0xff] }
  0x3d   :  { %v4678_v21 = vpack.c.bf16 %v115_v19, %v111_v18  ;;  %v119_v26 = vld [vmem:[%s6616_s2 + $0x8] sm:$0xff]  ;;  %v4680_v28 = vpack.c.bf16 %v114_v23, %v110_v22  ;;  %v118_v31 = vld [vmem:[%s6616_s2] sm:$0xff]  ;;  %v100_v47 = vld [vmem:[#allocation2 + $0x70] sm:$0xff]  ;;  %v5475_v13 = vshrl.u32 %v76_v12, 7 }
  0x3e   :  { %4673 = vmatpush1.bf16.msra.mxu1 %v4672_v14  ;;  %v123_v27 = vld [vmem:[%s6616_s2 + $0x28] sm:$0xff]  ;;  %v122_v35 = vld [vmem:[%s6616_s2 + $0x20] sm:$0xff]  ;;  %v105_v49 = vld [vmem:[#allocation2 + $0x98] sm:$0xff]  ;;  %v4688_v52 = vpack.c.bf16 %v100_v47, %v96_v46 }
  0x3f   :  { %4675 = vmatprep.subr.bf16.mxu1 %v4674_v15  ;;  %v5381_v30 = vpack.c.bf16 %v123_v27, %v119_v26  ;;  %v5390_v37 = vpack.c.bf16 %v122_v35, %v118_v31  ;;  %v127_v38 = vld [vmem:[%s6616_s2 + $0x48] sm:$0xff]  ;;  %v126_v41 = vld [vmem:[%s6616_s2 + $0x40] sm:$0xff]  ;;  %v109_v50 = vld [vmem:[#allocation2 + $0xb8] sm:$0xff]  ;;  %v5478_v14 = vsub.s32 0, %v5475_v13  ;;  %v142_v16 = vsub.s32 1, %v5475_v13 }
  0x40   :  { %v131_v39 = vld [vmem:[%s6616_s2 + $0x68] sm:$0xff]  ;;  %v130_v42 = vld [vmem:[%s6616_s2 + $0x60] sm:$0xff]  ;;  %v4690_v53 = vpack.c.bf16 %v109_v50, %v105_v49  ;;  %v104_v54 = vld [vmem:[#allocation2 + $0x90] sm:$0xff]  ;;  %v146_v19 = vsub.s32 2, %v5475_v13  ;;  %vm78_vm4 = vcmp.lt.s32.totalorder %v5475_v13, 4  ;;  %vm80_vm7 = vcmp.ge.s32.totalorder %v5475_v13, 4 }
  0x41   :  { %4699 = vmatprep.subr.bf16.mxu0 %v5381_v30  ;;  %v5398_v40 = vpack.c.bf16 %v131_v39, %v127_v38  ;;  %v84_v43 = vld [vmem:[%s6614_s0] sm:$0xff]  ;;  %v5411_v48 = vpack.c.bf16 %v130_v42, %v126_v41  ;;  %v85_v51 = vld [vmem:[%s6614_s0 + $0x8] sm:$0xff]  ;;  %v108_v55 = vld [vmem:[#allocation2 + $0xb0] sm:$0xff]  ;;  %vm81_vm8 = vcmp.lt.s32.totalorder %v5475_v13, 6  ;;  %vm79_vm10 = vcmp.lt.s32.totalorder %v5475_v13, 2 }
  0x42   :  { %4677 = vmatpush1.bf16.msra.mxu1 %v4676_v20  ;;  %4701 = vmatpush1.bf16.msra.mxu0 %v5390_v37  ;;  %v113_v56 = vld [vmem:[#allocation2 + $0xd8] sm:$0xff]  ;;  %v4692_v58 = vpack.c.bf16 %v108_v55, %v104_v54  ;;  %v112_v60 = vld [vmem:[#allocation2 + $0xd0] sm:$0xff]  ;;  %v134_v15 = vld [vmem:[%s6617_s3] sm:$0xf]  ;;  %v150_v20 = vsub.s32 3, %v5475_v13  ;;  %s5263_s3 = smov 64  }
  0x43   :  { %4679 = vmatprep.subr.bf16.mxu1 %v4678_v21  ;;  %4703 = vmatprep.subr.bf16.mxu0 %v5398_v40  ;;  %v117_v57 = vld [vmem:[#allocation2 + $0xf8] sm:$0xff]  ;;  %v116_v61 = vld [vmem:[#allocation2 + $0xf0] sm:$0xff]  ;;  %v139_v17 = vrot.slane %v134_v15, %v5478_v14  ;;  %v143_v18 = vrot.slane %v134_v15, %v142_v16  ;;  %v5495_v25 = vrot.slane %v134_v15, %v146_v19  ;;  %vm82_vm12 = vmand %vm80_vm7, %vm81_vm8  ;;  %vm2247_vm7 = vcmask 1040384  }
  0x44   :  { %v4694_v59 = vpack.c.bf16 %v117_v57, %v113_v56  ;;  %v121_v62 = vld [vmem:[%s6616_s2 + $0x18] sm:$0xff]  ;;  %v4696_v1 = vpack.c.bf16 %v116_v61, %v112_v60  ;;  %v120_v3 = vld [vmem:[%s6616_s2 + $0x10] sm:$0xff]  ;;  %v5499_v26 = vrot.slane %v134_v15, %v150_v20  ;;  %vm5593_vm13 = vmor %vm79_vm10, %vm82_vm12  ;;  %vm2252_vm8 = vcmask 1042432  }
  0x45   :  { %v125_v63 = vld [vmem:[%s6616_s2 + $0x38] sm:$0xff]  ;;  %v124_v4 = vld [vmem:[%s6616_s2 + $0x30] sm:$0xff]  ;;  %vm2257_vm10 = vcmask 1044480   ;;  %vm2262_vm12 = vcmask 1046528  }
  0x46   :  { %4681 = vmatpush1.bf16.msra.mxu1 %v4680_v28  ;;  %4705 = vmatpush1.bf16.msra.mxu0 %v5411_v48  ;;  %v5432_v2 = vpack.c.bf16 %v125_v63, %v121_v62  ;;  %v129_v5 = vld [vmem:[%s6616_s2 + $0x58] sm:$0xff]  ;;  %v5448_v7 = vpack.c.bf16 %v124_v4, %v120_v3  ;;  %v128_v9 = vld [vmem:[%s6616_s2 + $0x50] sm:$0xff] }
  0x47   :  { %4683 = vmatprep.subr.bf16.mxu1 %v4682_v32  ;;  %4715 = vmatprep.subr.bf16.mxu0 %v5381_v30  ;;  %v133_v6 = vld [vmem:[%s6616_s2 + $0x78] sm:$0xff]  ;;  %v132_v10 = vld [vmem:[%s6616_s2 + $0x70] sm:$0xff] }
  0x48   :  { %v5451_v8 = vpack.c.bf16 %v133_v6, %v129_v5  ;;  %v5462_v11 = vpack.c.bf16 %v132_v10, %v128_v9 }
  0x49   :  { %4564 = vmatmul.mubr.msk.f32.vlgmr.msra.gmra.mrb[0].mxu1 %vm156_vm0, %v84_v43  ;;  %418 = vmatmul.mubr.f32.vlgmr.msra.gmra.mrb[0].mxu0 %v5262_v0 }
  0x4a   :  { %4685 = vmatpush1.bf16.msra.mxu1 %v4684_v44  ;;  %233 = vmatprep.mubr.f32.mxu1 %v5262_v0 }
  0x4b   :  { %4687 = vmatprep.subr.bf16.mxu1 %v4686_v45  ;;  %4717 = vmatpush1.bf16.msra.mxu0 %v5390_v37 }
  0x4c   :  { %609 = vmatprep.mubr.f32.mxu0 %v5262_v0  ;;  %4719 = vmatprep.subr.bf16.mxu0 %v5398_v40 }
  0x4d   :  { %4565 = vmatmul.mubr.msk.f32.gmra.mrb[2].mxu1 %vm156_vm0, %v85_v51 }
  0x4e   :  { %4689 = vmatpush1.bf16.msra.mxu1 %v4688_v52  ;;  %304 = vmatprep.mubr.f32.mxu1 %v5262_v0 }
  0x4f   :  { %4691 = vmatprep.subr.bf16.mxu1 %v4690_v53  ;;  %4721 = vmatpush1.bf16.msra.mxu0 %v5411_v48 }
  0x50   :  { %4731 = vmatprep.subr.bf16.mxu0 %v5381_v30 }
  0x52   :  { %4693 = vmatpush1.bf16.msra.mxu1 %v4692_v58 }
  0x53   :  { %4695 = vmatprep.subr.bf16.mxu1 %v4694_v59 }
  0x56   :  { %4697 = vmatpush1.bf16.msra.mxu1 %v4696_v1 }
  0x57   :  { %4707 = vmatprep.subr.bf16.mxu1 %v5432_v2 }
  0x59   :  { %4566 = vmatmul.mubr.msk.f32.vlgmr.msra.gmra.mrb[4].mxu1 %vm156_vm0, %v84_v43 }
  0x5a   :  { %4709 = vmatpush1.bf16.msra.mxu1 %v5448_v7  ;;  %310 = vmatprep.mubr.f32.mxu1 %v5262_v0 }
  0x5b   :  { %4711 = vmatprep.subr.bf16.mxu1 %v5451_v8 }
  0x5d   :  { %4567 = vmatmul.mubr.msk.f32.gmra.mrb[6].mxu1 %vm156_vm0, %v85_v51 }
  0x5e   :  { %4713 = vmatpush1.bf16.msra.mxu1 %v5462_v11  ;;  %488 = vmatprep.mubr.f32.mxu1 %v5262_v0 }
  0x5f   :  { %4723 = vmatprep.subr.bf16.mxu1 %v5432_v2 }
  0x61   :  { %489 = vmatmul.mubr.f32.vlgmr.msra.gmra.mrb[8].mxu1 %v5262_v0 }
  0x62   :  { %4725 = vmatpush1.bf16.msra.mxu1 %v5448_v7  ;;  %680 = vmatprep.mubr.f32.mxu1 %v5262_v0 }
  0x63   :  { %4727 = vmatprep.subr.bf16.mxu1 %v5451_v8 }
  0x66   :  { %4729 = vmatpush1.bf16.msra.mxu1 %v5462_v11 }
  0x67   :  { %4739 = vmatprep.subr.bf16.mxu1 %v5432_v2 }
 0x11c   :  { %v229_v21 = vpop.f32.mrb[0].mxu1  ;;  %v5511_v44 = vpop.f32.mrb[0].mxu0 }
 0x11d   :  { %v5489_v22 = vadd.f32 %v229_v21, %v139_v17  ;;  %v231_v23 = vpop.f32.mrb[1].mxu1  ;;  %v5516_v49 = vpop.f32.mrb[1].mxu0 }
 0x11e   :  { %v5491_v24 = vadd.f32 %v231_v23, %v143_v18 }
 0x11f   :  { %v523_v27 = vrot.slane %v5489_v22, 1  ;;  %v715_v28 = vrot.slane %v5489_v22, 2  ;;  %v909_v29 = vrot.slane %v5489_v22, 3  ;;  %v1103_v35 = vrot.slane %v5489_v22, 4 }
 0x120   :  { %v235_v31 = vpop.f32.mrb[2].mxu1  ;;  %v325_v32 = vrot.slane %v5491_v24, 5  ;;  %v526_v33 = vrot.slane %v5491_v24, 4  ;;  %v719_v34 = vrot.slane %v5491_v24, 3  ;;  %v913_v39 = vrot.slane %v5491_v24, 2 }
 0x121   :  { %v236_v36 = vadd.f32 %v235_v31, %v139_v17  ;;  %v237_v38 = vpop.f32.mrb[3].mxu1  ;;  %v1107_v41 = vrot.slane %v5491_v24, 1  ;;  %v1295_v42 = vrot.slane %v5489_v22, 5  ;;  %v1487_v45 = vrot.slane %v5489_v22, 6 }
 0x122   :  { %v238_v43 = vadd.f32 %v237_v38, %v143_v18  ;;  %v1491_v46 = vrot.slane %v5491_v24, 7  ;;  %v1681_v47 = vrot.slane %v5489_v22, 7 }
 0x123   :  { %v319_v50 = vrot.slane %v236_v36, 7  ;;  %v524_v51 = vsel %vm320_vm1, %v236_v36, %v523_v27  ;;  %v716_v52 = vrot.slane %v236_v36, 1  ;;  %v910_v53 = vrot.slane %v236_v36, 2 }
 0x124   :  { %v326_v54 = vrot.slane %v238_v43, 4  ;;  %v527_v55 = vrot.slane %v238_v43, 3  ;;  %v720_v56 = vrot.slane %v238_v43, 2  ;;  %v914_v57 = vrot.slane %v238_v43, 1 }
 0x125   :  { %v321_v58 = vsel %vm320_vm1, %v319_v50, %v5489_v22  ;;  %v717_v59 = vsel %vm320_vm1, %v716_v52, %v715_v28  ;;  %v911_v60 = vsel %vm320_vm1, %v910_v53, %v909_v29  ;;  %v1104_v61 = vrot.slane %v236_v36, 3 }
 0x126   :  { %v328_v62 = vsel %vm327_vm2, %v326_v54, %v325_v32  ;;  %v528_v63 = vsel %vm327_vm2, %v527_v55, %v526_v33  ;;  %v721_v1 = vsel %vm327_vm2, %v720_v56, %v719_v34  ;;  %v915_v3 = vsel %vm327_vm2, %v914_v57, %v913_v39 }
 0x127   :  { %v5528_v4 = vsel %vm343_vm3, %v321_v58, %v328_v62  ;;  %v5531_v5 = vsel %vm343_vm3, %v524_v51, %v528_v63  ;;  %v5534_v6 = vsel %vm343_vm3, %v717_v59, %v721_v1  ;;  %v5537_v9 = vsel %vm343_vm3, %v911_v60, %v915_v3 }
 0x128   :  { %v1105_v10 = vsel %vm320_vm1, %v1104_v61, %v1103_v35  ;;  %v1108_v12 = vsel %vm327_vm2, %v238_v43, %v1107_v41  ;;  %v1296_v15 = vrot.slane %v236_v36, 4  ;;  %v1299_v17 = vrot.slane %v238_v43, 7 }
 0x129   :  { %v5542_v18 = vsel %vm343_vm3, %v1105_v10, %v1108_v12  ;;  %v1488_v21 = vrot.slane %v236_v36, 5  ;;  %v1492_v22 = vrot.slane %v238_v43, 6  ;;  %v1682_v23 = vrot.slane %v236_v36, 6 }
 0x12a   :  { %v1297_v27 = vsel %vm320_vm1, %v1296_v15, %v1295_v42  ;;  %v1300_v28 = vsel %vm327_vm2, %v1299_v17, %v5491_v24  ;;  %v1685_v29 = vrot.slane %v5491_v24, 6  ;;  %v1686_v31 = vrot.slane %v238_v43, 5 }
 0x12b   :  { %v5549_v32 = vsel %vm343_vm3, %v1297_v27, %v1300_v28  ;;  %v1489_v33 = vsel %vm320_vm1, %v1488_v21, %v1487_v45  ;;  %v1493_v34 = vsel %vm327_vm2, %v1492_v22, %v1491_v46  ;;  %v1683_v35 = vsel %vm320_vm1, %v1682_v23, %v1681_v47 }
 0x12c   :  { %v306_v36 = vpop.f32.mrb[4].mxu1  ;;  %v5556_v38 = vsel %vm343_vm3, %v1489_v33, %v1493_v34  ;;  %v1687_v39 = vsel %vm327_vm2, %v1686_v31, %v1685_v29 }
 0x12d   :  { %v5560_v24 = vadd.f32 %v306_v36, %v5495_v25  ;;  %v308_v41 = vpop.f32.mrb[5].mxu1  ;;  %v5563_v42 = vsel %vm343_vm3, %v1683_v35, %v1687_v39 }
 0x12e   :  { %v5566_v43 = vadd.f32 %v308_v41, %v5499_v26 }
 0x12f   :  { %v332_v45 = vrot.slane %v5560_v24, 4  ;;  %v530_v46 = vrot.slane %v5560_v24, 5  ;;  %v723_v51 = vrot.slane %v5560_v24, 6  ;;  %v917_v53 = vrot.slane %v5560_v24, 7 }
 0x130   :  { %v312_v47 = vpop.f32.mrb[6].mxu1  ;;  %v339_v50 = vrot.slane %v5566_v43, 1  ;;  %v727_v52 = vrot.slane %v5566_v43, 7  ;;  %v921_v56 = vrot.slane %v5566_v43, 6  ;;  %v1113_v57 = vrot.slane %v5566_v43, 5 }
 0x131   :  { %v5578_v54 = vadd.f32 %v312_v47, %v5495_v25  ;;  %v314_v55 = vpop.f32.mrb[7].mxu1  ;;  %v1302_v58 = vrot.slane %v5560_v24, 1  ;;  %v1305_v60 = vrot.slane %v5566_v43, 4  ;;  %v1495_v61 = vrot.slane %v5560_v24, 2 }
 0x132   :  { %v315_v59 = vadd.f32 %v314_v55, %v5499_v26  ;;  %v1499_v62 = vrot.slane %v5566_v43, 3 }
 0x133   :  { %v333_v63 = vrot.slane %v5578_v54, 3  ;;  %v531_v25 = vrot.slane %v5578_v54, 4  ;;  %v724_v1 = vrot.slane %v5578_v54, 5  ;;  %v918_v3 = vrot.slane %v5578_v54, 6 }
 0x134   :  { %v490_v10 = vpop.f32.mrb[8].mxu1  ;;  %v341_v26 = vsel %vm340_vm6, %v315_v59, %v339_v50  ;;  %v534_v15 = vrot.slane %v315_v59, 7  ;;  %v728_v17 = vrot.slane %v315_v59, 6  ;;  %v922_v21 = vrot.slane %v315_v59, 5 }
 0x135   :  { %v495_v22 = vsel %vm78_vm4, %v5511_v44, %v490_v10  ;;  %v335_v23 = vsel %vm334_vm5, %v333_v63, %v332_v45  ;;  %v492_v27 = vpop.f32.mrb[9].mxu1  ;;  %v532_v28 = vsel %vm334_vm5, %v531_v25, %v530_v46  ;;  %v725_v29 = vsel %vm334_vm5, %v724_v1, %v723_v51 }
 0x136   :  { %v346_v31 = vsel %vm345_vm9, %v5528_v4, %v335_v23  ;;  %v496_v33 = vsel %vm78_vm4, %v5516_v49, %v492_v27  ;;  %v535_v34 = vsel %vm340_vm6, %v534_v15, %v5566_v43  ;;  %v538_v44 = vsel %vm345_vm9, %v5531_v5, %v532_v28 }
 0x137   :  { %v348_v35 = vsel %vm347_vm11, %v346_v31, %v341_v26  ;;  %v497_v36 = vsel %vm5593_vm13, %v495_v22, %v496_v33  ;;  %v5617_v39 = vsel %vm347_vm11, %v538_v44, %v535_v34  ;;  %v729_v4 = vsel %vm340_vm6, %v728_v17, %v727_v52 }
 0x138   :  { %v498_v41 = vadd.f32 %v497_v36, %v348_v35  ;;  %v732_v49 = vsel %vm345_vm9, %v5534_v6, %v725_v29  ;;  %v919_v45 = vsel %vm334_vm5, %v918_v3, %v917_v53  ;;  %v923_v46 = vsel %vm340_vm6, %v922_v21, %v921_v56 }
 0x139   :  { %v5625_v5 = vsel %vm347_vm11, %v732_v49, %v729_v4  ;;  %v926_v47 = vsel %vm345_vm9, %v5537_v9, %v919_v45  ;;  %v1110_v50 = vrot.slane %v5578_v54, 7  ;;  %v1114_v51 = vrot.slane %v315_v59, 4 }
 0x13a   :  { %5059 = vtanh.f32 %v498_v41  ;;  %v5631_v52 = vsel %vm347_vm11, %v926_v47, %v923_v46  ;;  %v1303_v6 = vsel %vm334_vm5, %v5578_v54, %v1302_v58  ;;  %v1689_v53 = vrot.slane %v5560_v24, 3 }
 0x13b   :  { %v1111_v55 = vsel %vm334_vm5, %v1110_v50, %v5560_v24  ;;  %v1115_v56 = vsel %vm340_vm6, %v1114_v51, %v1113_v57  ;;  %v1306_v63 = vrot.slane %v315_v59, 3  ;;  %v1310_v9 = vsel %vm345_vm9, %v5549_v32, %v1303_v6 }
 0x13c   :  { %v1118_v25 = vsel %vm345_vm9, %v5542_v18, %v1111_v55  ;;  %v1496_v1 = vrot.slane %v5578_v54, 1  ;;  %v1500_v3 = vrot.slane %v315_v59, 2  ;;  %v1693_v10 = vrot.slane %v5566_v43, 2 }
 0x13d   :  { %v5646_v58 = vsel %vm347_vm11, %v1118_v25, %v1115_v56  ;;  %v1307_v26 = vsel %vm340_vm6, %v1306_v63, %v1305_v60  ;;  %v1690_v24 = vrot.slane %v5578_v54, 2  ;;  %v1694_v57 = vrot.slane %v315_v59, 1 }
 0x13e   :  { %v5651_v15 = vsel %vm347_vm11, %v1310_v9, %v1307_v26  ;;  %v1497_v32 = vsel %vm334_vm5, %v1496_v1, %v1495_v61  ;;  %v1501_v18 = vsel %vm340_vm6, %v1500_v3, %v1499_v62  ;;  %v4568_v61 = vmul.f32 -1.442695, %v498_v41 }
 0x13f   :  { %v1504_v17 = vsel %vm345_vm9, %v5556_v38, %v1497_v32  ;;  %v1691_v43 = vsel %vm334_vm5, %v1690_v24, %v1689_v53  ;;  %v1695_v21 = vsel %vm340_vm6, %v1694_v57, %v1693_v10 }
 0x140   :  { %v5660_v22 = vsel %vm347_vm11, %v1504_v17, %v1501_v18  ;;  %v1698_v54 = vsel %vm345_vm9, %v5563_v42, %v1691_v43  ;;  %5061 = vpow2.f32 %v4568_v61 }
 0x141   :  { %v5665_v59 = vsel %vm347_vm11, %v1698_v54, %v1695_v21 }
 0x144   :  { %v5060_v60 = vpop.eup %5059 }
 0x145   :  { %508 = vrot.lane.b32.xlu0 %v5060_v60, %s5263_s3 }
 0x14a   :  { %v5062_v38 = vpop.eup %5061 }
 0x14b   :  { %v502_v62 = vadd.f32 1.0, %v5062_v38 }
 0x14d   :  { %5063 = vrcp.f32 %v502_v62 }
 0x157   :  { %v5064_v23 = vpop.eup %5063 }
 0x158   :  { %v506_v29 = vmul.f32 0.0, %v5064_v23 }
 0x1b7   :  { %v509_v27 = vpop.permute.xlu0 %508 }
 0x1b8   :  { %v511_v28 = vmul.f32 %v5064_v23, %v509_v27 }
 0x1ba   :  { %513 = vrot.lane.b32.xlu0 %v511_v28, %s5260_s26 }
 0x22c   :  { %v514_v31 = vpop.permute.xlu0 %513 }
 0x22d   :  { %v516_v42 = vadd.f32 %v514_v31, %v506_v29 }
 0x22f   :  { %5065 = vtanh.f32 %v516_v42 }
 0x239   :  { %v5066_v33 = vpop.eup %5065 }
 0x23a   :  { %519 = vrot.lane.b32.xlu1 %v5066_v33, %s5263_s3 }
 0x2ac   :  { %v520_v34 = vpop.permute.xlu1 %519 }
 0x2ad   :  { %v5670_v44 = vmul.f32 %v5064_v23, %v520_v34 }
 0x2af   :  { %541 = vrot.lane.b32.xlu1 %v5670_v44, %s5260_s26 }
 0x321   :  { %v5674_v35 = vpop.permute.xlu1 %541 }
 0x322   :  { %4569 = vmatmul.mubr.msk.f32.vlgmr.msra.gmra.mrb[2].mxu0 %vm349_vm14, %v5674_v35  ;;  %4570 = vmatmul.mubr.msk.f32.vlgmr.msra.gmra.mrb[10].mxu1 %vm349_vm14, %v5674_v35 }
 0x323   :  { %4733 = vmatpush1.bf16.msra.mxu0 %v5390_v37  ;;  %4741 = vmatpush1.bf16.msra.mxu1 %v5448_v7 }
 0x324   :  { %4735 = vmatprep.subr.bf16.mxu0 %v5398_v40  ;;  %4743 = vmatprep.subr.bf16.mxu1 %v5451_v8 }
 0x325   :  { %803 = vmatprep.mubr.f32.mxu0 %v5262_v0  ;;  %874 = vmatprep.mubr.f32.mxu1 %v5262_v0 }
 0x327   :  { %4737 = vmatpush1.bf16.msra.mxu0 %v5411_v48  ;;  %4745 = vmatpush1.bf16.msra.mxu1 %v5462_v11 }
 0x328   :  { %4747 = vmatprep.subr.bf16.mxu0 %v5381_v30  ;;  %4755 = vmatprep.subr.bf16.mxu1 %v5432_v2 }
 0x3f5   :  { %v611_v36 = vpop.f32.mrb[2].mxu0  ;;  %v682_v4 = vpop.f32.mrb[10].mxu1 }
 0x3f6   :  { %v687_v41 = vsel %vm78_vm4, %v611_v36, %v682_v4  ;;  %v613_v49 = vpop.f32.mrb[3].mxu0  ;;  %v684_v45 = vpop.f32.mrb[11].mxu1 }
 0x3f7   :  { %v688_v46 = vsel %vm78_vm4, %v613_v49, %v684_v45 }
 0x3f8   :  { %v689_v47 = vsel %vm5593_vm13, %v687_v41, %v688_v46 }
 0x3f9   :  { %v690_v50 = vadd.f32 %v689_v47, %v5617_v39 }
 0x3fb   :  { %5067 = vtanh.f32 %v690_v50  ;;  %v4571_v6 = vmul.f32 -1.442695, %v690_v50 }
 0x3fd   :  { %5069 = vpow2.f32 %v4571_v6 }
 0x405   :  { %v5068_v51 = vpop.eup %5067 }
 0x406   :  { %700 = vrot.lane.b32.xlu0 %v5068_v51, %s5263_s3 }
 0x407   :  { %v5070_v53 = vpop.eup %5069 }
 0x408   :  { %v694_v55 = vadd.f32 1.0, %v5070_v53 }
 0x40a   :  { %5071 = vrcp.f32 %v694_v55 }
 0x414   :  { %v5072_v56 = vpop.eup %5071 }
 0x415   :  { %v698_v25 = vmul.f32 %v5072_v56, %v516_v42 }
 0x478   :  { %v701_v63 = vpop.permute.xlu0 %700 }
 0x479   :  { %v703_v9 = vmul.f32 %v5072_v56, %v701_v63 }
 0x47b   :  { %705 = vrot.lane.b32.xlu1 %v703_v9, %s5260_s26 }
 0x4ed   :  { %v706_v1 = vpop.permute.xlu1 %705 }
 0x4ee   :  { %v708_v3 = vadd.f32 %v706_v1, %v698_v25 }
 0x4f0   :  { %5073 = vtanh.f32 %v708_v3 }
 0x4fa   :  { %v5074_v10 = vpop.eup %5073 }
 0x4fb   :  { %711 = vrot.lane.b32.xlu0 %v5074_v10, %s5263_s3 }
 0x56d   :  { %v712_v39 = vpop.permute.xlu0 %711 }
 0x56e   :  { %v5700_v26 = vmul.f32 %v5072_v56, %v712_v39 }
 0x570   :  { %735 = vrot.lane.b32.xlu1 %v5700_v26, %s5260_s26 }
 0x5e2   :  { %v5704_v24 = vpop.permute.xlu1 %735 }
 0x5e3   :  { %4572 = vmatmul.mubr.msk.f32.vlgmr.msra.gmra.mrb[4].mxu0 %vm349_vm14, %v5704_v24  ;;  %4573 = vmatmul.mubr.msk.f32.vlgmr.msra.gmra.mrb[12].mxu1 %vm349_vm14, %v5704_v24 }
 0x5e4   :  { %4749 = vmatpush1.bf16.msra.mxu0 %v5390_v37  ;;  %4757 = vmatpush1.bf16.msra.mxu1 %v5448_v7 }
 0x5e5   :  { %4751 = vmatprep.subr.bf16.mxu0 %v5398_v40  ;;  %4759 = vmatprep.subr.bf16.mxu1 %v5451_v8 }
 0x5e6   :  { %997 = vmatprep.mubr.f32.mxu0 %v5262_v0  ;;  %1068 = vmatprep.mubr.f32.mxu1 %v5262_v0 }
 0x5e8   :  { %4753 = vmatpush1.bf16.msra.mxu0 %v5411_v48  ;;  %4761 = vmatpush1.bf16.msra.mxu1 %v5462_v11 }
 0x5e9   :  { %4763 = vmatprep.subr.bf16.mxu0 %v5381_v30  ;;  %4771 = vmatprep.subr.bf16.mxu1 %v5432_v2 }
 0x6b6   :  { %v805_v57 = vpop.f32.mrb[4].mxu0  ;;  %v876_v32 = vpop.f32.mrb[12].mxu1 }
 0x6b7   :  { %v881_v18 = vsel %vm78_vm4, %v805_v57, %v876_v32  ;;  %v807_v17 = vpop.f32.mrb[5].mxu0  ;;  %v878_v43 = vpop.f32.mrb[13].mxu1 }
 0x6b8   :  { %v882_v21 = vsel %vm78_vm4, %v807_v17, %v878_v43 }
 0x6b9   :  { %v883_v54 = vsel %vm5593_vm13, %v881_v18, %v882_v21 }
 0x6ba   :  { %v884_v60 = vadd.f32 %v883_v54, %v5625_v5 }
 0x6bc   :  { %5075 = vtanh.f32 %v884_v60  ;;  %v4574_v38 = vmul.f32 -1.442695, %v884_v60 }
 0x6be   :  { %5077 = vpow2.f32 %v4574_v38 }
 0x6c6   :  { %v5076_v61 = vpop.eup %5075 }
 0x6c7   :  { %894 = vrot.lane.b32.xlu0 %v5076_v61, %s5263_s3 }
 0x6c8   :  { %v5078_v62 = vpop.eup %5077 }
 0x6c9   :  { %v888_v23 = vadd.f32 1.0, %v5078_v62 }
 0x6cb   :  { %5079 = vrcp.f32 %v888_v23 }
 0x6d5   :  { %v5080_v27 = vpop.eup %5079 }
 0x6d6   :  { %v892_v31 = vmul.f32 %v5080_v27, %v708_v3 }
 0x739   :  { %v895_v28 = vpop.permute.xlu0 %894 }
 0x73a   :  { %v897_v29 = vmul.f32 %v5080_v27, %v895_v28 }
 0x73c   :  { %899 = vrot.lane.b32.xlu1 %v897_v29, %s5260_s26 }
 0x7ae   :  { %v900_v42 = vpop.permute.xlu1 %899 }
 0x7af   :  { %v902_v33 = vadd.f32 %v900_v42, %v892_v31 }
 0x7b1   :  { %5081 = vtanh.f32 %v902_v33 }
 0x7bb   :  { %v5082_v34 = vpop.eup %5081 }
 0x7bc   :  { %905 = vrot.lane.b32.xlu0 %v5082_v34, %s5263_s3 }
 0x82e   :  { %v906_v5 = vpop.permute.xlu0 %905 }
 0x82f   :  { %v5730_v36 = vmul.f32 %v5080_v27, %v906_v5 }
 0x831   :  { %929 = vrot.lane.b32.xlu1 %v5730_v36, %s5260_s26 }
 0x8a3   :  { %v5734_v4 = vpop.permute.xlu1 %929 }
 0x8a4   :  { %4575 = vmatmul.mubr.msk.f32.vlgmr.msra.gmra.mrb[6].mxu0 %vm349_vm14, %v5734_v4  ;;  %4576 = vmatmul.mubr.msk.f32.vlgmr.msra.gmra.mrb[14].mxu1 %vm349_vm14, %v5734_v4 }
 0x8a5   :  { %4765 = vmatpush1.bf16.msra.mxu0 %v5390_v37  ;;  %4773 = vmatpush1.bf16.msra.mxu1 %v5448_v7 }
 0x8a6   :  { %4767 = vmatprep.subr.bf16.mxu0 %v5398_v40  ;;  %4775 = vmatprep.subr.bf16.mxu1 %v5451_v8 }
 0x8a7   :  { %1189 = vmatprep.mubr.f32.mxu0 %v5262_v0  ;;  %1260 = vmatprep.mubr.f32.mxu1 %v5262_v0 }
 0x8a9   :  { %4769 = vmatpush1.bf16.msra.mxu0 %v5411_v48  ;;  %4777 = vmatpush1.bf16.msra.mxu1 %v5462_v11 }
 0x8aa   :  { %4779 = vmatprep.subr.bf16.mxu0 %v5381_v30  ;;  %4787 = vmatprep.subr.bf16.mxu1 %v5432_v2 }
 0x977   :  { %v999_v41 = vpop.f32.mrb[6].mxu0  ;;  %v1070_v49 = vpop.f32.mrb[14].mxu1 }
 0x978   :  { %v1075_v45 = vsel %vm78_vm4, %v999_v41, %v1070_v49  ;;  %v1001_v46 = vpop.f32.mrb[7].mxu0  ;;  %v1072_v47 = vpop.f32.mrb[15].mxu1 }
 0x979   :  { %v1076_v50 = vsel %vm78_vm4, %v1001_v46, %v1072_v47 }
 0x97a   :  { %v1077_v51 = vsel %vm5593_vm13, %v1075_v45, %v1076_v50 }
 0x97b   :  { %v1078_v6 = vadd.f32 %v1077_v51, %v5631_v52 }
 0x97d   :  { %5083 = vtanh.f32 %v1078_v6  ;;  %v4577_v55 = vmul.f32 -1.442695, %v1078_v6 }
 0x97f   :  { %5085 = vpow2.f32 %v4577_v55 }
 0x987   :  { %v5084_v53 = vpop.eup %5083 }
 0x988   :  { %1088 = vrot.lane.b32.xlu0 %v5084_v53, %s5263_s3 }
 0x989   :  { %v5086_v56 = vpop.eup %5085 }
 0x98a   :  { %v1082_v63 = vadd.f32 1.0, %v5086_v56 }
 0x98c   :  { %5087 = vrcp.f32 %v1082_v63 }
 0x996   :  { %v5088_v9 = vpop.eup %5087 }
 0x997   :  { %v1086_v3 = vmul.f32 %v5088_v9, %v902_v33 }
 0x9fa   :  { %v1089_v25 = vpop.permute.xlu0 %1088 }
 0x9fb   :  { %v1091_v1 = vmul.f32 %v5088_v9, %v1089_v25 }
 0x9fd   :  { %1093 = vrot.lane.b32.xlu1 %v1091_v1, %s5260_s26 }
 0xa6f   :  { %v1094_v10 = vpop.permute.xlu1 %1093 }
 0xa70   :  { %v1096_v39 = vadd.f32 %v1094_v10, %v1086_v3 }
 0xa72   :  { %5089 = vtanh.f32 %v1096_v39 }
 0xa7c   :  { %v5090_v57 = vpop.eup %5089 }
 0xa7d   :  { %1099 = vrot.lane.b32.xlu0 %v5090_v57, %s5263_s3 }
 0xaef   :  { %v1100_v52 = vpop.permute.xlu0 %1099 }
 0xaf0   :  { %v5760_v32 = vmul.f32 %v5088_v9, %v1100_v52 }
 0xaf2   :  { %1121 = vrot.lane.b32.xlu1 %v5760_v32, %s5260_s26 }
 0xb64   :  { %v5764_v18 = vpop.permute.xlu1 %1121 }
 0xb65   :  { %4578 = vmatmul.mubr.msk.f32.vlgmr.msra.gmra.mrb[8].mxu0 %vm349_vm14, %v5764_v18  ;;  %4579 = vmatmul.mubr.msk.f32.vlgmr.msra.gmra.mrb[16].mxu1 %vm349_vm14, %v5764_v18 }
 0xb66   :  { %4781 = vmatpush1.bf16.msra.mxu0 %v5390_v37  ;;  %4789 = vmatpush1.bf16.msra.mxu1 %v5448_v7 }
 0xb67   :  { %4783 = vmatprep.subr.bf16.mxu0 %v5398_v40  ;;  %4791 = vmatprep.subr.bf16.mxu1 %v5451_v8 }
 0xb68   :  { %1381 = vmatprep.mubr.f32.mxu0 %v5262_v0  ;;  %1452 = vmatprep.mubr.f32.mxu1 %v5262_v0 }
 0xb6a   :  { %4785 = vmatpush1.bf16.msra.mxu0 %v5411_v48  ;;  %4793 = vmatpush1.bf16.msra.mxu1 %v5462_v11 }
 0xb6b   :  { %4795 = vmatprep.subr.bf16.mxu0 %v5381_v30  ;;  %4803 = vmatprep.subr.bf16.mxu1 %v5432_v2 }
 0xc38   :  { %v1191_v17 = vpop.f32.mrb[8].mxu0  ;;  %v1262_v43 = vpop.f32.mrb[16].mxu1 }
 0xc39   :  { %v1267_v21 = vsel %vm78_vm4, %v1191_v17, %v1262_v43  ;;  %v1193_v54 = vpop.f32.mrb[9].mxu0  ;;  %v1264_v60 = vpop.f32.mrb[17].mxu1 }
 0xc3a   :  { %v1268_v61 = vsel %vm78_vm4, %v1193_v54, %v1264_v60 }
 0xc3b   :  { %v1269_v38 = vsel %vm5593_vm13, %v1267_v21, %v1268_v61 }
 0xc3c   :  { %v1270_v62 = vadd.f32 %v1269_v38, %v5646_v58 }
 0xc3e   :  { %5091 = vtanh.f32 %v1270_v62  ;;  %v4580_v27 = vmul.f32 -1.442695, %v1270_v62 }
 0xc40   :  { %5093 = vpow2.f32 %v4580_v27 }
 0xc48   :  { %v5092_v23 = vpop.eup %5091 }
 0xc49   :  { %1280 = vrot.lane.b32.xlu0 %v5092_v23, %s5263_s3 }
 0xc4a   :  { %v5094_v28 = vpop.eup %5093 }
 0xc4b   :  { %v1274_v29 = vadd.f32 1.0, %v5094_v28 }
 0xc4d   :  { %5095 = vrcp.f32 %v1274_v29 }
 0xc57   :  { %v5096_v31 = vpop.eup %5095 }
 0xc58   :  { %v1278_v34 = vmul.f32 %v5096_v31, %v1096_v39 }
 0xcbb   :  { %v1281_v42 = vpop.permute.xlu0 %1280 }
 0xcbc   :  { %v1283_v33 = vmul.f32 %v5096_v31, %v1281_v42 }
 0xcbe   :  { %1285 = vrot.lane.b32.xlu1 %v1283_v33, %s5260_s26 }
 0xd30   :  { %v1286_v5 = vpop.permute.xlu1 %1285 }
 0xd31   :  { %v1288_v41 = vadd.f32 %v1286_v5, %v1278_v34 }
 0xd33   :  { %5097 = vtanh.f32 %v1288_v41 }
 0xd3d   :  { %v5098_v49 = vpop.eup %5097 }
 0xd3e   :  { %1291 = vrot.lane.b32.xlu0 %v5098_v49, %s5263_s3 }
 0xdb0   :  { %v1292_v58 = vpop.permute.xlu0 %1291 }
 0xdb1   :  { %v5790_v45 = vmul.f32 %v5096_v31, %v1292_v58 }
 0xdb3   :  { %1313 = vrot.lane.b32.xlu1 %v5790_v45, %s5260_s26 }
 0xe25   :  { %v5794_v46 = vpop.permute.xlu1 %1313 }
 0xe26   :  { %4581 = vmatmul.mubr.msk.f32.vlgmr.msra.gmra.mrb[10].mxu0 %vm349_vm14, %v5794_v46  ;;  %4582 = vmatmul.mubr.msk.f32.vlgmr.msra.gmra.mrb[18].mxu1 %vm349_vm14, %v5794_v46 }
 0xe27   :  { %4797 = vmatpush1.bf16.msra.mxu0 %v5390_v37  ;;  %4805 = vmatpush1.bf16.msra.mxu1 %v5448_v7 }
 0xe28   :  { %4799 = vmatprep.subr.bf16.mxu0 %v5398_v40  ;;  %4807 = vmatprep.subr.bf16.mxu1 %v5451_v8 }
 0xe29   :  { %1575 = vmatprep.mubr.f32.mxu0 %v5262_v0  ;;  %1646 = vmatprep.mubr.f32.mxu1 %v5262_v0 }
 0xe2b   :  { %4801 = vmatpush1.bf16.msra.mxu0 %v5411_v48  ;;  %4809 = vmatpush1.bf16.msra.mxu1 %v5462_v11 }
 0xe2c   :  { %4811 = vmatprep.subr.bf16.mxu0 %v5381_v30  ;;  %4819 = vmatprep.subr.bf16.mxu1 %v5432_v2 }
 0xef9   :  { %v1383_v47 = vpop.f32.mrb[10].mxu0  ;;  %v1454_v50 = vpop.f32.mrb[18].mxu1 }
 0xefa   :  { %v1459_v51 = vsel %vm78_vm4, %v1383_v47, %v1454_v50  ;;  %v1385_v6 = vpop.f32.mrb[11].mxu0  ;;  %v1456_v53 = vpop.f32.mrb[19].mxu1 }
 0xefb   :  { %v1460_v55 = vsel %vm78_vm4, %v1385_v6, %v1456_v53 }
 0xefc   :  { %v1461_v56 = vsel %vm5593_vm13, %v1459_v51, %v1460_v55 }
 0xefd   :  { %v1462_v63 = vadd.f32 %v1461_v56, %v5651_v15 }
 0xeff   :  { %5099 = vtanh.f32 %v1462_v63  ;;  %v4583_v30 = vmul.f32 -1.442695, %v1462_v63 }
 0xf01   :  { %5101 = vpow2.f32 %v4583_v30 }
 0xf09   :  { %v5100_v9 = vpop.eup %5099 }
 0xf0a   :  { %1472 = vrot.lane.b32.xlu0 %v5100_v9, %s5263_s3 }
 0xf0b   :  { %v5102_v2 = vpop.eup %5101 }
 0xf0c   :  { %v1466_v25 = vadd.f32 1.0, %v5102_v2 }
 0xf0e   :  { %5103 = vrcp.f32 %v1466_v25 }
 0xf18   :  { %v5104_v1 = vpop.eup %5103 }
 0xf19   :  { %v1470_v39 = vmul.f32 %v5104_v1, %v1288_v41 }
 0xf7c   :  { %v1473_v3 = vpop.permute.xlu0 %1472 }
 0xf7d   :  { %v1475_v10 = vmul.f32 %v5104_v1, %v1473_v3 }
 0xf7f   :  { %1477 = vrot.lane.b32.xlu1 %v1475_v10, %s5260_s26  ;;  %v1910_v10 = vrot.slane %v5730_v36, 4 }
 0xff1   :  { %v1478_v57 = vpop.permute.xlu1 %1477 }
 0xff2   :  { %v1480_v52 = vadd.f32 %v1478_v57, %v1470_v39  ;;  %v1881_v39 = vrot.slane %v5670_v44, 4  ;;  %v1934_v57 = vrot.slane %v5760_v32, 2 }
 0xff4   :  { %5105 = vtanh.f32 %v1480_v52 }
 0xffe   :  { %v5106_v17 = vpop.eup %5105 }
 0xfff   :  { %1483 = vrot.lane.b32.xlu0 %v5106_v17, %s5263_s3  ;;  %v1962_v17 = vrot.slane %v5700_v26, 2 }
0x1071   :  { %v1484_v15 = vpop.permute.xlu0 %1483 }
0x1072   :  { %v5820_v43 = vmul.f32 %v5104_v1, %v1484_v15 }
0x1074   :  { %1507 = vrot.lane.b32.xlu1 %v5820_v43, %s5260_s26 }
0x10e6   :  { %v5824_v21 = vpop.permute.xlu1 %1507 }
0x10e7   :  { %4584 = vmatmul.mubr.msk.f32.vlgmr.msra.gmra.mrb[12].mxu0 %vm349_vm14, %v5824_v21  ;;  %4585 = vmatmul.mubr.msk.f32.vlgmr.msra.gmra.mrb[20].mxu1 %vm349_vm14, %v5824_v21 }
0x10e8   :  { %4813 = vmatpush1.bf16.msra.mxu0 %v5390_v37  ;;  %4821 = vmatpush1.bf16.msra.mxu1 %v5448_v7 }
0x10e9   :  { %4815 = vmatprep.subr.bf16.mxu0 %v5398_v40  ;;  %4823 = vmatprep.subr.bf16.mxu1 %v5451_v8 }
0x10ea   :  { %1769 = vmatprep.mubr.f32.mxu0 %v5262_v0  ;;  %1840 = vmatprep.mubr.f32.mxu1 %v5262_v0 }
0x10ec   :  { %4817 = vmatpush1.bf16.msra.mxu0 %v5411_v48  ;;  %4825 = vmatpush1.bf16.msra.mxu1 %v5462_v11 }
0x11ba   :  { %v1577_v54 = vpop.f32.mrb[12].mxu0  ;;  %v1648_v60 = vpop.f32.mrb[20].mxu1 }
0x11bb   :  { %v1653_v61 = vsel %vm78_vm4, %v1577_v54, %v1648_v60  ;;  %v1579_v37 = vpop.f32.mrb[13].mxu0  ;;  %v1650_v38 = vpop.f32.mrb[21].mxu1 }
0x11bc   :  { %v1654_v40 = vsel %vm78_vm4, %v1579_v37, %v1650_v38  ;;  %v1896_v37 = vrot.slane %v5700_v26, 4  ;;  %v1920_v38 = vrot.slane %v5790_v45, 2 }
0x11bd   :  { %v1655_v7 = vsel %vm5593_vm13, %v1653_v61, %v1654_v40  ;;  %v1924_v40 = vrot.slane %v5760_v32, 4 }
0x11be   :  { %v1656_v8 = vadd.f32 %v1655_v7, %v5660_v22  ;;  %v1938_v7 = vrot.slane %v5790_v45, 4 }
0x11c0   :  { %5107 = vtanh.f32 %v1656_v8  ;;  %v4586_v48 = vmul.f32 -1.442695, %v1656_v8  ;;  %v2266_v8 = vld [vmem:[#allocation4 + $0x8] sm:$0xff] }
0x11c2   :  { %5109 = vpow2.f32 %v4586_v48  ;;  %v2268_v48 = vld [vmem:[#allocation4 + $0x18] sm:$0xff] }
0x11ca   :  { %v5108_v62 = vpop.eup %5107 }
0x11cb   :  { %1666 = vrot.lane.b32.xlu0 %v5108_v62, %s5263_s3  ;;  %v2270_v62 = vld [vmem:[#allocation4 + $0x28] sm:$0xff] }
0x11cc   :  { %v5110_v11 = vpop.eup %5109 }
0x11cd   :  { %v1660_v23 = vadd.f32 1.0, %v5110_v11  ;;  %v1952_v11 = vrot.slane %v5820_v43, 4 }
0x11cf   :  { %5111 = vrcp.f32 %v1660_v23  ;;  %v4826_v23 = vpack.c.bf16 %v2270_v62, %v2266_v8  ;;  %v2296_v8 = vld [vmem:[#allocation4 + $0xf8] sm:$0xff]  ;;  %v2289_v62 = vld [vmem:[#allocation4 + $0xc0] sm:$0xff] }
0x11d1   :  { %4827 = vmatprep.subr.bf16.mxu0 %v4826_v23  ;;  %v2291_v23 = vld [vmem:[#allocation4 + $0xd0] sm:$0xff] }
0x11d9   :  { %v5112_v27 = vpop.eup %5111 }
0x11da   :  { %v1664_v31 = vmul.f32 %v5112_v27, %v1480_v52  ;;  %v1948_v52 = vrot.slane %v5730_v36, 2 }
0x123d   :  { %v1667_v28 = vpop.permute.xlu0 %1666 }
0x123e   :  { %v1669_v29 = vmul.f32 %v5112_v27, %v1667_v28  ;;  %v2265_v28 = vld [vmem:[#allocation4] sm:$0xff] }
0x1240   :  { %1671 = vrot.lane.b32.xlu1 %v1669_v29, %s5260_s26  ;;  %v2269_v29 = vld [vmem:[#allocation4 + $0x20] sm:$0xff] }
0x12b2   :  { %v1672_v42 = vpop.permute.xlu1 %1671 }
0x12b3   :  { %v1674_v33 = vadd.f32 %v1672_v42, %v1664_v31  ;;  %v4828_v42 = vpack.c.bf16 %v2269_v29, %v2265_v28 }
0x12b5   :  { %5113 = vtanh.f32 %v1674_v33 }
0x12bf   :  { %v5114_v34 = vpop.eup %5113 }
0x12c0   :  { %1677 = vrot.lane.b32.xlu0 %v5114_v34, %s5263_s3  ;;  %v2271_v34 = vld [vmem:[#allocation4 + $0x30] sm:$0xff] }
0x1332   :  { %v1678_v22 = vpop.permute.xlu0 %1677 }
0x1333   :  { %v5848_v5 = vmul.f32 %v5112_v27, %v1678_v22  ;;  %v2272_v27 = vld [vmem:[#allocation4 + $0x38] sm:$0xff]  ;;  %v2274_v22 = vld [vmem:[#allocation4 + $0x48] sm:$0xff] }
0x1334   :  { %v4858_v31 = vpack.c.bf16 %v2272_v27, %v2268_v48  ;;  %v2293_v48 = vld [vmem:[#allocation4 + $0xe0] sm:$0xff]  ;;  %v2295_v27 = vld [vmem:[#allocation4 + $0xf0] sm:$0xff] }
0x1335   :  { %1701 = vrot.lane.b32.xlu1 %v5848_v5, %s5260_s26  ;;  %v1892_v3 = vrot.slane %v5848_v5, 2  ;;  %v4840_v28 = vpack.c.bf16 %v2293_v48, %v2289_v62  ;;  %v4872_v29 = vpack.c.bf16 %v2295_v27, %v2291_v23  ;;  %v2319_v48 = vld [vmem:[#allocation4 + $0x1b0] sm:$0xff]  ;;  %v2326_v23 = vld [vmem:[#allocation4 + $0x1e8] sm:$0xff] }
0x1336   :  { %4859 = vmatprep.subr.bf16.mxu1 %v4858_v31  ;;  %v2298_v31 = vld [vmem:[#allocation4 + $0x108] sm:$0xff] }
0x13a7   :  { %v5852_v41 = vpop.permute.xlu1 %1701 }
0x13a8   :  { %4587 = vmatmul.mubr.msk.f32.vlgmr.msra.gmra.mrb[14].mxu0 %vm349_vm14, %v5852_v41  ;;  %4588 = vmatmul.mubr.msk.f32.vlgmr.msra.gmra.mrb[22].mxu1 %vm349_vm14, %v5852_v41 }
0x13a9   :  { %2431 = vmatprep.mubr.f32.mxu0 %v5262_v0  ;;  %2508 = vmatprep.mubr.f32.mxu1 %v5262_v0 }
0x13aa   :  { %4829 = vmatpush1.bf16.msra.mxu0 %v4828_v42  ;;  %v2302_v42 = vld [vmem:[#allocation4 + $0x128] sm:$0xff] }
0x147b   :  { %v1771_v49 = vpop.f32.mrb[14].mxu0  ;;  %v1842_v58 = vpop.f32.mrb[22].mxu1 }
0x147c   :  { %v1847_v47 = vsel %vm78_vm4, %v1771_v49, %v1842_v58  ;;  %v1773_v50 = vpop.f32.mrb[15].mxu0  ;;  %v1844_v51 = vpop.f32.mrb[23].mxu1  ;;  %v2278_v58 = vld [vmem:[#allocation4 + $0x68] sm:$0xff] }
0x147d   :  { %v1848_v6 = vsel %vm78_vm4, %v1773_v50, %v1844_v51  ;;  %v2280_v50 = vld [vmem:[#allocation4 + $0x78] sm:$0xff]  ;;  %v4830_v51 = vpack.c.bf16 %v2278_v58, %v2274_v22  ;;  %v2301_v58 = vld [vmem:[#allocation4 + $0x120] sm:$0xff] }
0x147e   :  { %v1849_v53 = vsel %vm5593_vm13, %v1847_v47, %v1848_v6  ;;  %v2276_v47 = vld [vmem:[#allocation4 + $0x58] sm:$0xff] }
0x147f   :  { %v1850_v55 = vadd.f32 %v1849_v53, %v5665_v59  ;;  %v1906_v59 = vrot.slane %v5820_v43, 2  ;;  %v4862_v6 = vpack.c.bf16 %v2280_v50, %v2276_v47  ;;  %v2273_v53 = vld [vmem:[#allocation4 + $0x40] sm:$0xff]  ;;  %4831 = vmatprep.subr.bf16.mxu0 %v4830_v51  ;;  %v2304_v22 = vld [vmem:[#allocation4 + $0x138] sm:$0xff]  ;;  %v2299_v51 = vld [vmem:[#allocation4 + $0x110] sm:$0xff] }
0x1481   :  { %5115 = vtanh.f32 %v1850_v55  ;;  %v4589_v63 = vmul.f32 -1.442695, %v1850_v55  ;;  %v2277_v55 = vld [vmem:[#allocation4 + $0x60] sm:$0xff] }
0x1483   :  { %5117 = vpow2.f32 %v4589_v63  ;;  %v1966_v63 = vrot.slane %v5848_v5, 4 }
0x148b   :  { %v5116_v56 = vpop.eup %5115 }
0x148c   :  { %1860 = vrot.lane.b32.xlu0 %v5116_v56, %s5263_s3  ;;  %v2275_v56 = vld [vmem:[#allocation4 + $0x50] sm:$0xff] }
0x148d   :  { %v5118_v9 = vpop.eup %5117 }
0x148e   :  { %v1854_v30 = vadd.f32 1.0, %v5118_v9  ;;  %v4832_v9 = vpack.c.bf16 %v2277_v55, %v2273_v53  ;;  %v2306_v55 = vld [vmem:[#allocation4 + $0x148] sm:$0xff] }
0x1490   :  { %5119 = vrcp.f32 %v1854_v30  ;;  %v2279_v30 = vld [vmem:[#allocation4 + $0x70] sm:$0xff]  ;;  %4833 = vmatpush1.bf16.msra.mxu0 %v4832_v9 }
0x149a   :  { %v5868_v2 = vpop.eup %5119 }
0x149b   :  { %v1858_v15 = vmul.f32 %v5868_v2, %v1674_v33  ;;  %v2267_v33 = vld [vmem:[#allocation4 + $0x10] sm:$0xff] }
0x149c   :  { %v4860_v49 = vpack.c.bf16 %v2271_v34, %v2267_v33  ;;  %v2300_v33 = vld [vmem:[#allocation4 + $0x118] sm:$0xff]  ;;  %v4842_v34 = vpack.c.bf16 %v2302_v42, %v2298_v31 }
0x149d   :  { %v4874_v47 = vpack.c.bf16 %v2304_v22, %v2300_v33  ;;  %v2324_v31 = vld [vmem:[#allocation4 + $0x1d8] sm:$0xff]  ;;  %v2321_v33 = vld [vmem:[#allocation4 + $0x1c0] sm:$0xff] }
0x149e   :  { %4861 = vmatpush1.bf16.msra.mxu1 %v4860_v49  ;;  %v2297_v49 = vld [vmem:[#allocation4 + $0x100] sm:$0xff]  ;;  %v2328_v42 = vld [vmem:[#allocation4 + $0x1f8] sm:$0xff] }
0x149f   :  { %4863 = vmatprep.subr.bf16.mxu1 %v4862_v6  ;;  %v4844_v50 = vpack.c.bf16 %v2301_v58, %v2297_v49  ;;  %v2303_v6 = vld [vmem:[#allocation4 + $0x130] sm:$0xff]  ;;  %v2325_v22 = vld [vmem:[#allocation4 + $0x1e0] sm:$0xff] }
0x14a0   :  { %v4876_v53 = vpack.c.bf16 %v2303_v6, %v2299_v51  ;;  %v2323_v49 = vld [vmem:[#allocation4 + $0x1d0] sm:$0xff]  ;;  %v2334_v51 = vld [vmem:[#allocation6 + $0x28] sm:$0xff]  ;;  %v2332_v6 = vld [vmem:[#allocation6 + $0x18] sm:$0xff] }
0x14a1   :  { %v2327_v58 = vld [vmem:[#allocation4 + $0x1f0] sm:$0xff] }
0x14fe   :  { %v1861_v25 = vpop.permute.xlu0 %1860 }
0x14ff   :  { %v1863_v1 = vmul.f32 %v5868_v2, %v1861_v25  ;;  %v2282_v25 = vld [vmem:[#allocation4 + $0x88] sm:$0xff] }
0x1501   :  { %1865 = vrot.lane.b32.xlu1 %v1863_v1, %s5260_s26  ;;  %v2286_v1 = vld [vmem:[#allocation4 + $0xa8] sm:$0xff] }
0x1505   :  { %1893 = vrot.lane.b32.xlu1 %v1892_v3, %s5263_s3  ;;  %v4864_v3 = vpack.c.bf16 %v2279_v30, %v2275_v56  ;;  %v2310_v56 = vld [vmem:[#allocation4 + $0x168] sm:$0xff] }
0x1506   :  { %v4846_v30 = vpack.c.bf16 %v2310_v56, %v2306_v55  ;;  %v4888_v55 = vpack.c.bf16 %v2327_v58, %v2323_v49  ;;  %v2336_v56 = vld [vmem:[#allocation6 + $0x38] sm:$0xff]  ;;  %v1956_v58 = vrot.slane %v5730_v36, 6 }
0x1507   :  { %4865 = vmatpush1.bf16.msra.mxu1 %v4864_v3  ;;  %v2309_v3 = vld [vmem:[#allocation4 + $0x160] sm:$0xff] }
0x1509   :  { %1907 = vrot.lane.b32.xlu1 %v1906_v59, %s5263_s3  ;;  %v4834_v59 = vpack.c.bf16 %v2286_v1, %v2282_v25  ;;  %v2312_v25 = vld [vmem:[#allocation4 + $0x178] sm:$0xff]  ;;  %v2305_v1 = vld [vmem:[#allocation4 + $0x140] sm:$0xff] }
0x150b   :  { %4835 = vmatprep.subr.bf16.mxu0 %v4834_v59 }
0x150d   :  { %1911 = vrot.lane.b32.xlu1 %v1910_v10, %s5264_s23  ;;  %v2284_v10 = vld [vmem:[#allocation4 + $0x98] sm:$0xff] }
0x1511   :  { %1882 = vrot.lane.b32.xlu1 %v1881_v39, %s5264_s23  ;;  %v2288_v39 = vld [vmem:[#allocation4 + $0xb8] sm:$0xff] }
0x1515   :  { %1935 = vrot.lane.b32.xlu1 %v1934_v57, %s5263_s3  ;;  %v2281_v57 = vld [vmem:[#allocation4 + $0x80] sm:$0xff] }
0x1519   :  { %1949 = vrot.lane.b32.xlu1 %v1948_v52, %s5263_s3  ;;  %v4866_v52 = vpack.c.bf16 %v2288_v39, %v2284_v10  ;;  %v4848_v39 = vpack.c.bf16 %v2309_v3, %v2305_v1 }
0x151b   :  { %4867 = vmatprep.subr.bf16.mxu1 %v4866_v52  ;;  %v2311_v52 = vld [vmem:[#allocation4 + $0x170] sm:$0xff] }
0x151d   :  { %1963 = vrot.lane.b32.xlu1 %v1962_v17, %s5263_s3  ;;  %v2285_v17 = vld [vmem:[#allocation4 + $0xa0] sm:$0xff] }
0x1573   :  { %v1866_v54 = vpop.permute.xlu1 %1865 }
0x1574   :  { %v1868_v60 = vadd.f32 %v1866_v54, %v1858_v15  ;;  %v2283_v15 = vld [vmem:[#allocation4 + $0x90] sm:$0xff] }
0x1575   :  { %v2287_v54 = vld [vmem:[#allocation4 + $0xb0] sm:$0xff] }
0x1576   :  { %5121 = vtanh.f32 %v1868_v60  ;;  %v4836_v60 = vpack.c.bf16 %v2285_v17, %v2281_v57  ;;  %v2307_v57 = vld [vmem:[#allocation4 + $0x150] sm:$0xff]  ;;  %v2314_v17 = vld [vmem:[#allocation4 + $0x188] sm:$0xff] }
0x1578   :  { %4837 = vmatpush1.bf16.msra.mxu0 %v4836_v60  ;;  %v2316_v60 = vld [vmem:[#allocation4 + $0x198] sm:$0xff] }
0x1580   :  { %v5122_v61 = vpop.eup %5121 }
0x1581   :  { %1871 = vrot.lane.b32.xlu0 %v5122_v61, %s5263_s3  ;;  %v2290_v61 = vld [vmem:[#allocation4 + $0xc8] sm:$0xff] }
0x1585   :  { %1897 = vrot.lane.b32.xlu0 %v1896_v37, %s5264_s23  ;;  %v2294_v37 = vld [vmem:[#allocation4 + $0xe8] sm:$0xff] }
0x1589   :  { %1921 = vrot.lane.b32.xlu0 %v1920_v38, %s5263_s3  ;;  %v2292_v38 = vld [vmem:[#allocation4 + $0xd8] sm:$0xff] }
0x158d   :  { %1925 = vrot.lane.b32.xlu0 %v1924_v40, %s5264_s23  ;;  %v4868_v40 = vpack.c.bf16 %v2287_v54, %v2283_v15  ;;  %v4880_v15 = vpack.c.bf16 %v2311_v52, %v2307_v57  ;;  %v2318_v54 = vld [vmem:[#allocation4 + $0x1a8] sm:$0xff]  ;;  %v5265_v52 = vmov 1966171168  }
0x158f   :  { %4869 = vmatpush1.bf16.msra.mxu1 %v4868_v40  ;;  %v2313_v40 = vld [vmem:[#allocation4 + $0x180] sm:$0xff] }
0x1591   :  { %1939 = vrot.lane.b32.xlu0 %v1938_v7, %s5264_s23  ;;  %v4838_v7 = vpack.c.bf16 %v2294_v37, %v2290_v61  ;;  %v2320_v61 = vld [vmem:[#allocation4 + $0x1b8] sm:$0xff] }
0x1593   :  { %4839 = vmatprep.subr.bf16.mxu0 %v4838_v7  ;;  %v2315_v7 = vld [vmem:[#allocation4 + $0x190] sm:$0xff] }
0x1594   :  { %4841 = vmatpush1.bf16.msra.mxu0 %v4840_v28  ;;  %v4884_v28 = vpack.c.bf16 %v2319_v48, %v2315_v7 }
0x1595   :  { %1953 = vrot.lane.b32.xlu0 %v1952_v11, %s5264_s23  ;;  %v4870_v11 = vpack.c.bf16 %v2296_v8, %v2292_v38  ;;  %4843 = vmatprep.subr.bf16.mxu0 %v4842_v34  ;;  %v4850_v38 = vpack.c.bf16 %v2318_v54, %v2314_v17  ;;  %v4882_v8 = vpack.c.bf16 %v2320_v61, %v2316_v60  ;;  %v1993_v17 = vunpack.c.l.s4 %v5265_v52 }
0x1596   :  { %v4886_v34 = vpack.c.bf16 %v2328_v42, %v2324_v31 }
0x1597   :  { %4871 = vmatprep.subr.bf16.mxu1 %v4870_v11  ;;  %v2322_v11 = vld [vmem:[#allocation4 + $0x1c8] sm:$0xff] }
0x1598   :  { %4873 = vmatpush1.bf16.msra.mxu1 %v4872_v29  ;;  %4845 = vmatpush1.bf16.msra.mxu0 %v4844_v50  ;;  %v4854_v29 = vpack.c.bf16 %v2326_v23, %v2322_v11  ;;  %v2330_v50 = vld [vmem:[#allocation6 + $0x8] sm:$0xff]  ;;  %v1900_v11 = vrot.slane %v5848_v5, 6 }
0x1599   :  { %1967 = vrot.lane.b32.xlu0 %v1966_v63, %s5264_s23  ;;  %4875 = vmatprep.subr.bf16.mxu1 %v4874_v47  ;;  %v2308_v63 = vld [vmem:[#allocation4 + $0x158] sm:$0xff]  ;;  %v1978_v47 = vrot.slane %v5670_v44, 2 }
0x159a   :  { %v4878_v10 = vpack.c.bf16 %v2312_v25, %v2308_v63  ;;  %4847 = vmatprep.subr.bf16.mxu0 %v4846_v30  ;;  %v5911_v63 = vpack.c.bf16 %v2334_v51, %v2330_v50  ;;  %v1894_v30 = vpop.permute.xlu1 %1893 }
0x159b   :  { %v1902_v7 = vsel %vm349_vm14, %v5704_v24, %v1894_v30  ;;  %v1928_v24 = vrot.slane %v5790_v45, 6 }
0x159c   :  { %4877 = vmatpush1.bf16.msra.mxu1 %v4876_v53  ;;  %4849 = vmatpush1.bf16.msra.mxu0 %v4848_v39  ;;  %v4856_v53 = vpack.c.bf16 %v2325_v22, %v2321_v33 }
0x159d   :  { %4879 = vmatprep.subr.bf16.mxu1 %v4878_v10  ;;  %4851 = vmatprep.subr.bf16.mxu0 %v4850_v38  ;;  %v1914_v38 = vrot.slane %v5820_v43, 6 }
0x159e   :  { %v1908_v25 = vpop.permute.xlu1 %1907 }
0x159f   :  { %v1916_v60 = vsel %vm349_vm14, %v5734_v4, %v1908_v25 }
0x15a0   :  { %4881 = vmatpush1.bf16.msra.mxu1 %v4880_v15  ;;  %v1994_v15 = vunpack.c.0.s8 %v1993_v17 }
0x15a1   :  { %4883 = vmatprep.subr.bf16.mxu1 %v4882_v8 }
0x15a2   :  { %v1912_v3 = vpop.permute.xlu1 %1911 }
0x15a4   :  { %4885 = vmatpush1.bf16.msra.mxu1 %v4884_v28 }
0x15a5   :  { %4887 = vmatprep.subr.bf16.mxu1 %v4886_v34  ;;  %v1942_v34 = vrot.slane %v5760_v32, 6 }
0x15a6   :  { %v5917_v39 = vpop.permute.xlu1 %1882 }
0x15a8   :  { %4889 = vmatpush1.bf16.msra.mxu1 %v4888_v55  ;;  %v1986_v55 = vrot.slane %v5670_v44, 6 }
0x15aa   :  { %v1936_v54 = vpop.permute.xlu1 %1935 }
0x15ab   :  { %v1944_v28 = vsel %vm349_vm14, %v5794_v46, %v1936_v54  ;;  %v2335_v54 = vld [vmem:[#allocation6 + $0x30] sm:$0xff] }
0x15ae   :  { %v1950_v8 = vpop.permute.xlu1 %1949 }
0x15af   :  { %v1958_v33 = vsel %vm349_vm14, %v5824_v21, %v1950_v8 }
0x15b2   :  { %v1964_v31 = vpop.permute.xlu1 %1963 }
0x15b3   :  { %v1972_v46 = vsel %vm349_vm14, %v5852_v41, %v1964_v31 }
0x15f3   :  { %v1872_v9 = vpop.permute.xlu0 %1871 }
0x15f4   :  { %v5901_v59 = vmul.f32 %v5868_v2, %v1872_v9  ;;  %v2317_v2 = vld [vmem:[#allocation4 + $0x1a0] sm:$0xff]  ;;  %v5913_v9 = vpack.c.bf16 %v2336_v56, %v2332_v6 }
0x15f5   :  { %v4852_v62 = vpack.c.bf16 %v2317_v2, %v2313_v40  ;;  %v5924_v40 = vsub.s32 %v1994_v15, %v5475_v13  ;;  %v2331_v15 = vld [vmem:[#allocation6 + $0x10] sm:$0xff] }
0x15f6   :  { %1975 = vrot.lane.b32.xlu1 %v5901_v59, %s5260_s26  ;;  %v1877_v37 = vrot.slane %v5901_v59, 2  ;;  %v1982_v27 = vrot.slane %v5901_v59, 4  ;;  %4899 = vmatprep.subr.bf16.mxu1 %v5913_v9  ;;  %v1885_v52 = vrot.slane %v5901_v59, 6 }
0x15f7   :  { %4853 = vmatpush1.bf16.msra.mxu0 %v4852_v62  ;;  %v1898_v1 = vpop.permute.xlu0 %1897 }
0x15f8   :  { %1878 = vrot.lane.b32.xlu0 %v1877_v37, %s5263_s3  ;;  %4855 = vmatprep.subr.bf16.mxu0 %v4854_v29  ;;  %v1917_v37 = vsel %vm156_vm0, %v1916_v60, %v1912_v3  ;;  %v1903_v62 = vsel %vm156_vm0, %v1902_v7, %v1898_v1 }
0x15f9   :  { %v1918_v2 = vsel %vm1889_vm15, %v1917_v37, %v1914_v38  ;;  %v1904_v43 = vsel %vm1889_vm15, %v1903_v62, %v1900_v11 }
0x15fa   :  { %1983 = vrot.lane.b32.xlu1 %v1982_v27, %s5264_s23  ;;  %v2046_v4 = vrot.slane %v1918_v2, %v5924_v40  ;;  %v2023_v5 = vrot.slane %v1904_v43, %v5924_v40 }
0x15fb   :  { %4857 = vmatpush1.bf16.msra.mxu0 %v4856_v53  ;;  %v1922_v10 = vpop.permute.xlu0 %1921  ;;  %v1970_v53 = vrot.slane %v5700_v26, 6 }
0x15fc   :  { %1979 = vrot.lane.b32.xlu0 %v1978_v47, %s5263_s3  ;;  %4891 = vmatprep.subr.bf16.mxu0 %v5911_v63  ;;  %v1930_v23 = vsel %vm349_vm14, %v5764_v18, %v1922_v10  ;;  %v2047_v29 = vcombine.high %v2046_v4, %v2046_v4  ;;  %v2054_v47 = vrot.slane %v2046_v4, %v5924_v40  ;;  %v2329_v10 = vld [vmem:[#allocation6] sm:$0xff] }
0x15fd   :  { %v2024_v32 = vcombine.high %v2023_v5, %v2023_v5  ;;  %v2031_v26 = vrot.slane %v2023_v5, %v5924_v40 }
0x15fe   :  { %v5952_v21 = vrot.slane %v2047_v29, %v5924_v40  ;;  %v2190_v56 = vrot.slane %v2054_v47, %v5478_v14 }
0x15ff   :  { %v1926_v57 = vpop.permute.xlu0 %1925  ;;  %v2038_v17 = vrot.slane %v2024_v32, %v5924_v40  ;;  %v2180_v4 = vrot.slane %v2031_v26, %v5478_v14  ;;  %v2344_v26 = vld [vmem:[#allocation6 + $0x78] sm:$0xff] }
0x1600   :  { %v1931_v27 = vsel %vm156_vm0, %v1930_v23, %v1926_v57  ;;  %v2194_v30 = vrot.slane %v5952_v21, %v5478_v14  ;;  %v2333_v57 = vld [vmem:[#allocation6 + $0x20] sm:$0xff] }
0x1601   :  { %v1932_v18 = vsel %vm1889_vm15, %v1931_v27, %v1928_v24  ;;  %v5974_v2 = vpack.c.bf16 %v2333_v57, %v2329_v10 }
0x1602   :  { %v2069_v50 = vrot.slane %v1932_v18, %v5924_v40 }
0x1603   :  { %v1940_v61 = vpop.permute.xlu0 %1939 }
0x1604   :  { %v1945_v42 = vsel %vm156_vm0, %v1944_v28, %v1940_v61  ;;  %v2070_v25 = vcombine.high %v2069_v50, %v2069_v50  ;;  %v2077_v38 = vrot.slane %v2069_v50, %v5924_v40 }
0x1605   :  { %v1946_v45 = vsel %vm1889_vm15, %v1945_v42, %v1942_v34 }
0x1606   :  { %v2092_v41 = vrot.slane %v1946_v45, %v5924_v40  ;;  %v2084_v7 = vrot.slane %v2070_v25, %v5924_v40  ;;  %v2200_v31 = vrot.slane %v2077_v38, %v5478_v14  ;;  %v2342_v25 = vld [vmem:[#allocation6 + $0x68] sm:$0xff]  ;;  %v2337_v38 = vld [vmem:[#allocation6 + $0x40] sm:$0xff] }
0x1607   :  { %v1954_v48 = vpop.permute.xlu0 %1953 }
0x1608   :  { %v1959_v49 = vsel %vm156_vm0, %v1958_v33, %v1954_v48  ;;  %v2093_v60 = vcombine.high %v2092_v41, %v2092_v41  ;;  %v5978_v48 = vpack.c.bf16 %v2335_v54, %v2331_v15  ;;  %v2100_v11 = vrot.slane %v2092_v41, %v5924_v40 }
0x1609   :  { %v1960_v6 = vsel %vm1889_vm15, %v1959_v49, %v1956_v58  ;;  %v2204_v18 = vrot.slane %v2084_v7, %v5478_v14 }
0x160a   :  { %v2115_v1 = vrot.slane %v1960_v6, %v5924_v40  ;;  %v2107_v43 = vrot.slane %v2093_v60, %v5924_v40 }
0x160b   :  { %v1968_v22 = vpop.permute.xlu0 %1967 }
0x160c   :  { %v1973_v51 = vsel %vm156_vm0, %v1972_v46, %v1968_v22  ;;  %v2116_v8 = vcombine.high %v2115_v1, %v2115_v1  ;;  %v2123_v27 = vrot.slane %v2115_v1, %v5924_v40  ;;  %v2210_v46 = vrot.slane %v2100_v11, %v5478_v14 }
0x160d   :  { %v1974_v36 = vsel %vm1889_vm15, %v1973_v51, %v1970_v53  ;;  %v2214_v21 = vrot.slane %v2107_v43, %v5478_v14 }
0x160e   :  { %v2138_v61 = vrot.slane %v1974_v36, %v5924_v40  ;;  %v2130_v34 = vrot.slane %v2116_v8, %v5924_v40  ;;  %v2220_v50 = vrot.slane %v2123_v27, %v5478_v14  ;;  %v2338_v36 = vld [vmem:[#allocation6 + $0x48] sm:$0xff]  ;;  %v2345_v27 = vld [vmem:[%s6620_s6] sm:$0xf] }
0x1610   :  { %v2139_v28 = vcombine.high %v2138_v61, %v2138_v61  ;;  %v2146_v22 = vrot.slane %v2138_v61, %v5924_v40  ;;  %v2224_v10 = vrot.slane %v2130_v34, %v5478_v14 }
0x1612   :  { %v2153_v51 = vrot.slane %v2139_v28, %v5924_v40  ;;  %v2230_v1 = vrot.slane %v2146_v22, %v5478_v14  ;;  %v2350_v28 = vrot.slane %v2345_v27, %v5478_v14 }
0x1614   :  { %v2234_v60 = vrot.slane %v2153_v51, %v5478_v14 }
0x1668   :  { %v1976_v3 = vpop.permute.xlu1 %1975 }
0x166a   :  { %v1879_v44 = vpop.permute.xlu0 %1878 }
0x166b   :  { %v1887_v37 = vsel %vm349_vm14, %v5674_v35, %v1879_v44  ;;  %v2184_v35 = vrot.slane %v2038_v17, %v5478_v14 }
0x166c   :  { %v1888_v59 = vsel %vm156_vm0, %v1887_v37, %v5917_v39  ;;  %v1984_v24 = vpop.permute.xlu1 %1983  ;;  %v6016_v37 = vpack.c.bf16 %v2342_v25, %v2338_v36 }
0x166d   :  { %v1890_v62 = vsel %vm1889_vm15, %v1888_v59, %v1885_v52  ;;  %v2340_v52 = vld [vmem:[#allocation6 + $0x58] sm:$0xff] }
0x166e   :  { %v1998_v23 = vrot.slane %v1890_v62, %v5924_v40  ;;  %v1980_v39 = vpop.permute.xlu0 %1979  ;;  %v6021_v8 = vpack.c.bf16 %v2344_v26, %v2340_v52  ;;  %v2341_v62 = vld [vmem:[#allocation6 + $0x60] sm:$0xff] }
0x166f   :  { %v1988_v29 = vsel %vm349_vm14, %v1976_v3, %v1980_v39  ;;  %v6029_v39 = vpack.c.bf16 %v2341_v62, %v2337_v38 }
0x1670   :  { %v1999_v42 = vcombine.high %v1998_v23, %v1998_v23  ;;  %v2006_v33 = vrot.slane %v1998_v23, %v5924_v40  ;;  %v1989_v5 = vsel %vm156_vm0, %v1988_v29, %v1984_v24  ;;  %v2358_v24 = vrot.slane %v2345_v27, %v146_v19 }
0x1671   :  { %v1990_v49 = vsel %vm1889_vm15, %v1989_v5, %v1986_v55  ;;  %v2354_v29 = vrot.slane %v2345_v27, %v142_v16 }
0x1672   :  { %v2013_v45 = vrot.slane %v1999_v42, %v5924_v40  ;;  %v2248_v58 = vsel %vm2247_vm7, %v2006_v33, %v2180_v4  ;;  %v2161_v47 = vrot.slane %v1990_v49, %v5924_v40  ;;  %v2339_v4 = vld [vmem:[#allocation6 + $0x50] sm:$0xff] }
0x1673   :  { %v2250_v32 = vsel %vm343_vm3, %v2248_v58, %v2190_v56 }
0x1674   :  { %v2162_v6 = vcombine.high %v2161_v47, %v2161_v47  ;;  %v2169_v53 = vrot.slane %v2161_v47, %v5924_v40  ;;  %v2253_v41 = vsel %vm2252_vm8, %v2250_v32, %v2200_v31  ;;  %v2249_v55 = vsel %vm2247_vm7, %v2013_v45, %v2184_v35  ;;  %v2343_v35 = vld [vmem:[#allocation6 + $0x70] sm:$0xff] }
0x1675   :  { %v2255_v3 = vsel %vm345_vm9, %v2253_v41, %v2210_v46  ;;  %v2251_v57 = vsel %vm343_vm3, %v2249_v55, %v2194_v30  ;;  %v6031_v43 = vpack.c.bf16 %v2343_v35, %v2339_v4  ;;  %v2362_v31 = vrot.slane %v2345_v27, %v150_v20 }
0x1676   :  { %v2240_v56 = vrot.slane %v2169_v53, %v5478_v14  ;;  %v2258_v17 = vsel %vm2257_vm10, %v2255_v3, %v2220_v50  ;;  %v2176_v44 = vrot.slane %v2162_v6, %v5924_v40  ;;  %v2254_v15 = vsel %vm2252_vm8, %v2251_v57, %v2204_v18 }
0x1677   :  { %v2260_v54 = vsel %vm347_vm11, %v2258_v17, %v2230_v1  ;;  %v2256_v61 = vsel %vm345_vm9, %v2254_v15, %v2214_v21 }
0x1678   :  { %v2263_v30 = vsel %vm2262_vm12, %v2260_v54, %v2240_v56  ;;  %v2244_v59 = vrot.slane %v2176_v44, %v5478_v14  ;;  %v2259_v7 = vsel %vm2257_vm10, %v2256_v61, %v2224_v10 }
0x1679   :  { %2432 = vmatmul.mubr.f32.vlgmr.msra.gmra.mrb[16].mxu0 %v2263_v30  ;;  %2509 = vmatmul.mubr.f32.vlgmr.msra.gmra.mrb[24].mxu1 %v2263_v30  ;;  %v2261_v11 = vsel %vm347_vm11, %v2259_v7, %v2234_v60 }
0x167a   :  { %2437 = vmatprep.mubr.f32.mxu0 %v5262_v0  ;;  %2514 = vmatprep.mubr.f32.mxu1 %v5262_v0  ;;  %v2264_v23 = vsel %vm2262_vm12, %v2261_v11, %v2244_v59 }
0x167b   :  { %4893 = vmatpush1.bf16.msra.mxu0 %v5974_v2  ;;  %4901 = vmatpush1.bf16.msra.mxu1 %v5978_v48 }
0x167c   :  { %4895 = vmatprep.subr.bf16.mxu0 %v6016_v37  ;;  %4903 = vmatprep.subr.bf16.mxu1 %v6021_v8 }
0x167d   :  { %2438 = vmatmul.mubr.f32.gmra.mrb[18].mxu0 %v2264_v23  ;;  %2515 = vmatmul.mubr.f32.gmra.mrb[26].mxu1 %v2264_v23 }
0x167e   :  { %2610 = vmatprep.mubr.f32.mxu0 %v5262_v0  ;;  %2681 = vmatprep.mubr.f32.mxu1 %v5262_v0 }
0x167f   :  { %4897 = vmatpush1.bf16.msra.mxu0 %v6029_v39  ;;  %4905 = vmatpush1.bf16.msra.mxu1 %v6031_v43 }
0x1680   :  { %4907 = vmatprep.subr.bf16.mxu0 %v5911_v63  ;;  %4915 = vmatprep.subr.bf16.mxu1 %v5913_v9 }
0x1682   :  { %2611 = vmatmul.mubr.f32.vlgmr.msra.gmra.mrb[20].mxu0 %v5262_v0  ;;  %2682 = vmatmul.mubr.f32.vlgmr.msra.gmra.mrb[28].mxu1 %v5262_v0 }
0x1683   :  { %4909 = vmatpush1.bf16.msra.mxu0 %v5974_v2  ;;  %4917 = vmatpush1.bf16.msra.mxu1 %v5978_v48 }
0x1684   :  { %4911 = vmatprep.subr.bf16.mxu0 %v6016_v37  ;;  %4919 = vmatprep.subr.bf16.mxu1 %v6021_v8 }
0x1685   :  { %2802 = vmatprep.mubr.f32.mxu0 %v5262_v0  ;;  %2873 = vmatprep.mubr.f32.mxu1 %v5262_v0 }
0x1687   :  { %4913 = vmatpush1.bf16.msra.mxu0 %v6029_v39  ;;  %4921 = vmatpush1.bf16.msra.mxu1 %v6031_v43 }
0x1688   :  { %4923 = vmatprep.subr.bf16.mxu0 %v5911_v63  ;;  %4931 = vmatprep.subr.bf16.mxu1 %v5913_v9 }
0x174c   :  { %v2433_v42 = vpop.f32.mrb[16].mxu0  ;;  %v2510_v33 = vpop.f32.mrb[24].mxu1 }
0x174d   :  { %v6063_v5 = vadd.f32 %v2433_v42, %v2350_v28  ;;  %v6065_v18 = vadd.f32 %v2510_v33, %v2358_v24  ;;  %v2435_v34 = vpop.f32.mrb[17].mxu0  ;;  %v2512_v22 = vpop.f32.mrb[25].mxu1 }
0x174e   :  { %v6067_v49 = vadd.f32 %v2435_v34, %v2354_v29  ;;  %v6069_v46 = vadd.f32 %v2512_v22, %v2362_v31 }
0x174f   :  { %v2534_v19 = vrot.slane %v6065_v18, 4  ;;  %v2716_v45 = vrot.slane %v6063_v5, 1  ;;  %v2723_v16 = vrot.slane %v6065_v18, 5  ;;  %v2908_v51 = vrot.slane %v6063_v5, 2 }
0x1750   :  { %v2439_v58 = vpop.f32.mrb[18].mxu0  ;;  %v2516_v20 = vpop.f32.mrb[26].mxu1  ;;  %v2528_v47 = vrot.slane %v6067_v49, 5  ;;  %v2540_v21 = vrot.slane %v6069_v46, 1  ;;  %v2719_v50 = vrot.slane %v6067_v49, 4  ;;  %v2912_v55 = vrot.slane %v6067_v49, 3 }
0x1751   :  { %v6078_v32 = vadd.f32 %v2439_v58, %v2350_v28  ;;  %v6080_v6 = vadd.f32 %v2516_v20, %v2358_v24  ;;  %v2441_v53 = vpop.f32.mrb[19].mxu0  ;;  %v2518_v41 = vpop.f32.mrb[27].mxu1  ;;  %v2916_v36 = vrot.slane %v6065_v18, 6  ;;  %v2920_v3 = vrot.slane %v6069_v46, 7 }
0x1752   :  { %v6084_v25 = vadd.f32 %v2441_v53, %v2354_v29  ;;  %v6086_v1 = vadd.f32 %v2518_v41, %v2362_v31  ;;  %v3102_v10 = vrot.slane %v6063_v5, 3 }
0x1753   :  { %v2523_v57 = vrot.slane %v6078_v32, 7  ;;  %v2535_v52 = vrot.slane %v6080_v6, 3  ;;  %v2717_v26 = vsel %vm320_vm1, %v6078_v32, %v2716_v45  ;;  %v2724_v56 = vrot.slane %v6080_v6, 4 }
0x1754   :  { %v2529_v17 = vrot.slane %v6084_v25, 4  ;;  %v2541_v44 = vsel %vm340_vm6, %v6086_v1, %v2540_v21  ;;  %v2720_v15 = vrot.slane %v6084_v25, 3  ;;  %v2727_v54 = vrot.slane %v6086_v1, 7 }
0x1755   :  { %v2612_v60 = vpop.f32.mrb[20].mxu0  ;;  %v2683_v61 = vpop.f32.mrb[28].mxu1  ;;  %v2524_v38 = vsel %vm320_vm1, %v2523_v57, %v6063_v5  ;;  %v2536_v30 = vsel %vm334_vm5, %v2535_v52, %v2534_v19  ;;  %v2725_v59 = vsel %vm334_vm5, %v2724_v56, %v2723_v16  ;;  %v2909_v7 = vrot.slane %v6078_v32, 1 }
0x1756   :  { %v2688_v62 = vsel %vm78_vm4, %v2612_v60, %v2683_v61  ;;  %v2614_v4 = vpop.f32.mrb[21].mxu0  ;;  %v2530_v35 = vsel %vm327_vm2, %v2529_v17, %v2528_v47  ;;  %v2685_v11 = vpop.f32.mrb[29].mxu1  ;;  %v2721_v23 = vsel %vm327_vm2, %v2720_v15, %v2719_v50  ;;  %v2728_v27 = vsel %vm340_vm6, %v2727_v54, %v6069_v46 }
0x1757   :  { %v2543_v28 = vsel %vm343_vm3, %v2524_v38, %v2530_v35  ;;  %v2689_v24 = vsel %vm78_vm4, %v2614_v4, %v2685_v11  ;;  %v2730_v29 = vsel %vm343_vm3, %v2717_v26, %v2721_v23  ;;  %v2910_v31 = vsel %vm320_vm1, %v2909_v7, %v2908_v51 }
0x1758   :  { %v2544_v42 = vsel %vm345_vm9, %v2543_v28, %v2536_v30  ;;  %v2690_v33 = vsel %vm5593_vm13, %v2688_v62, %v2689_v24  ;;  %v2731_v34 = vsel %vm345_vm9, %v2730_v29, %v2725_v59  ;;  %v2913_v22 = vrot.slane %v6084_v25, 2 }
0x1759   :  { %v2545_v19 = vsel %vm347_vm11, %v2544_v42, %v2541_v44  ;;  %v6123_v45 = vsel %vm347_vm11, %v2731_v34, %v2728_v27  ;;  %v2917_v16 = vrot.slane %v6080_v6, 5  ;;  %v2921_v58 = vrot.slane %v6086_v1, 6 }
0x175a   :  { %v6127_v20 = vadd.f32 %v2690_v33, %v2545_v19  ;;  %v2914_v47 = vsel %vm327_vm2, %v2913_v22, %v2912_v55  ;;  %v3103_v21 = vrot.slane %v6078_v32, 2  ;;  %v3107_v50 = vrot.slane %v6084_v25, 1 }
0x175b   :  { %v2918_v51 = vsel %vm334_vm5, %v2917_v16, %v2916_v36  ;;  %v2922_v53 = vsel %vm340_vm6, %v2921_v58, %v2920_v3  ;;  %v2924_v41 = vsel %vm343_vm3, %v2910_v31, %v2914_v47  ;;  %v3106_v57 = vrot.slane %v6067_v49, 2 }
0x175c   :  { %5123 = vtanh.f32 %v6127_v20  ;;  %v2925_v52 = vsel %vm345_vm9, %v2924_v41, %v2918_v51  ;;  %v3104_v26 = vsel %vm320_vm1, %v3103_v21, %v3102_v10  ;;  %v3110_v17 = vrot.slane %v6065_v18, 7 }
0x175d   :  { %v6140_v55 = vsel %vm347_vm11, %v2925_v52, %v2922_v53  ;;  %v3108_v56 = vsel %vm327_vm2, %v3107_v50, %v3106_v57  ;;  %v3111_v36 = vrot.slane %v6080_v6, 6  ;;  %v3114_v3 = vrot.slane %v6069_v46, 6 }
0x175e   :  { %v3115_v44 = vrot.slane %v6086_v1, 5  ;;  %v3118_v15 = vsel %vm343_vm3, %v3104_v26, %v3108_v56  ;;  %v3296_v54 = vrot.slane %v6063_v5, 4  ;;  %v3297_v10 = vrot.slane %v6078_v32, 3 }
0x175f   :  { %v3112_v60 = vsel %vm334_vm5, %v3111_v36, %v3110_v17  ;;  %v3300_v61 = vrot.slane %v6067_v49, 1  ;;  %v3303_v38 = vrot.slane %v6080_v6, 7  ;;  %v3306_v7 = vrot.slane %v6069_v46, 5 }
0x1760   :  { %v3116_v30 = vsel %vm340_vm6, %v3115_v44, %v3114_v3  ;;  %v3119_v59 = vsel %vm345_vm9, %v3118_v15, %v3112_v60  ;;  %v3307_v62 = vrot.slane %v6086_v1, 4  ;;  %v3298_v35 = vsel %vm320_vm1, %v3297_v10, %v3296_v54 }
0x1761   :  { %v6158_v4 = vsel %vm347_vm11, %v3119_v59, %v3116_v30  ;;  %v3301_v11 = vsel %vm327_vm2, %v6084_v25, %v3300_v61  ;;  %v3304_v23 = vsel %vm334_vm5, %v3303_v38, %v6065_v18  ;;  %v3488_v24 = vrot.slane %v6063_v5, 5 }
0x1762   :  { %v3308_v27 = vsel %vm340_vm6, %v3307_v62, %v3306_v7  ;;  %v3310_v28 = vsel %vm343_vm3, %v3298_v35, %v3301_v11  ;;  %v3489_v29 = vrot.slane %v6078_v32, 4  ;;  %v3492_v42 = vrot.slane %v6084_v25, 7 }
0x1763   :  { %v3311_v31 = vsel %vm345_vm9, %v3310_v28, %v3304_v23  ;;  %v3495_v33 = vrot.slane %v6065_v18, 1  ;;  %v3498_v19 = vrot.slane %v6069_v46, 4  ;;  %v3499_v16 = vrot.slane %v6086_v1, 3 }
0x1764   :  { %v6173_v34 = vsel %vm347_vm11, %v3311_v31, %v3308_v27  ;;  %v3490_v22 = vsel %vm320_vm1, %v3489_v29, %v3488_v24  ;;  %v3493_v58 = vsel %vm327_vm2, %v3492_v42, %v6067_v49  ;;  %v3680_v21 = vrot.slane %v6063_v5, 6 }
0x1765   :  { %v3496_v47 = vsel %vm334_vm5, %v6080_v6, %v3495_v33  ;;  %v3681_v50 = vrot.slane %v6078_v32, 5  ;;  %v3500_v53 = vsel %vm340_vm6, %v3499_v16, %v3498_v19  ;;  %v3502_v41 = vsel %vm343_vm3, %v3490_v22, %v3493_v58 }
0x1766   :  { %v5124_v51 = vpop.eup %5123  ;;  %v3684_v57 = vrot.slane %v6067_v49, 7  ;;  %v3685_v52 = vrot.slane %v6084_v25, 6  ;;  %v3503_v26 = vsel %vm345_vm9, %v3502_v41, %v3496_v47  ;;  %v3688_v17 = vrot.slane %v6065_v18, 2 }
0x1767   :  { %2701 = vrot.lane.b32.xlu0 %v5124_v51, %s5263_s3  ;;  %v3682_v56 = vsel %vm320_vm1, %v3681_v50, %v3680_v21  ;;  %v3689_v36 = vrot.slane %v6080_v6, 1  ;;  %v6194_v3 = vsel %vm347_vm11, %v3503_v26, %v3500_v53  ;;  %v3692_v15 = vrot.slane %v6069_v46, 3 }
0x1768   :  { %v3686_v44 = vsel %vm327_vm2, %v3685_v52, %v3684_v57  ;;  %v3693_v54 = vrot.slane %v6086_v1, 2  ;;  %v3874_v61 = vrot.slane %v6063_v5, 7  ;;  %v3875_v38 = vrot.slane %v6078_v32, 6 }
0x1769   :  { %v3690_v60 = vsel %vm334_vm5, %v3689_v36, %v3688_v17  ;;  %v3696_v10 = vsel %vm343_vm3, %v3682_v56, %v3686_v44  ;;  %v3878_v7 = vrot.slane %v6067_v49, 6  ;;  %v3879_v62 = vrot.slane %v6084_v25, 5 }
0x176a   :  { %v3694_v30 = vsel %vm340_vm6, %v3693_v54, %v3692_v15  ;;  %v3697_v59 = vsel %vm345_vm9, %v3696_v10, %v3690_v60  ;;  %v3876_v11 = vsel %vm320_vm1, %v3875_v38, %v3874_v61  ;;  %v3882_v23 = vrot.slane %v6065_v18, 3 }
0x176b   :  { %v6208_v35 = vsel %vm347_vm11, %v3697_v59, %v3694_v30  ;;  %v3880_v27 = vsel %vm327_vm2, %v3879_v62, %v3878_v7  ;;  %v3883_v5 = vrot.slane %v6080_v6, 2  ;;  %v3886_v32 = vrot.slane %v6069_v46, 2 }
0x176c   :  { %v3887_v28 = vrot.slane %v6086_v1, 1  ;;  %v3890_v24 = vsel %vm343_vm3, %v3876_v11, %v3880_v27  ;;  %v4590_v18 = vmul.f32 -1.442695, %v6127_v20 }
0x176d   :  { %v3884_v49 = vsel %vm334_vm5, %v3883_v5, %v3882_v23 }
0x176e   :  { %v3888_v25 = vsel %vm340_vm6, %v3887_v28, %v3886_v32  ;;  %v3891_v29 = vsel %vm345_vm9, %v3890_v24, %v3884_v49  ;;  %5125 = vpow2.f32 %v4590_v18 }
0x176f   :  { %v6221_v31 = vsel %vm347_vm11, %v3891_v29, %v3888_v25 }
0x1778   :  { %v5126_v42 = vpop.eup %5125 }
0x1779   :  { %v2695_v6 = vadd.f32 1.0, %v5126_v42 }
0x177b   :  { %5127 = vrcp.f32 %v2695_v6 }
0x1785   :  { %v5128_v46 = vpop.eup %5127 }
0x1786   :  { %v2699_v22 = vmul.f32 0.0, %v5128_v46 }
0x17d9   :  { %v2702_v33 = vpop.permute.xlu0 %2701 }
0x17da   :  { %v2704_v1 = vmul.f32 %v5128_v46, %v2702_v33 }
0x17dc   :  { %2706 = vrot.lane.b32.xlu1 %v2704_v1, %s5260_s26 }
0x184e   :  { %v2707_v19 = vpop.permute.xlu1 %2706 }
0x184f   :  { %v2709_v16 = vadd.f32 %v2707_v19, %v2699_v22 }
0x1851   :  { %5129 = vtanh.f32 %v2709_v16 }
0x185b   :  { %v5130_v58 = vpop.eup %5129 }
0x185c   :  { %2712 = vrot.lane.b32.xlu0 %v5130_v58, %s5263_s3 }
0x18ce   :  { %v2713_v47 = vpop.permute.xlu0 %2712 }
0x18cf   :  { %v6226_v21 = vmul.f32 %v5128_v46, %v2713_v47 }
0x18d1   :  { %2734 = vrot.lane.b32.xlu1 %v6226_v21, %s5260_s26 }
0x1943   :  { %v6230_v20 = vpop.permute.xlu1 %2734 }
0x1944   :  { %4591 = vmatmul.mubr.msk.f32.vlgmr.msra.gmra.mrb[22].mxu0 %vm349_vm14, %v6230_v20  ;;  %4592 = vmatmul.mubr.msk.f32.vlgmr.msra.gmra.mrb[30].mxu1 %vm349_vm14, %v6230_v20 }
0x1945   :  { %4925 = vmatpush1.bf16.msra.mxu0 %v5974_v2  ;;  %4933 = vmatpush1.bf16.msra.mxu1 %v5978_v48 }
0x1946   :  { %4927 = vmatprep.subr.bf16.mxu0 %v6016_v37  ;;  %4935 = vmatprep.subr.bf16.mxu1 %v6021_v8 }
0x1947   :  { %2996 = vmatprep.mubr.f32.mxu0 %v5262_v0  ;;  %3067 = vmatprep.mubr.f32.mxu1 %v5262_v0 }
0x1949   :  { %4929 = vmatpush1.bf16.msra.mxu0 %v6029_v39  ;;  %4937 = vmatpush1.bf16.msra.mxu1 %v6031_v43 }
0x194a   :  { %4939 = vmatprep.subr.bf16.mxu0 %v5911_v63  ;;  %4947 = vmatprep.subr.bf16.mxu1 %v5913_v9 }
0x1a17   :  { %v2804_v50 = vpop.f32.mrb[22].mxu0  ;;  %v2875_v51 = vpop.f32.mrb[30].mxu1 }
0x1a18   :  { %v2880_v53 = vsel %vm78_vm4, %v2804_v50, %v2875_v51  ;;  %v2806_v41 = vpop.f32.mrb[23].mxu0  ;;  %v2877_v57 = vpop.f32.mrb[31].mxu1 }
0x1a19   :  { %v2881_v52 = vsel %vm78_vm4, %v2806_v41, %v2877_v57 }
0x1a1a   :  { %v2882_v26 = vsel %vm5593_vm13, %v2880_v53, %v2881_v52 }
0x1a1b   :  { %v2883_v56 = vadd.f32 %v2882_v26, %v6123_v45 }
0x1a1d   :  { %5131 = vtanh.f32 %v2883_v56  ;;  %v4593_v36 = vmul.f32 -1.442695, %v2883_v56 }
0x1a1f   :  { %5133 = vpow2.f32 %v4593_v36 }
0x1a27   :  { %v5132_v17 = vpop.eup %5131 }
0x1a28   :  { %2893 = vrot.lane.b32.xlu0 %v5132_v17, %s5263_s3 }
0x1a29   :  { %v5134_v44 = vpop.eup %5133 }
0x1a2a   :  { %v2887_v15 = vadd.f32 1.0, %v5134_v44 }
0x1a2c   :  { %5135 = vrcp.f32 %v2887_v15 }
0x1a36   :  { %v5136_v54 = vpop.eup %5135 }
0x1a37   :  { %v2891_v61 = vmul.f32 %v5136_v54, %v2709_v16 }
0x1a9a   :  { %v2894_v60 = vpop.permute.xlu0 %2893 }
0x1a9b   :  { %v2896_v10 = vmul.f32 %v5136_v54, %v2894_v60 }
0x1a9d   :  { %2898 = vrot.lane.b32.xlu1 %v2896_v10, %s5260_s26 }
0x1b0f   :  { %v2899_v38 = vpop.permute.xlu1 %2898 }
0x1b10   :  { %v2901_v30 = vadd.f32 %v2899_v38, %v2891_v61 }
0x1b12   :  { %5137 = vtanh.f32 %v2901_v30 }
0x1b1c   :  { %v5138_v59 = vpop.eup %5137 }
0x1b1d   :  { %2904 = vrot.lane.b32.xlu0 %v5138_v59, %s5263_s3 }
0x1b8f   :  { %v2905_v45 = vpop.permute.xlu0 %2904 }
0x1b90   :  { %v6256_v7 = vmul.f32 %v5136_v54, %v2905_v45 }
0x1b92   :  { %2928 = vrot.lane.b32.xlu1 %v6256_v7, %s5260_s26 }
0x1c04   :  { %v6260_v62 = vpop.permute.xlu1 %2928 }
0x1c05   :  { %4594 = vmatmul.mubr.msk.f32.vlgmr.msra.gmra.mrb[24].mxu0 %vm349_vm14, %v6260_v62  ;;  %4595 = vmatmul.mubr.msk.f32.vlgmr.msra.gmra.mrb[32].mxu1 %vm349_vm14, %v6260_v62 }
0x1c06   :  { %4941 = vmatpush1.bf16.msra.mxu0 %v5974_v2  ;;  %4949 = vmatpush1.bf16.msra.mxu1 %v5978_v48 }
0x1c07   :  { %4943 = vmatprep.subr.bf16.mxu0 %v6016_v37  ;;  %4951 = vmatprep.subr.bf16.mxu1 %v6021_v8 }
0x1c08   :  { %3190 = vmatprep.mubr.f32.mxu0 %v5262_v0  ;;  %3261 = vmatprep.mubr.f32.mxu1 %v5262_v0 }
0x1c0a   :  { %4945 = vmatpush1.bf16.msra.mxu0 %v6029_v39  ;;  %4953 = vmatpush1.bf16.msra.mxu1 %v6031_v43 }
0x1c0b   :  { %4955 = vmatprep.subr.bf16.mxu0 %v5911_v63  ;;  %4963 = vmatprep.subr.bf16.mxu1 %v5913_v9 }
0x1cd8   :  { %v2998_v11 = vpop.f32.mrb[24].mxu0  ;;  %v3069_v23 = vpop.f32.mrb[32].mxu1 }
0x1cd9   :  { %v3074_v27 = vsel %vm78_vm4, %v2998_v11, %v3069_v23  ;;  %v3000_v5 = vpop.f32.mrb[25].mxu0  ;;  %v3071_v32 = vpop.f32.mrb[33].mxu1 }
0x1cda   :  { %v3075_v28 = vsel %vm78_vm4, %v3000_v5, %v3071_v32 }
0x1cdb   :  { %v3076_v24 = vsel %vm5593_vm13, %v3074_v27, %v3075_v28 }
0x1cdc   :  { %v3077_v49 = vadd.f32 %v3076_v24, %v6140_v55 }
0x1cde   :  { %5139 = vtanh.f32 %v3077_v49  ;;  %v4596_v29 = vmul.f32 -1.442695, %v3077_v49 }
0x1ce0   :  { %5141 = vpow2.f32 %v4596_v29 }
0x1ce8   :  { %v5140_v25 = vpop.eup %5139 }
0x1ce9   :  { %3087 = vrot.lane.b32.xlu0 %v5140_v25, %s5263_s3 }
0x1cea   :  { %v5142_v18 = vpop.eup %5141 }
0x1ceb   :  { %v3081_v42 = vadd.f32 1.0, %v5142_v18 }
0x1ced   :  { %5143 = vrcp.f32 %v3081_v42 }
0x1cf7   :  { %v5144_v6 = vpop.eup %5143 }
0x1cf8   :  { %v3085_v1 = vmul.f32 %v5144_v6, %v2901_v30 }
0x1d5b   :  { %v3088_v46 = vpop.permute.xlu0 %3087 }
0x1d5c   :  { %v3090_v33 = vmul.f32 %v5144_v6, %v3088_v46 }
0x1d5e   :  { %3092 = vrot.lane.b32.xlu1 %v3090_v33, %s5260_s26 }
0x1dd0   :  { %v3093_v22 = vpop.permute.xlu1 %3092 }
0x1dd1   :  { %v3095_v19 = vadd.f32 %v3093_v22, %v3085_v1 }
0x1dd3   :  { %5145 = vtanh.f32 %v3095_v19 }
0x1ddd   :  { %v5146_v16 = vpop.eup %5145 }
0x1dde   :  { %3098 = vrot.lane.b32.xlu0 %v5146_v16, %s5263_s3 }
0x1e50   :  { %v3099_v55 = vpop.permute.xlu0 %3098 }
0x1e51   :  { %v6286_v58 = vmul.f32 %v5144_v6, %v3099_v55 }
0x1e53   :  { %3122 = vrot.lane.b32.xlu1 %v6286_v58, %s5260_s26 }
0x1ec5   :  { %v6290_v47 = vpop.permute.xlu1 %3122 }
0x1ec6   :  { %4597 = vmatmul.mubr.msk.f32.vlgmr.msra.gmra.mrb[26].mxu0 %vm349_vm14, %v6290_v47  ;;  %4598 = vmatmul.mubr.msk.f32.vlgmr.msra.gmra.mrb[34].mxu1 %vm349_vm14, %v6290_v47 }
0x1ec7   :  { %4957 = vmatpush1.bf16.msra.mxu0 %v5974_v2  ;;  %4965 = vmatpush1.bf16.msra.mxu1 %v5978_v48 }
0x1ec8   :  { %4959 = vmatprep.subr.bf16.mxu0 %v6016_v37  ;;  %4967 = vmatprep.subr.bf16.mxu1 %v6021_v8 }
0x1ec9   :  { %3382 = vmatprep.mubr.f32.mxu0 %v5262_v0  ;;  %3453 = vmatprep.mubr.f32.mxu1 %v5262_v0 }
0x1ecb   :  { %4961 = vmatpush1.bf16.msra.mxu0 %v6029_v39  ;;  %4969 = vmatpush1.bf16.msra.mxu1 %v6031_v43 }
0x1ecc   :  { %4971 = vmatprep.subr.bf16.mxu0 %v5911_v63  ;;  %4979 = vmatprep.subr.bf16.mxu1 %v5913_v9 }
0x1f99   :  { %v3192_v50 = vpop.f32.mrb[26].mxu0  ;;  %v3263_v51 = vpop.f32.mrb[34].mxu1 }
0x1f9a   :  { %v3268_v53 = vsel %vm78_vm4, %v3192_v50, %v3263_v51  ;;  %v3194_v41 = vpop.f32.mrb[27].mxu0  ;;  %v3265_v57 = vpop.f32.mrb[35].mxu1 }
0x1f9b   :  { %v3269_v52 = vsel %vm78_vm4, %v3194_v41, %v3265_v57 }
0x1f9c   :  { %v3270_v26 = vsel %vm5593_vm13, %v3268_v53, %v3269_v52 }
0x1f9d   :  { %v3271_v56 = vadd.f32 %v3270_v26, %v6158_v4 }
0x1f9f   :  { %5147 = vtanh.f32 %v3271_v56  ;;  %v4599_v36 = vmul.f32 -1.442695, %v3271_v56 }
0x1fa1   :  { %5149 = vpow2.f32 %v4599_v36 }
0x1fa9   :  { %v5148_v17 = vpop.eup %5147 }
0x1faa   :  { %3281 = vrot.lane.b32.xlu0 %v5148_v17, %s5263_s3 }
0x1fab   :  { %v5150_v44 = vpop.eup %5149 }
0x1fac   :  { %v3275_v15 = vadd.f32 1.0, %v5150_v44 }
0x1fae   :  { %5151 = vrcp.f32 %v3275_v15 }
0x1fb8   :  { %v5152_v54 = vpop.eup %5151 }
0x1fb9   :  { %v3279_v61 = vmul.f32 %v5152_v54, %v3095_v19 }
0x201c   :  { %v3282_v60 = vpop.permute.xlu0 %3281 }
0x201d   :  { %v3284_v10 = vmul.f32 %v5152_v54, %v3282_v60 }
0x201f   :  { %3286 = vrot.lane.b32.xlu1 %v3284_v10, %s5260_s26 }
0x2091   :  { %v3287_v38 = vpop.permute.xlu1 %3286 }
0x2092   :  { %v3289_v30 = vadd.f32 %v3287_v38, %v3279_v61 }
0x2094   :  { %5153 = vtanh.f32 %v3289_v30 }
0x209e   :  { %v5154_v59 = vpop.eup %5153 }
0x209f   :  { %3292 = vrot.lane.b32.xlu0 %v5154_v59, %s5263_s3 }
0x2111   :  { %v3293_v4 = vpop.permute.xlu0 %3292 }
0x2112   :  { %v6316_v45 = vmul.f32 %v5152_v54, %v3293_v4 }
0x2114   :  { %3314 = vrot.lane.b32.xlu1 %v6316_v45, %s5260_s26 }
0x2186   :  { %v6320_v11 = vpop.permute.xlu1 %3314 }
0x2187   :  { %4600 = vmatmul.mubr.msk.f32.vlgmr.msra.gmra.mrb[28].mxu0 %vm349_vm14, %v6320_v11  ;;  %4601 = vmatmul.mubr.msk.f32.vlgmr.msra.gmra.mrb[36].mxu1 %vm349_vm14, %v6320_v11 }
0x2188   :  { %4973 = vmatpush1.bf16.msra.mxu0 %v5974_v2  ;;  %4981 = vmatpush1.bf16.msra.mxu1 %v5978_v48 }
0x2189   :  { %4975 = vmatprep.subr.bf16.mxu0 %v6016_v37  ;;  %4983 = vmatprep.subr.bf16.mxu1 %v6021_v8 }
0x218a   :  { %3574 = vmatprep.mubr.f32.mxu0 %v5262_v0  ;;  %3645 = vmatprep.mubr.f32.mxu1 %v5262_v0 }
0x218c   :  { %4977 = vmatpush1.bf16.msra.mxu0 %v6029_v39  ;;  %4985 = vmatpush1.bf16.msra.mxu1 %v6031_v43 }
0x218d   :  { %4987 = vmatprep.subr.bf16.mxu0 %v5911_v63  ;;  %4995 = vmatprep.subr.bf16.mxu1 %v5913_v9 }
0x225a   :  { %v3384_v23 = vpop.f32.mrb[28].mxu0  ;;  %v3455_v27 = vpop.f32.mrb[36].mxu1 }
0x225b   :  { %v3460_v5 = vsel %vm78_vm4, %v3384_v23, %v3455_v27  ;;  %v3386_v32 = vpop.f32.mrb[29].mxu0  ;;  %v3457_v28 = vpop.f32.mrb[37].mxu1 }
0x225c   :  { %v3461_v24 = vsel %vm78_vm4, %v3386_v32, %v3457_v28 }
0x225d   :  { %v3462_v49 = vsel %vm5593_vm13, %v3460_v5, %v3461_v24 }
0x225e   :  { %v3463_v25 = vadd.f32 %v3462_v49, %v6173_v34 }
0x2260   :  { %5155 = vtanh.f32 %v3463_v25  ;;  %v4602_v18 = vmul.f32 -1.442695, %v3463_v25 }
0x2262   :  { %5157 = vpow2.f32 %v4602_v18 }
0x226a   :  { %v5156_v29 = vpop.eup %5155 }
0x226b   :  { %3473 = vrot.lane.b32.xlu0 %v5156_v29, %s5263_s3 }
0x226c   :  { %v5158_v42 = vpop.eup %5157 }
0x226d   :  { %v3467_v6 = vadd.f32 1.0, %v5158_v42 }
0x226f   :  { %5159 = vrcp.f32 %v3467_v6 }
0x2279   :  { %v5160_v46 = vpop.eup %5159 }
0x227a   :  { %v3471_v22 = vmul.f32 %v5160_v46, %v3289_v30 }
0x22dd   :  { %v3474_v33 = vpop.permute.xlu0 %3473 }
0x22de   :  { %v3476_v1 = vmul.f32 %v5160_v46, %v3474_v33 }
0x22e0   :  { %3478 = vrot.lane.b32.xlu1 %v3476_v1, %s5260_s26 }
0x2352   :  { %v3479_v19 = vpop.permute.xlu1 %3478 }
0x2353   :  { %v3481_v16 = vadd.f32 %v3479_v19, %v3471_v22 }
0x2355   :  { %5161 = vtanh.f32 %v3481_v16 }
0x235f   :  { %v5162_v55 = vpop.eup %5161 }
0x2360   :  { %3484 = vrot.lane.b32.xlu0 %v5162_v55, %s5263_s3 }
0x23d2   :  { %v3485_v34 = vpop.permute.xlu0 %3484 }
0x23d3   :  { %v6346_v50 = vmul.f32 %v5160_v46, %v3485_v34 }
0x23d5   :  { %3506 = vrot.lane.b32.xlu1 %v6346_v50, %s5260_s26 }
0x2447   :  { %v6350_v51 = vpop.permute.xlu1 %3506 }
0x2448   :  { %4603 = vmatmul.mubr.msk.f32.vlgmr.msra.gmra.mrb[30].mxu0 %vm349_vm14, %v6350_v51  ;;  %4604 = vmatmul.mubr.msk.f32.vlgmr.msra.gmra.mrb[38].mxu1 %vm349_vm14, %v6350_v51 }
0x2449   :  { %4989 = vmatpush1.bf16.msra.mxu0 %v5974_v2  ;;  %4997 = vmatpush1.bf16.msra.mxu1 %v5978_v48 }
0x244a   :  { %4991 = vmatprep.subr.bf16.mxu0 %v6016_v37  ;;  %4999 = vmatprep.subr.bf16.mxu1 %v6021_v8 }
0x244b   :  { %3768 = vmatprep.mubr.f32.mxu0 %v5262_v0  ;;  %3839 = vmatprep.mubr.f32.mxu1 %v5262_v0 }
0x244d   :  { %4993 = vmatpush1.bf16.msra.mxu0 %v6029_v39  ;;  %5001 = vmatpush1.bf16.msra.mxu1 %v6031_v43 }
0x244e   :  { %5003 = vmatprep.subr.bf16.mxu0 %v5911_v63  ;;  %5011 = vmatprep.subr.bf16.mxu1 %v5913_v9 }
0x251b   :  { %v3576_v53 = vpop.f32.mrb[30].mxu0  ;;  %v3647_v41 = vpop.f32.mrb[38].mxu1 }
0x251c   :  { %v3652_v57 = vsel %vm78_vm4, %v3576_v53, %v3647_v41  ;;  %v3578_v52 = vpop.f32.mrb[31].mxu0  ;;  %v3649_v26 = vpop.f32.mrb[39].mxu1 }
0x251d   :  { %v3653_v56 = vsel %vm78_vm4, %v3578_v52, %v3649_v26 }
0x251e   :  { %v3654_v17 = vsel %vm5593_vm13, %v3652_v57, %v3653_v56 }
0x251f   :  { %v3655_v36 = vadd.f32 %v3654_v17, %v6194_v3 }
0x2521   :  { %5163 = vtanh.f32 %v3655_v36  ;;  %v4605_v63 = vmul.f32 -1.442695, %v3655_v36 }
0x2523   :  { %5165 = vpow2.f32 %v4605_v63 }
0x252b   :  { %v5164_v44 = vpop.eup %5163 }
0x252c   :  { %3665 = vrot.lane.b32.xlu0 %v5164_v44, %s5263_s3 }
0x252d   :  { %v5166_v9 = vpop.eup %5165 }
0x252e   :  { %v3659_v15 = vadd.f32 1.0, %v5166_v9  ;;  %v4074_v9 = vrot.slane %v6226_v21, 4 }
0x2530   :  { %5167 = vrcp.f32 %v3659_v15  ;;  %v4126_v15 = vrot.slane %v6316_v45, 2 }
0x253a   :  { %v5168_v54 = vpop.eup %5167 }
0x253b   :  { %v3663_v61 = vmul.f32 %v5168_v54, %v3481_v16 }
0x259e   :  { %v3666_v60 = vpop.permute.xlu0 %3665 }
0x259f   :  { %v3668_v10 = vmul.f32 %v5168_v54, %v3666_v60  ;;  %v4154_v60 = vrot.slane %v6256_v7, 2 }
0x25a1   :  { %3670 = vrot.lane.b32.xlu1 %v3668_v10, %s5260_s26 }
0x2613   :  { %v3671_v38 = vpop.permute.xlu1 %3670 }
0x2614   :  { %v3673_v30 = vadd.f32 %v3671_v38, %v3663_v61 }
0x2616   :  { %5169 = vtanh.f32 %v3673_v30 }
0x2620   :  { %v5170_v59 = vpop.eup %5169 }
0x2621   :  { %3676 = vrot.lane.b32.xlu0 %v5170_v59, %s5263_s3  ;;  %v4088_v59 = vrot.slane %v6256_v7, 4 }
0x2693   :  { %v3677_v3 = vpop.permute.xlu0 %3676 }
0x2694   :  { %v6376_v4 = vmul.f32 %v5168_v54, %v3677_v3  ;;  %v4140_v54 = vrot.slane %v6286_v58, 2  ;;  %v4112_v3 = vrot.slane %v6346_v50, 2 }
0x2696   :  { %3700 = vrot.lane.b32.xlu1 %v6376_v4, %s5260_s26  ;;  %v4098_v12 = vrot.slane %v6376_v4, 2 }
0x2708   :  { %v6380_v23 = vpop.permute.xlu1 %3700 }
0x2709   :  { %4606 = vmatmul.mubr.msk.f32.vlgmr.msra.gmra.mrb[32].mxu0 %vm349_vm14, %v6380_v23  ;;  %4607 = vmatmul.mubr.msk.f32.vlgmr.msra.gmra.mrb[40].mxu1 %vm349_vm14, %v6380_v23 }
0x270a   :  { %5005 = vmatpush1.bf16.msra.mxu0 %v5974_v2  ;;  %5013 = vmatpush1.bf16.msra.mxu1 %v5978_v48 }
0x270b   :  { %5007 = vmatprep.subr.bf16.mxu0 %v6016_v37  ;;  %5015 = vmatprep.subr.bf16.mxu1 %v6021_v8 }
0x270c   :  { %3962 = vmatprep.mubr.f32.mxu0 %v5262_v0  ;;  %4033 = vmatprep.mubr.f32.mxu1 %v5262_v0 }
0x270e   :  { %5009 = vmatpush1.bf16.msra.mxu0 %v6029_v39  ;;  %5017 = vmatpush1.bf16.msra.mxu1 %v6031_v43 }
0x27dc   :  { %v3770_v27 = vpop.f32.mrb[32].mxu0  ;;  %v3841_v5 = vpop.f32.mrb[40].mxu1 }
0x27dd   :  { %v3846_v32 = vsel %vm78_vm4, %v3770_v27, %v3841_v5  ;;  %v3772_v2 = vpop.f32.mrb[33].mxu0  ;;  %v3843_v28 = vpop.f32.mrb[41].mxu1  ;;  %v4116_v27 = vrot.slane %v6316_v45, 4  ;;  %v4130_v5 = vrot.slane %v6346_v50, 4 }
0x27de   :  { %v3847_v48 = vsel %vm78_vm4, %v3772_v2, %v3843_v28  ;;  %v4454_v2 = vld [vmem:[%s6621_s7 + $0x8] sm:$0xff]  ;;  %v4455_v28 = vld [vmem:[%s6621_s7 + $0x10] sm:$0xff] }
0x27df   :  { %v3848_v37 = vsel %vm5593_vm13, %v3846_v32, %v3847_v48  ;;  %v4453_v32 = vld [vmem:[%s6621_s7] sm:$0xff]  ;;  %v4144_v48 = vrot.slane %v6376_v4, 4 }
0x27e0   :  { %v3849_v8 = vadd.f32 %v3848_v37, %v6208_v35  ;;  %v5018_v37 = vpack.c.bf16 %v4454_v2, %v4453_v32 }
0x27e2   :  { %5171 = vtanh.f32 %v3849_v8  ;;  %v4608_v39 = vmul.f32 -1.442695, %v3849_v8  ;;  %v4456_v8 = vld [vmem:[%s6621_s7 + $0x18] sm:$0xff]  ;;  %5019 = vmatprep.subr.bf16.mxu0 %v5018_v37 }
0x27e4   :  { %5173 = vpow2.f32 %v4608_v39  ;;  %v4457_v39 = vld [vmem:[%s6621_s7 + $0x20] sm:$0xff] }
0x27ec   :  { %v5172_v0 = vpop.eup %5171 }
0x27ed   :  { %3859 = vrot.lane.b32.xlu0 %v5172_v0, %s5263_s3  ;;  %v5022_v0 = vpack.c.bf16 %v4456_v8, %v4455_v28 }
0x27ee   :  { %v5174_v43 = vpop.eup %5173 }
0x27ef   :  { %v3853_v24 = vadd.f32 1.0, %v5174_v43  ;;  %v4458_v43 = vld [vmem:[%s6621_s7 + $0x28] sm:$0xff] }
0x27f1   :  { %5175 = vrcp.f32 %v3853_v24 }
0x27fb   :  { %v5176_v49 = vpop.eup %5175 }
0x27fc   :  { %v3857_v18 = vmul.f32 %v5176_v49, %v3673_v30 }
0x285f   :  { %v3860_v25 = vpop.permute.xlu0 %3859 }
0x2860   :  { %v3862_v29 = vmul.f32 %v5176_v49, %v3860_v25  ;;  %v4459_v25 = vld [vmem:[%s6621_s7 + $0x30] sm:$0xff] }
0x2862   :  { %3864 = vrot.lane.b32.xlu1 %v3862_v29, %s5260_s26  ;;  %v4460_v29 = vld [vmem:[%s6621_s7 + $0x38] sm:$0xff] }
0x28d4   :  { %v3865_v42 = vpop.permute.xlu1 %3864 }
0x28d5   :  { %v3867_v6 = vadd.f32 %v3865_v42, %v3857_v18  ;;  %v5030_v18 = vpack.c.bf16 %v4460_v29, %v4459_v25 }
0x28d7   :  { %5177 = vtanh.f32 %v3867_v6 }
0x28e1   :  { %v5178_v46 = vpop.eup %5177 }
0x28e2   :  { %3870 = vrot.lane.b32.xlu0 %v5178_v46, %s5263_s3  ;;  %v4461_v46 = vld [vmem:[%s6621_s7 + $0x40] sm:$0xff] }
0x2954   :  { %v3871_v35 = vpop.permute.xlu0 %3870 }
0x2955   :  { %v6404_v33 = vmul.f32 %v5176_v49, %v3871_v35  ;;  %v5026_v49 = vpack.c.bf16 %v4458_v43, %v4457_v39  ;;  %v4462_v35 = vld [vmem:[%s6621_s7 + $0x48] sm:$0xff]  ;;  %v4134_v39 = vrot.slane %v6316_v45, 6  ;;  %v4162_v45 = vrot.slane %v6256_v7, 6 }
0x2957   :  { %3894 = vrot.lane.b32.xlu1 %v6404_v33, %s5260_s26  ;;  %v4084_v13 = vrot.slane %v6404_v33, 2  ;;  %v4158_v24 = vrot.slane %v6404_v33, 4 }
0x29c9   :  { %v6408_v1 = vpop.permute.xlu1 %3894 }
0x29ca   :  { %4609 = vmatmul.mubr.msk.f32.vlgmr.msra.gmra.mrb[34].mxu0 %vm349_vm14, %v6408_v1  ;;  %4610 = vmatmul.mubr.msk.f32.vlgmr.msra.gmra.mrb[42].mxu1 %vm349_vm14, %v6408_v1 }
0x29cb   :  { %5021 = vmatpush3.bf16.msra.mxu0 %v5018_v37 }
0x29cc   :  { %5023 = vmatprep.subr.bf16.mxu0 %v5022_v0 }
0x29cf   :  { %5025 = vmatpush3.bf16.msra.mxu0 %v5022_v0 }
0x29d0   :  { %5027 = vmatprep.subr.bf16.mxu0 %v5026_v49 }
0x29d3   :  { %5029 = vmatpush3.bf16.msra.mxu0 %v5026_v49  ;;  %v4148_v49 = vrot.slane %v6286_v58, 6 }
0x29d4   :  { %5031 = vmatprep.subr.bf16.mxu0 %v5030_v18 }
0x29d7   :  { %5033 = vmatpush3.bf16.msra.mxu0 %v5030_v18 }
0x2a9d   :  { %v3964_v22 = vpop.f32.mrb[34].mxu0  ;;  %v4035_v19 = vpop.f32.mrb[42].mxu1 }
0x2a9e   :  { %v4040_v16 = vsel %vm78_vm4, %v3964_v22, %v4035_v19  ;;  %v3966_v55 = vpop.f32.mrb[35].mxu0  ;;  %v4037_v34 = vpop.f32.mrb[43].mxu1  ;;  %v4463_v22 = vld [vmem:[%s6621_s7 + $0x50] sm:$0xff]  ;;  %v5034_v19 = vpack.c.bf16 %v4462_v35, %v4461_v46 }
0x2a9f   :  { %v4041_v53 = vsel %vm78_vm4, %v3966_v55, %v4037_v34 }
0x2aa0   :  { %v4042_v41 = vsel %vm5593_vm13, %v4040_v16, %v4041_v53  ;;  %v4464_v16 = vld [vmem:[%s6621_s7 + $0x58] sm:$0xff]  ;;  %v4465_v53 = vld [vmem:[%s6621_s7 + $0x60] sm:$0xff]  ;;  %5035 = vmatprep.subr.bf16.mxu0 %v5034_v19 }
0x2aa1   :  { %v4043_v57 = vadd.f32 %v4042_v41, %v6221_v31  ;;  %v4102_v31 = vrot.slane %v6286_v58, 4  ;;  %v5038_v34 = vpack.c.bf16 %v4464_v16, %v4463_v22  ;;  %v4466_v41 = vld [vmem:[%s6621_s7 + $0x68] sm:$0xff]  ;;  %5037 = vmatpush3.bf16.msra.mxu0 %v5034_v19 }
0x2aa3   :  { %5179 = vtanh.f32 %v4043_v57  ;;  %v4611_v26 = vmul.f32 -1.442695, %v4043_v57  ;;  %5039 = vmatprep.subr.bf16.mxu0 %v5038_v34 }
0x2aa5   :  { %5181 = vpow2.f32 %v4611_v26  ;;  %v4170_v26 = vrot.slane %v6226_v21, 2  ;;  %5041 = vmatpush3.bf16.msra.mxu0 %v5038_v34 }
0x2aad   :  { %v5180_v52 = vpop.eup %5179 }
0x2aae   :  { %4053 = vrot.lane.b32.xlu0 %v5180_v52, %s5263_s3  ;;  %v5042_v52 = vpack.c.bf16 %v4466_v41, %v4465_v53 }
0x2aaf   :  { %v5182_v56 = vpop.eup %5181 }
0x2ab0   :  { %v4047_v17 = vadd.f32 1.0, %v5182_v56  ;;  %v4467_v56 = vld [vmem:[%s6621_s7 + $0x70] sm:$0xff]  ;;  %5043 = vmatprep.subr.bf16.mxu0 %v5042_v52 }
0x2ab1   :  { %5045 = vmatpush3.bf16.msra.mxu0 %v5042_v52 }
0x2ab2   :  { %5183 = vrcp.f32 %v4047_v17  ;;  %v4468_v17 = vld [vmem:[%s6621_s7 + $0x78] sm:$0xff] }
0x2abc   :  { %v5184_v36 = vpop.eup %5183 }
0x2abd   :  { %v4051_v10 = vmul.f32 %v5184_v36, %v3867_v6 }
0x2b20   :  { %v4054_v44 = vpop.permute.xlu0 %4053 }
0x2b21   :  { %v4056_v63 = vmul.f32 %v5184_v36, %v4054_v44 }
0x2b23   :  { %4058 = vrot.lane.b32.xlu1 %v4056_v63, %s5260_s26 }
0x2b27   :  { %4085 = vrot.lane.b32.xlu1 %v4084_v13, %s5263_s3 }
0x2b2b   :  { %4099 = vrot.lane.b32.xlu1 %v4098_v12, %s5263_s3 }
0x2b2f   :  { %4103 = vrot.lane.b32.xlu1 %v4102_v31, %s5264_s23 }
0x2b33   :  { %4075 = vrot.lane.b32.xlu1 %v4074_v9, %s5264_s23 }
0x2b37   :  { %4127 = vrot.lane.b32.xlu1 %v4126_v15, %s5263_s3 }
0x2b3b   :  { %4141 = vrot.lane.b32.xlu1 %v4140_v54, %s5263_s3 }
0x2b3f   :  { %4155 = vrot.lane.b32.xlu1 %v4154_v60, %s5263_s3 }
0x2b95   :  { %v4059_v61 = vpop.permute.xlu1 %4058 }
0x2b96   :  { %v4061_v38 = vadd.f32 %v4059_v61, %v4051_v10 }
0x2b98   :  { %5185 = vtanh.f32 %v4061_v38 }
0x2b99   :  { %v4086_v44 = vpop.permute.xlu1 %4085 }
0x2b9a   :  { %v4094_v61 = vsel %vm349_vm14, %v6260_v62, %v4086_v44 }
0x2b9d   :  { %v4100_v63 = vpop.permute.xlu1 %4099 }
0x2b9e   :  { %v4108_v10 = vsel %vm349_vm14, %v6290_v47, %v4100_v63 }
0x2ba1   :  { %v4104_v12 = vpop.permute.xlu1 %4103 }
0x2ba2   :  { %v5186_v30 = vpop.eup %5185  ;;  %v4109_v38 = vsel %vm156_vm0, %v4108_v10, %v4104_v12 }
0x2ba3   :  { %4064 = vrot.lane.b32.xlu0 %v5186_v30, %s5263_s3 }
0x2ba5   :  { %v4076_v9 = vpop.permute.xlu1 %4075 }
0x2ba7   :  { %4089 = vrot.lane.b32.xlu0 %v4088_v59, %s5264_s23  ;;  %v4106_v59 = vrot.slane %v6376_v4, 6 }
0x2ba9   :  { %v4128_v54 = vpop.permute.xlu1 %4127  ;;  %v4110_v32 = vsel %vm1889_vm15, %v4109_v38, %v4106_v59 }
0x2baa   :  { %v4136_v62 = vsel %vm349_vm14, %v6350_v51, %v4128_v54  ;;  %v4238_v4 = vrot.slane %v4110_v32, %v5924_v40 }
0x2bab   :  { %4113 = vrot.lane.b32.xlu0 %v4112_v3, %s5263_s3 }
0x2bac   :  { %v4239_v25 = vcombine.high %v4238_v4, %v4238_v4  ;;  %v4246_v35 = vrot.slane %v4238_v4, %v5924_v40 }
0x2bad   :  { %v4142_v30 = vpop.permute.xlu1 %4141 }
0x2bae   :  { %v4253_v22 = vrot.slane %v4239_v25, %v5924_v40 }
0x2baf   :  { %4117 = vrot.lane.b32.xlu0 %v4116_v27, %s5264_s23 }
0x2bb0   :  { %v4386_v44 = vrot.slane %v4253_v22, %v5478_v14 }
0x2bb1   :  { %v4156_v37 = vpop.permute.xlu1 %4155 }
0x2bb3   :  { %4131 = vrot.lane.b32.xlu0 %v4130_v5, %s5264_s23  ;;  %v4092_v5 = vrot.slane %v6404_v33, 6  ;;  %v4150_v33 = vsel %vm349_vm14, %v6380_v23, %v4142_v30 }
0x2bb7   :  { %4145 = vrot.lane.b32.xlu0 %v4144_v48, %s5264_s23  ;;  %v4120_v48 = vrot.slane %v6346_v50, 6  ;;  %v4164_v50 = vsel %vm349_vm14, %v6408_v1, %v4156_v37 }
0x2bbb   :  { %4159 = vrot.lane.b32.xlu0 %v4158_v24, %s5264_s23 }
0x2c15   :  { %v4065_v42 = vpop.permute.xlu0 %4064 }
0x2c16   :  { %v6474_v6 = vmul.f32 %v5184_v36, %v4065_v42  ;;  %v5046_v36 = vpack.c.bf16 %v4468_v17, %v4467_v56  ;;  %v4382_v56 = vrot.slane %v4246_v35, %v5478_v14 }
0x2c18   :  { %4167 = vrot.lane.b32.xlu1 %v6474_v6, %s5260_s26  ;;  %v4070_v55 = vrot.slane %v6474_v6, 2  ;;  %v4174_v57 = vrot.slane %v6474_v6, 4  ;;  %5047 = vmatprep.subr.bf16.mxu0 %v5046_v36  ;;  %v4078_v41 = vrot.slane %v6474_v6, 6 }
0x2c19   :  { %5049 = vmatpush3.bf16.msra.mxu0 %v5046_v36  ;;  %v4090_v13 = vpop.permute.xlu0 %4089 }
0x2c1a   :  { %4071 = vrot.lane.b32.xlu0 %v4070_v55, %s5263_s3  ;;  %v4095_v3 = vsel %vm156_vm0, %v4094_v61, %v4090_v13 }
0x2c1b   :  { %v4096_v47 = vsel %vm1889_vm15, %v4095_v3, %v4092_v5 }
0x2c1c   :  { %4175 = vrot.lane.b32.xlu1 %v4174_v57, %s5264_s23  ;;  %v4215_v0 = vrot.slane %v4096_v47, %v5924_v40 }
0x2c1d   :  { %v4114_v31 = vpop.permute.xlu0 %4113 }
0x2c1e   :  { %4171 = vrot.lane.b32.xlu0 %v4170_v26, %s5263_s3  ;;  %v4122_v2 = vsel %vm349_vm14, %v6320_v11, %v4114_v31  ;;  %v4216_v18 = vcombine.high %v4215_v0, %v4215_v0  ;;  %v4223_v55 = vrot.slane %v4215_v0, %v5924_v40  ;;  %v4178_v26 = vrot.slane %v6226_v21, 6 }
0x2c20   :  { %v4230_v34 = vrot.slane %v4216_v18, %v5924_v40  ;;  %v4372_v12 = vrot.slane %v4223_v55, %v5478_v14  ;;  %v4552_v55 = vld [vmem:[%s6623_s9 + $0x8] sm:$0xff] }
0x2c21   :  { %v4118_v15 = vpop.permute.xlu0 %4117 }
0x2c22   :  { %v4123_v28 = vsel %vm156_vm0, %v4122_v2, %v4118_v15  ;;  %v4376_v31 = vrot.slane %v4230_v34, %v5478_v14 }
0x2c23   :  { %v4124_v11 = vsel %vm1889_vm15, %v4123_v28, %v4120_v48 }
0x2c24   :  { %v4261_v29 = vrot.slane %v4124_v11, %v5924_v40 }
0x2c25   :  { %v4132_v60 = vpop.permute.xlu0 %4131 }
0x2c26   :  { %v4137_v8 = vsel %vm156_vm0, %v4136_v62, %v4132_v60  ;;  %v4262_v19 = vcombine.high %v4261_v29, %v4261_v29  ;;  %v4269_v17 = vrot.slane %v4261_v29, %v5924_v40 }
0x2c27   :  { %v4138_v51 = vsel %vm1889_vm15, %v4137_v8, %v4134_v39 }
0x2c28   :  { %v4284_v46 = vrot.slane %v4138_v51, %v5924_v40  ;;  %v4276_v63 = vrot.slane %v4262_v19, %v5924_v40  ;;  %v4392_v38 = vrot.slane %v4269_v17, %v5478_v14 }
0x2c29   :  { %v4146_v27 = vpop.permute.xlu0 %4145 }
0x2c2a   :  { %v4151_v24 = vsel %vm156_vm0, %v4150_v33, %v4146_v27  ;;  %v4285_v7 = vcombine.high %v4284_v46, %v4284_v46  ;;  %v4396_v27 = vrot.slane %v4276_v63, %v5478_v14 }
0x2c2b   :  { %v4152_v42 = vsel %vm1889_vm15, %v4151_v24, %v4148_v49 }
0x2c2c   :  { %v4307_v58 = vrot.slane %v4152_v42, %v5924_v40  ;;  %v4299_v54 = vrot.slane %v4285_v7, %v5924_v40 }
0x2c2d   :  { %v4160_v43 = vpop.permute.xlu0 %4159 }
0x2c2e   :  { %v4165_v23 = vsel %vm156_vm0, %v4164_v50, %v4160_v43  ;;  %v4308_v13 = vcombine.high %v4307_v58, %v4307_v58  ;;  %v4406_v4 = vrot.slane %v4299_v54, %v5478_v14 }
0x2c2f   :  { %v4166_v1 = vsel %vm1889_vm15, %v4165_v23, %v4162_v45 }
0x2c30   :  { %v4330_v57 = vrot.slane %v4166_v1, %v5924_v40  ;;  %v4322_v5 = vrot.slane %v4308_v13, %v5924_v40 }
0x2c32   :  { %v4331_v60 = vcombine.high %v4330_v57, %v4330_v57  ;;  %v4338_v32 = vrot.slane %v4330_v57, %v5924_v40  ;;  %v4416_v24 = vrot.slane %v4322_v5, %v5478_v14 }
0x2c34   :  { %v4345_v8 = vrot.slane %v4331_v60, %v5924_v40  ;;  %v4422_v50 = vrot.slane %v4338_v32, %v5478_v14 }
0x2c36   :  { %v4426_v45 = vrot.slane %v4345_v8, %v5478_v14 }
0x2c8a   :  { %v4168_v16 = vpop.permute.xlu1 %4167 }
0x2c8c   :  { %v4072_v53 = vpop.permute.xlu0 %4071 }
0x2c8d   :  { %v4080_v52 = vsel %vm349_vm14, %v6230_v20, %v4072_v53  ;;  %v4292_v20 = vrot.slane %v4284_v46, %v5924_v40 }
0x2c8e   :  { %v4081_v36 = vsel %vm156_vm0, %v4080_v52, %v4076_v9  ;;  %v4315_v9 = vrot.slane %v4307_v58, %v5924_v40  ;;  %v4176_v10 = vpop.permute.xlu1 %4175 }
0x2c8f   :  { %v4082_v6 = vsel %vm1889_vm15, %v4081_v36, %v4078_v41  ;;  %v4402_v47 = vrot.slane %v4292_v20, %v5478_v14 }
0x2c90   :  { %v4190_v21 = vrot.slane %v4082_v6, %v5924_v40  ;;  %v4172_v15 = vpop.permute.xlu0 %4171  ;;  %v4412_v37 = vrot.slane %v4315_v9, %v5478_v14 }
0x2c91   :  { %v4180_v61 = vsel %vm349_vm14, %v4168_v16, %v4172_v15 }
0x2c92   :  { %v4191_v30 = vcombine.high %v4190_v21, %v4190_v21  ;;  %v4198_v59 = vrot.slane %v4190_v21, %v5924_v40  ;;  %v4181_v3 = vsel %vm156_vm0, %v4180_v61, %v4176_v10  ;;  %vm4555_vm0 = vcmask 15360  }
0x2c93   :  { %v4182_v2 = vsel %vm1889_vm15, %v4181_v3, %v4178_v26 }
0x2c94   :  { %v4205_v28 = vrot.slane %v4191_v30, %v5924_v40  ;;  %v4439_v62 = vsel %vm2247_vm7, %v4198_v59, %v4372_v12  ;;  %v4353_v48 = vrot.slane %v4182_v2, %v5924_v40 }
0x2c95   :  { %v4441_v33 = vsel %vm343_vm3, %v4439_v62, %v4382_v56 }
0x2c96   :  { %v4440_v0 = vsel %vm2247_vm7, %v4205_v28, %v4376_v31  ;;  %v4354_v11 = vcombine.high %v4353_v48, %v4353_v48  ;;  %v4361_v39 = vrot.slane %v4353_v48, %v5924_v40  ;;  %v4443_v43 = vsel %vm2252_vm8, %v4441_v33, %v4392_v38 }
0x2c97   :  { %v4445_v51 = vsel %vm345_vm9, %v4443_v43, %v4402_v47  ;;  %v4442_v49 = vsel %vm343_vm3, %v4440_v0, %v4386_v44 }
0x2c98   :  { %v4432_v25 = vrot.slane %v4361_v39, %v5478_v14  ;;  %v4447_v29 = vsel %vm2257_vm10, %v4445_v51, %v4412_v37  ;;  %v4368_v23 = vrot.slane %v4354_v11, %v5924_v40  ;;  %v4444_v18 = vsel %vm2252_vm8, %v4442_v49, %v4396_v27  ;;  %v4612_v40 = vld [vmem:[%s6622_s8] ss:$0 sm:$0xff] }
0x2c99   :  { %v4449_v42 = vsel %vm347_vm11, %v4447_v29, %v4422_v50  ;;  %v4446_v46 = vsel %vm345_vm9, %v4444_v18, %v4406_v4 }
0x2c9a   :  { %v4451_v35 = vsel %vm2262_vm12, %v4449_v42, %v4432_v25  ;;  %v4436_v1 = vrot.slane %v4368_v23, %v5478_v14  ;;  %v4448_v22 = vsel %vm2257_vm10, %v4446_v46, %v4416_v24  ;;  %v4551_v14 = vld [vmem:[%s6623_s9] sm:$0xff] }
0x2c9b   :  { %4663 = vmatprep.mubr.f32.mxu0 %v4451_v35  ;;  %v4450_v19 = vsel %vm347_vm11, %v4448_v22, %v4426_v45 }
0x2c9c   :  { %v4452_v58 = vsel %vm2262_vm12, %v4450_v19, %v4436_v1 }
0x2c9d   :  { %4664 = vmatmul.mubr.f32.vlgmr.msra.gmra.mrb[36].mxu0 %v4452_v58 }
0x2d70   :  { %v4665_v16 = vpop.f32.mrb[36].mxu0 }
0x2d71   :  { %v4548_v34 = vadd.f32 %v4665_v16, %v4612_v40  ;;  %v4542_v53 = vpop.f32.mrb[37].mxu0 }
0x2d72   :  { %v4543_v41 = vadd.f32 %v4612_v40, %v4542_v53 }
0x2d73   :  { %v4554_v7 = vmul.f32 %v4552_v55, %v4548_v34 }
0x2d74   :  { %v4553_v57 = vmul.f32 %v4551_v14, %v4543_v41 }
0x2d75   :  { %4557 = vst.msk [vmem:[%s6624_s10 + $0x8] sm:$0xff] %vm4555_vm0, %v4554_v7 }
0x2d76   :  { %4556 = vst.msk [vmem:[%s6624_s10] sm:$0xff] %vm4555_vm0, %v4553_v57 }
0x2d77   :  { %4562 = vsyncpa [#allocation3], 1 }
0x2d78   :  { %4563 = vsyncpa [#allocation5], 1 }

</bundles_post_ra>
